<compile_context>
chip_gen: v7x
topology: tpu7x:2x2x1
jax: 0.10.0
libtpu: 0.0.40
codegen_flags: <defaults>
</compile_context>

<pallas_src>
import jax
import jax.numpy as jnp
from jax.experimental import pallas as pl
from jax.experimental.pallas import tpu as pltpu


def se_block_kernel(x_se_ref, w1_ref, b1_ref, x_ref, w2_ref, o_ref):
    # squeeze 1x1 conv: (1632,68)bf16 @ (68,1)bf16 -> f32, + bias f32
    se = jnp.dot(w1_ref[...], x_se_ref[...],
                 preferred_element_type=jnp.float32) + b1_ref[...]
    gate = jax.nn.sigmoid(se)                                   # (1632,1) f32, EUP

    # excitation: scale each channel (row) of the (1632,49) feature map,
    # cast to bf16 for the MXU (f32 accumulate below).
    scaled = (x_ref[...] * gate).astype(jnp.bfloat16)

    # expand 1x1 conv (no bias): (row_block,1632)bf16 @ (1632,49)bf16 -> f32
    o_ref[...] = jnp.dot(w2_ref[...], scaled,
                         preferred_element_type=jnp.float32)


def _num_row_blocks():
    """2 output-row blocks on v7x (2 TensorCores/chip), else gridless."""
    try:
        kind = jax.devices()[0].device_kind.lower().replace(" ", "")
    except Exception:
        return 1
    return 2 if ("v7" in kind or "tpu7" in kind) else 1


def prepare_params(w1, b1, w2):
    """One-time weight prep (do NOT call per step): reshape + bf16 convert."""
    C_mid, C_se = w1.shape[0], w1.shape[1]
    C_out = w2.shape[0]
    w1m = w1.reshape(C_mid, C_se).astype(jnp.bfloat16)     # (1632, 68)  bf16
    b1c = b1.reshape(C_mid, 1).astype(jnp.float32)         # (1632, 1)   f32
    w2m = w2.reshape(C_out, C_mid).astype(jnp.bfloat16)    # (272, 1632) bf16
    return w1m, b1c, w2m


def se_block(x410, x407, w1m, b1c, w2m):
    """x410: (1,68,1,1)  x407: (1,1632,7,7)
       w1m: (1632,68) bf16   b1c: (1632,1) f32   w2m: (272,1632) bf16
       returns (1,272,7,7) float32 (NCHW, matching PyTorch)."""
    N, C_mid, H, W = x407.shape            # 1, 1632, 7, 7
    C_se = x410.shape[1]                   # 68
    C_out = w2m.shape[0]                   # 272
    HW = H * W                             # 49

    # --- pure reshapes only on activations (no transposes, no copies) ---
    x_se = x410.reshape(C_se, 1).astype(jnp.bfloat16)        # (68, 1)
    x_sp = x407.reshape(C_mid, HW).astype(jnp.float32)       # (1632, 49)

    cost = pl.CostEstimate(
        flops=2 * HW * C_mid * C_out + 2 * C_mid * C_se,
        transcendentals=C_mid,
        bytes_accessed=(x_sp.size * 4 + w1m.size * 2 + b1c.size * 4
                        + x_se.size * 2 + w2m.size * 2 + C_out * HW * 4),
    )
    out_shape = jax.ShapeDtypeStruct((C_out, HW), jnp.float32)

    nb = _num_row_blocks()
    if nb == 1:
        # v5e / v6e: single fully-resident invocation, no grid overhead.
        out = pl.pallas_call(
            se_block_kernel,
            out_shape=out_shape,
            in_specs=[pl.BlockSpec(memory_space=pltpu.MemorySpace.VMEM)] * 5,
            out_specs=pl.BlockSpec(memory_space=pltpu.MemorySpace.VMEM),
            cost_estimate=cost,
            compiler_params=pltpu.CompilerParams(vmem_limit_bytes=8 << 20),
        )(x_se, w1m, b1c, x_sp, w2m)
    else:
        # v7x: split output rows across the two TensorCores.
        # row_block is a multiple of 16 so bf16 sublane packing stays aligned;
        # the trailing block is partial (Pallas masks the out-of-bounds store).
        row_block = (-(-C_out // nb) + 15) // 16 * 16        # 272 -> 144
        grid = (pl.cdiv(C_out, row_block),)                  # (2,)
        out = pl.pallas_call(
            se_block_kernel,
            out_shape=out_shape,
            grid_spec=pltpu.PrefetchScalarGridSpec(
                num_scalar_prefetch=0,
                grid=grid,
                in_specs=[
                    pl.BlockSpec((C_se, 1), lambda i: (0, 0)),       # x_se
                    pl.BlockSpec((C_mid, C_se), lambda i: (0, 0)),   # w1
                    pl.BlockSpec((C_mid, 1), lambda i: (0, 0)),      # b1
                    pl.BlockSpec((C_mid, HW), lambda i: (0, 0)),     # x
                    pl.BlockSpec((row_block, C_mid), lambda i: (i, 0)),  # w2
                ],
                out_specs=pl.BlockSpec((row_block, HW), lambda i: (i, 0)),
            ),
            cost_estimate=cost,
            compiler_params=pltpu.CompilerParams(
                dimension_semantics=("parallel",),
                vmem_limit_bytes=8 << 20),
        )(x_se, w1m, b1c, x_sp, w2m)

    # (272, 49) -> (1, 272, 7, 7): pure reshape, no transpose
    return out.reshape(N, C_out, H, W)


def reference(x410, x407, w1, b1, w2):
    # pure-JAX f32 reference of the same math (1x1 convs as matmuls)
    N, C_mid, H, W = x407.shape
    C_se = x410.shape[1]
    C_out = w2.shape[0]
    se = x410.reshape(N, C_se) @ w1.reshape(C_mid, C_se).T + b1      # (1, 1632)
    gate = jax.nn.sigmoid(se).reshape(N, C_mid, 1, 1)
    scaled = x407 * gate                                             # (1,1632,7,7)
    y = jnp.einsum("nchw,oc->nohw", scaled, w2.reshape(C_out, C_mid))
    return y


if __name__ == "__main__":
    key = jax.random.PRNGKey(0)
    k1, k2, k3, k4, k5 = jax.random.split(key, 5)

    # inputs (shapes implied by the module's forward)
    x407 = jax.random.normal(k1, (1, 1632, 7, 7), dtype=jnp.float32)
    x410 = jax.random.normal(k2, (1, 68, 1, 1), dtype=jnp.float32)

    # deterministic parameter init (shapes from the module __init__)
    w1 = 0.05 * jax.random.normal(k3, (1632, 68, 1, 1), dtype=jnp.float32)   # conv2d132 weight
    b1 = 0.05 * jax.random.normal(k4, (1632,), dtype=jnp.float32)            # conv2d132 bias
    w2 = 0.02 * jax.random.normal(k5, (272, 1632, 1, 1), dtype=jnp.float32)  # conv2d133 weight

    # one-time bf16 weight conversion (outside the hot path)
    params = prepare_params(w1, b1, w2)
    se_fn = jax.jit(se_block)

    out = jax.block_until_ready(se_fn(x410, x407, *params))
    ref = jax.block_until_ready(reference(x410, x407, w1, b1, w2))

    assert out.shape == (1, 272, 7, 7), out.shape
    # tolerance relaxed for bf16 matmuls (f32 accumulation)
    max_err = float(jnp.max(jnp.abs(out - ref)))
    assert jnp.allclose(out, ref, atol=2e-2, rtol=2e-2), max_err
    print("KERNEL_OK")
</pallas_src>

<mosaic_0001>
module attributes {stable_mosaic.version = 11 : i64} {
  func.func @se_block_kernel(%arg0: memref<68x1xbf16, #tpu.memory_space<vmem>>, %arg1: memref<1632x68xbf16, #tpu.memory_space<vmem>>, %arg2: memref<1632x1xf32, #tpu.memory_space<vmem>>, %arg3: memref<1632x49xf32, #tpu.memory_space<vmem>>, %arg4: memref<272x1632xbf16, #tpu.memory_space<vmem>>, %arg5: memref<272x49xf32, #tpu.memory_space<vmem>>) attributes {dimension_semantics = [], scalar_prefetch = 0 : i64, scratch_operands = 0 : i64, tpu.core_type = #tpu.core_type<tc>} {
    %c0 = arith.constant 0 : index
    %c0_0 = arith.constant 0 : index
    %0 = vector.load %arg1[%c0, %c0_0] : memref<1632x68xbf16, #tpu.memory_space<vmem>>, vector<1632x68xbf16>
    %c0_1 = arith.constant 0 : index
    %c0_2 = arith.constant 0 : index
    %1 = vector.load %arg0[%c0_1, %c0_2] : memref<68x1xbf16, #tpu.memory_space<vmem>>, vector<68x1xbf16>
    %cst = arith.constant dense<0.000000e+00> : vector<1632x1xf32>
    %2 = tpu.matmul %0, %1, %cst {dimension_numbers = #tpu.dot_dimension_numbers<[1], [0], [0], [1], [0, 0, 1, 1], [], []>} : vector<1632x68xbf16>, vector<68x1xbf16>, vector<1632x1xf32> -> vector<1632x1xf32>
    %c0_3 = arith.constant 0 : index
    %c0_4 = arith.constant 0 : index
    %3 = vector.load %arg2[%c0_3, %c0_4] : memref<1632x1xf32, #tpu.memory_space<vmem>>, vector<1632x1xf32>
    %4 = arith.addf %2, %3 : vector<1632x1xf32>
    %5 = arith.negf %4 : vector<1632x1xf32>
    %6 = math.exp %5 : vector<1632x1xf32>
    %cst_5 = arith.constant 1.000000e+00 : f32
    %7 = vector.broadcast %cst_5 : f32 to vector<1632x1xf32>
    %8 = arith.addf %7, %6 : vector<1632x1xf32>
    %9 = arith.divf %7, %8 : vector<1632x1xf32>
    %c0_6 = arith.constant 0 : index
    %c0_7 = arith.constant 0 : index
    %10 = vector.load %arg3[%c0_6, %c0_7] : memref<1632x49xf32, #tpu.memory_space<vmem>>, vector<1632x49xf32>
    %11 = vector.broadcast %9 : vector<1632x1xf32> to vector<1632x49xf32>
    %12 = arith.mulf %10, %11 : vector<1632x49xf32>
    %13 = arith.truncf %12 : vector<1632x49xf32> to vector<1632x49xbf16>
    %c0_8 = arith.constant 0 : index
    %c0_9 = arith.constant 0 : index
    %14 = vector.load %arg4[%c0_8, %c0_9] : memref<272x1632xbf16, #tpu.memory_space<vmem>>, vector<272x1632xbf16>
    %cst_10 = arith.constant dense<0.000000e+00> : vector<272x49xf32>
    %15 = tpu.matmul %14, %13, %cst_10 {dimension_numbers = #tpu.dot_dimension_numbers<[1], [0], [0], [1], [0, 0, 1, 1], [], []>} : vector<272x1632xbf16>, vector<1632x49xbf16>, vector<272x49xf32> -> vector<272x49xf32>
    %c0_11 = arith.constant 0 : index
    %c0_12 = arith.constant 0 : index
    %16 = vector.load %arg5[%c0_11, %c0_12] : memref<272x49xf32, #tpu.memory_space<vmem>>, vector<272x49xf32>
    tpu.vector_store %arg5[%c0_11, %c0_12], %15 {strides = array<i32>} : memref<272x49xf32, #tpu.memory_space<vmem>>, vector<272x49xf32>,
    return
  }
}

</mosaic_0001>

<bundles_post_ra>
// kernel: se_block.1
= control target key start
LH: loop header
LB: loop body
LE: loop exit
PB: predicated region body
PF: predicated region fallthrough
CT: control target
= control target key end

     0   :  { %vm975_vm0 = vcmask 556032   ;;  %vm1282_vm1 = vcmask 1041408   ;;  %vm10241_vm2 = vmmov 0   ;;  %vm6232_vm3 = vcmask 785408   ;;  %s13808_s0 = inlined_call_operand.vmem [shape: bf16[68,1], index: 0, kind: input, shape index: {}]   ;;  %s13809_s1 = inlined_call_operand.vmem [shape: bf16[1632,68], index: 1, kind: input, shape index: {}]   ;;  %s13810_s2 = inlined_call_operand.vmem [shape: f32[1632,1], index: 2, kind: input, shape index: {}]   ;;  %s13811_s4 = inlined_call_operand.vmem [shape: bf16[272,1632], index: 4, kind: input, shape index: {}]   ;;  %s13812_s3 = inlined_call_operand.vmem [shape: f32[1632,49], index: 3, kind: input, shape index: {}]   ;;  %s13813_s5 = inlined_call_operand.vmem [shape: f32[272,49], index: 5, kind: output, shape index: {}]  }
   0x1   :  { %v8993_v0 = vld [vmem:[%s13808_s0] sm:$0xff]   ;;  %v8994_v1 = vld [vmem:[%s13808_s0 + $0x8] sm:$0xff]   ;;  %v8995_v2 = vld [vmem:[%s13808_s0 + $0x10] sm:$0xff]   ;;  %vm7467_vm4 = vcmask 400384  }
   0x2   :  { %8287 = vmatprep.subr.bf16.mxu0 %v8993_v0  ;;  %v8998_v3 = vld [vmem:[%s13809_s1] sm:$0xff]   ;;  %v8996_v4 = vld [vmem:[%s13808_s0 + $0x18] sm:$0xff]   ;;  %v8999_v7 = vld [vmem:[%s13809_s1 + $0x8] sm:$0xff]  }
   0x3   :  { %8288 = vmatpush3.bf16.msra.mxu0 %v8993_v0  ;;  %8297 = vmatprep.mubr.msk.bf16.mxu0 %vm975_vm0, %v8998_v3  ;;  %v8997_v5 = vld [vmem:[%s13808_s0 + $0x20] ss:$0 sps:$4 sm:$0x33]   ;;  %v9000_v8 = vld [vmem:[%s13809_s1 + $0x10] sm:$0xff]   ;;  %v9001_v9 = vld [vmem:[%s13809_s1 + $0x18] sm:$0xff]  }
   0x4   :  { %8289 = vmatprep.subr.bf16.mxu0 %v8994_v1  ;;  %v1284_v6 = vsel %vm1282_vm1, %v8997_v5, 0  ;;  %v9002_v10 = vld [vmem:[%s13809_s1 + $0x20] sm:$0xff]   ;;  %v9003_v11 = vld [vmem:[%s13809_s1 + $0x28] sm:$0xff]   ;;  %v9004_v12 = vld [vmem:[%s13809_s1 + $0x30] sm:$0xff]  }
   0x5   :  { %v9005_v13 = vld [vmem:[%s13809_s1 + $0x38] sm:$0xff]   ;;  %v9006_v14 = vld [vmem:[%s13809_s1 + $0x40] sm:$0xff]   ;;  %v9007_v15 = vld [vmem:[%s13809_s1 + $0x48] sm:$0xff]  }
   0x6   :  { %v9008_v16 = vld [vmem:[%s13809_s1 + $0x50] sm:$0xff]   ;;  %v9009_v17 = vld [vmem:[%s13809_s1 + $0x58] sm:$0xff]   ;;  %v9010_v18 = vld [vmem:[%s13809_s1 + $0x60] sm:$0xff]  }
   0x7   :  { %8290 = vmatpush3.bf16.msra.mxu0 %v8994_v1  ;;  %v9011_v19 = vld [vmem:[%s13809_s1 + $0x68] sm:$0xff]   ;;  %v9012_v20 = vld [vmem:[%s13809_s1 + $0x70] sm:$0xff]   ;;  %v9013_v21 = vld [vmem:[%s13809_s1 + $0x78] sm:$0xff]  }
   0x8   :  { %8291 = vmatprep.subr.bf16.mxu0 %v8995_v2  ;;  %v9014_v22 = vld [vmem:[%s13809_s1 + $0x80] sm:$0xff]   ;;  %v9015_v23 = vld [vmem:[%s13809_s1 + $0x88] sm:$0xff]   ;;  %v9016_v24 = vld [vmem:[%s13809_s1 + $0x90] sm:$0xff]  }
   0x9   :  { %v9017_v25 = vld [vmem:[%s13809_s1 + $0x98] sm:$0xff]   ;;  %v9018_v26 = vld [vmem:[%s13809_s1 + $0xa0] sm:$0xff]   ;;  %v9019_v27 = vld [vmem:[%s13809_s1 + $0xa8] sm:$0xff]  }
   0xa   :  { %v9020_v28 = vld [vmem:[%s13809_s1 + $0xb0] sm:$0xff]   ;;  %v9021_v29 = vld [vmem:[%s13809_s1 + $0xb8] sm:$0xff]   ;;  %v9022_v30 = vld [vmem:[%s13809_s1 + $0xc0] sm:$0xff]  }
   0xb   :  { %8292 = vmatpush3.bf16.msra.mxu0 %v8995_v2  ;;  %v9023_v31 = vld [vmem:[%s13809_s1 + $0xc8] sm:$0xff]   ;;  %v9024_v32 = vld [vmem:[%s13809_s1 + $0xd0] sm:$0xff]   ;;  %v9025_v33 = vld [vmem:[%s13809_s1 + $0xd8] sm:$0xff]  }
   0xc   :  { %8293 = vmatprep.subr.bf16.mxu0 %v8996_v4  ;;  %v9026_v34 = vld [vmem:[%s13809_s1 + $0xe0] sm:$0xff]   ;;  %v9027_v35 = vld [vmem:[%s13809_s1 + $0xe8] sm:$0xff]   ;;  %v9028_v36 = vld [vmem:[%s13809_s1 + $0xf0] sm:$0xff]  }
   0xd   :  { %v9029_v37 = vld [vmem:[%s13809_s1 + $0xf8] sm:$0xff]   ;;  %v9030_v38 = vld [vmem:[%s13809_s1 + $0x100] sm:$0xff]   ;;  %v9031_v39 = vld [vmem:[%s13809_s1 + $0x108] sm:$0xff]  }
   0xe   :  { %v9032_v40 = vld [vmem:[%s13809_s1 + $0x110] sm:$0xff]   ;;  %v9033_v41 = vld [vmem:[%s13809_s1 + $0x118] sm:$0xff]   ;;  %v9034_v42 = vld [vmem:[%s13809_s1 + $0x120] sm:$0xff]  }
   0xf   :  { %8294 = vmatpush3.bf16.msra.mxu0 %v8996_v4  ;;  %v9035_v43 = vld [vmem:[%s13809_s1 + $0x128] sm:$0xff]   ;;  %v9036_v44 = vld [vmem:[%s13809_s1 + $0x130] sm:$0xff]   ;;  %v9037_v45 = vld [vmem:[%s13809_s1 + $0x138] sm:$0xff]  }
  0x10   :  { %8987 = vmatprep.subr.msk.bf16.mxu0 %vm1282_vm1, %v8997_v5  ;;  %v9038_v46 = vld [vmem:[%s13809_s1 + $0x140] sm:$0xff]   ;;  %v9039_v47 = vld [vmem:[%s13809_s1 + $0x148] sm:$0xff]   ;;  %v9040_v48 = vld [vmem:[%s13809_s1 + $0x150] sm:$0xff]  }
  0x11   :  { %v9041_v49 = vld [vmem:[%s13809_s1 + $0x158] sm:$0xff]   ;;  %v9042_v50 = vld [vmem:[%s13809_s1 + $0x160] sm:$0xff]   ;;  %v9043_v51 = vld [vmem:[%s13809_s1 + $0x168] sm:$0xff]  }
  0x12   :  { %v9044_v52 = vld [vmem:[%s13809_s1 + $0x170] sm:$0xff]   ;;  %v9045_v53 = vld [vmem:[%s13809_s1 + $0x178] sm:$0xff]   ;;  %v9046_v54 = vld [vmem:[%s13809_s1 + $0x180] sm:$0xff]  }
  0x13   :  { %8296 = vmatpush3.bf16.msra.mxu0 %v1284_v6  ;;  %v9047_v55 = vld [vmem:[%s13809_s1 + $0x188] sm:$0xff]   ;;  %v9048_v56 = vld [vmem:[%s13809_s1 + $0x190] sm:$0xff]   ;;  %v9049_v57 = vld [vmem:[%s13809_s1 + $0x198] sm:$0xff]  }
  0x14   :  { %v9050_v58 = vld [vmem:[%s13809_s1 + $0x1a0] sm:$0xff]   ;;  %v9051_v59 = vld [vmem:[%s13809_s1 + $0x1a8] sm:$0xff]   ;;  %v9052_v60 = vld [vmem:[%s13809_s1 + $0x1b0] sm:$0xff]  }
  0x15   :  { %v9053_v63 = vld [vmem:[%s13809_s1 + $0x1b8] sm:$0xff]   ;;  %v9054_v1 = vld [vmem:[%s13809_s1 + $0x1c0] sm:$0xff]   ;;  %v9055_v5 = vld [vmem:[%s13809_s1 + $0x1c8] sm:$0xff]  }
  0x16   :  { %8298 = vmatmul.mubr.msk.bf16.vlgmr.msra.gmra.mrb[0].mxu0 %vm975_vm0, %v8999_v7  ;;  %v9056_v7 = vld [vmem:[%s13809_s1 + $0x1d0] sm:$0xff]  }
  0x17   :  { %8301 = vmatprep.mubr.msk.bf16.mxu0 %vm975_vm0, %v9000_v8 }
  0x1e   :  { %8302 = vmatmul.mubr.msk.bf16.gmra.mrb[4].mxu0 %vm975_vm0, %v9001_v9 }
  0x1f   :  { %8305 = vmatprep.mubr.msk.bf16.mxu0 %vm975_vm0, %v9002_v10 }
  0x26   :  { %8306 = vmatmul.mubr.msk.bf16.gmra.mrb[8].mxu0 %vm975_vm0, %v9003_v11  ;;  %v9057_v11 = vld [vmem:[%s13809_s1 + $0x1d8] sm:$0xff]  }
  0x27   :  { %8309 = vmatprep.mubr.msk.bf16.mxu0 %vm975_vm0, %v9004_v12 }
  0x2e   :  { %8310 = vmatmul.mubr.msk.bf16.gmra.mrb[12].mxu0 %vm975_vm0, %v9005_v13  ;;  %v9058_v13 = vld [vmem:[%s13809_s1 + $0x1e0] sm:$0xff]  }
  0x2f   :  { %8313 = vmatprep.mubr.msk.bf16.mxu0 %vm975_vm0, %v9006_v14 }
  0x36   :  { %8314 = vmatmul.mubr.msk.bf16.gmra.mrb[16].mxu0 %vm975_vm0, %v9007_v15 }
  0x37   :  { %8317 = vmatprep.mubr.msk.bf16.mxu0 %vm975_vm0, %v9008_v16 }
  0x3e   :  { %8318 = vmatmul.mubr.msk.bf16.gmra.mrb[20].mxu0 %vm975_vm0, %v9009_v17  ;;  %v9059_v17 = vld [vmem:[%s13809_s1 + $0x1e8] sm:$0xff]  }
  0x3f   :  { %8321 = vmatprep.mubr.msk.bf16.mxu0 %vm975_vm0, %v9010_v18 }
  0x46   :  { %8322 = vmatmul.mubr.msk.bf16.gmra.mrb[24].mxu0 %vm975_vm0, %v9011_v19  ;;  %v9060_v19 = vld [vmem:[%s13809_s1 + $0x1f0] sm:$0xff]  }
  0x47   :  { %8325 = vmatprep.mubr.msk.bf16.mxu0 %vm975_vm0, %v9012_v20 }
  0x4e   :  { %8326 = vmatmul.mubr.msk.bf16.gmra.mrb[28].mxu0 %vm975_vm0, %v9013_v21 }
  0x4f   :  { %8329 = vmatprep.mubr.msk.bf16.mxu0 %vm975_vm0, %v9014_v22 }
  0x56   :  { %8330 = vmatmul.mubr.msk.bf16.gmra.mrb[32].mxu0 %vm975_vm0, %v9015_v23  ;;  %v9061_v23 = vld [vmem:[%s13809_s1 + $0x1f8] sm:$0xff]  }
  0x57   :  { %8333 = vmatprep.mubr.msk.bf16.mxu0 %vm975_vm0, %v9016_v24 }
  0x5e   :  { %8334 = vmatmul.mubr.msk.bf16.gmra.mrb[36].mxu0 %vm975_vm0, %v9017_v25  ;;  %v9062_v25 = vld [vmem:[%s13809_s1 + $0x200] sm:$0xff]  }
  0x5f   :  { %8337 = vmatprep.mubr.msk.bf16.mxu0 %vm975_vm0, %v9018_v26 }
  0x66   :  { %8338 = vmatmul.mubr.msk.bf16.gmra.mrb[40].mxu0 %vm975_vm0, %v9019_v27  ;;  %v13814_v27 = vmov 0  }
  0x67   :  { %8341 = vmatprep.mubr.msk.bf16.mxu0 %vm975_vm0, %v9020_v28  ;;  %8992 = vset.pattern.permute.xlu1 %v13814_v27 }
  0x68   :  { %8991 = vset.pattern.permute.xlu0 %v13814_v27  ;;  %8581 = vmatprep.subr.bf16.mxu1 %v13814_v27 }
  0x69   :  { %6284 = vmatprep.subr.bf16.mxu0 %v13814_v27 }
  0x6e   :  { %8342 = vmatmul.mubr.msk.bf16.gmra.mrb[44].mxu0 %vm975_vm0, %v9021_v29 }
  0x6f   :  { %8345 = vmatprep.mubr.msk.bf16.mxu0 %vm975_vm0, %v9022_v30  ;;  %v9063_v30 = vld [vmem:[%s13809_s1 + $0x208] sm:$0xff]  }
  0x76   :  { %8346 = vmatmul.mubr.msk.bf16.gmra.mrb[48].mxu0 %vm975_vm0, %v9023_v31 }
  0x77   :  { %8349 = vmatprep.mubr.msk.bf16.mxu0 %vm975_vm0, %v9024_v32  ;;  %v9064_v32 = vld [vmem:[%s13809_s1 + $0x210] sm:$0xff]  }
  0x7e   :  { %8350 = vmatmul.mubr.msk.bf16.gmra.mrb[52].mxu0 %vm975_vm0, %v9025_v33 }
  0x7f   :  { %8353 = vmatprep.mubr.msk.bf16.mxu0 %vm975_vm0, %v9026_v34 }
  0x86   :  { %8354 = vmatmul.mubr.msk.bf16.gmra.mrb[56].mxu0 %vm975_vm0, %v9027_v35 }
  0x87   :  { %8357 = vmatprep.mubr.msk.bf16.mxu0 %vm975_vm0, %v9028_v36  ;;  %v9065_v36 = vld [vmem:[%s13809_s1 + $0x218] sm:$0xff]  }
  0x8e   :  { %8358 = vmatmul.mubr.msk.bf16.gmra.mrb[60].mxu0 %vm975_vm0, %v9029_v37 }
  0x8f   :  { %8361 = vmatprep.mubr.msk.bf16.mxu0 %vm975_vm0, %v9030_v38  ;;  %v9066_v38 = vld [vmem:[%s13809_s1 + $0x220] sm:$0xff]  }
  0x96   :  { %8362 = vmatmul.mubr.msk.bf16.gmra.mrb[64].mxu0 %vm975_vm0, %v9031_v39 }
  0x97   :  { %8365 = vmatprep.mubr.msk.bf16.mxu0 %vm975_vm0, %v9032_v40 }
  0x9e   :  { %8366 = vmatmul.mubr.msk.bf16.gmra.mrb[68].mxu0 %vm975_vm0, %v9033_v41 }
  0x9f   :  { %8369 = vmatprep.mubr.msk.bf16.mxu0 %vm975_vm0, %v9034_v42  ;;  %v9067_v42 = vld [vmem:[%s13809_s1 + $0x228] sm:$0xff]  }
  0xa6   :  { %8370 = vmatmul.mubr.msk.bf16.gmra.mrb[72].mxu0 %vm975_vm0, %v9035_v43 }
  0xa7   :  { %8373 = vmatprep.mubr.msk.bf16.mxu0 %vm975_vm0, %v9036_v44  ;;  %v9068_v44 = vld [vmem:[%s13809_s1 + $0x230] sm:$0xff]  }
  0xae   :  { %8374 = vmatmul.mubr.msk.bf16.gmra.mrb[76].mxu0 %vm975_vm0, %v9037_v45 }
  0xaf   :  { %8377 = vmatprep.mubr.msk.bf16.mxu0 %vm975_vm0, %v9038_v46 }
  0xb6   :  { %8378 = vmatmul.mubr.msk.bf16.gmra.mrb[80].mxu0 %vm975_vm0, %v9039_v47 }
  0xb7   :  { %8381 = vmatprep.mubr.msk.bf16.mxu0 %vm975_vm0, %v9040_v48  ;;  %v9069_v48 = vld [vmem:[%s13809_s1 + $0x238] sm:$0xff]  }
  0xbe   :  { %8382 = vmatmul.mubr.msk.bf16.gmra.mrb[84].mxu0 %vm975_vm0, %v9041_v49 }
  0xbf   :  { %8385 = vmatprep.mubr.msk.bf16.mxu0 %vm975_vm0, %v9042_v50  ;;  %v9070_v50 = vld [vmem:[%s13809_s1 + $0x240] sm:$0xff]  }
  0xc6   :  { %8386 = vmatmul.mubr.msk.bf16.gmra.mrb[88].mxu0 %vm975_vm0, %v9043_v51 }
  0xc7   :  { %8389 = vmatprep.mubr.msk.bf16.mxu0 %vm975_vm0, %v9044_v52 }
  0xce   :  { %8390 = vmatmul.mubr.msk.bf16.gmra.mrb[92].mxu0 %vm975_vm0, %v9045_v53 }
  0xcf   :  { %8393 = vmatprep.mubr.msk.bf16.mxu0 %vm975_vm0, %v9046_v54  ;;  %v9071_v54 = vld [vmem:[%s13809_s1 + $0x248] sm:$0xff]  }
  0xd6   :  { %8394 = vmatmul.mubr.msk.bf16.gmra.mrb[96].mxu0 %vm975_vm0, %v9047_v55 }
  0xd7   :  { %8397 = vmatprep.mubr.msk.bf16.mxu0 %vm975_vm0, %v9048_v56  ;;  %v9072_v56 = vld [vmem:[%s13809_s1 + $0x250] sm:$0xff]  }
  0xde   :  { %8398 = vmatmul.mubr.msk.bf16.gmra.mrb[100].mxu0 %vm975_vm0, %v9049_v57 }
  0xdf   :  { %8401 = vmatprep.mubr.msk.bf16.mxu0 %vm975_vm0, %v9050_v58 }
  0xe6   :  { %8402 = vmatmul.mubr.msk.bf16.gmra.mrb[104].mxu0 %vm975_vm0, %v9051_v59 }
  0xe7   :  { %8405 = vmatprep.mubr.msk.bf16.mxu0 %vm975_vm0, %v9052_v60  ;;  %v9073_v60 = vld [vmem:[%s13809_s1 + $0x258] sm:$0xff]  }
  0xe9   :  { %v10507_v61 = vpop.f32.mrb[0].mxu0 }
  0xea   :  { %v10509_v62 = vpop.f32.mrb[1].mxu0 }
  0xeb   :  { %v10514_v0 = vpop.f32.mrb[2].mxu0 }
  0xec   :  { %v10519_v2 = vpop.f32.mrb[3].mxu0 }
  0xee   :  { %8406 = vmatmul.mubr.msk.bf16.gmra.mrb[108].mxu0 %vm975_vm0, %v9053_v63 }
  0xef   :  { %8409 = vmatprep.mubr.msk.bf16.mxu0 %vm975_vm0, %v9054_v1  ;;  %v9074_v1 = vld [vmem:[%s13809_s1 + $0x260] sm:$0xff]  }
  0xf1   :  { %v10523_v3 = vpop.f32.mrb[4].mxu0 }
  0xf2   :  { %v10525_v4 = vpop.f32.mrb[5].mxu0 }
  0xf3   :  { %v10530_v6 = vpop.f32.mrb[6].mxu0 }
  0xf4   :  { %v10535_v8 = vpop.f32.mrb[7].mxu0 }
  0xf6   :  { %8410 = vmatmul.mubr.msk.bf16.gmra.mrb[112].mxu0 %vm975_vm0, %v9055_v5 }
  0xf7   :  { %8413 = vmatprep.mubr.msk.bf16.mxu0 %vm975_vm0, %v9056_v7 }
  0xf9   :  { %v10539_v9 = vpop.f32.mrb[8].mxu0 }
  0xfa   :  { %v10541_v10 = vpop.f32.mrb[9].mxu0 }
  0xfb   :  { %v10546_v12 = vpop.f32.mrb[10].mxu0 }
  0xfc   :  { %v10551_v14 = vpop.f32.mrb[11].mxu0 }
  0xfe   :  { %8414 = vmatmul.mubr.msk.bf16.gmra.mrb[116].mxu0 %vm975_vm0, %v9057_v11 }
  0xff   :  { %8417 = vmatprep.mubr.msk.bf16.mxu0 %vm975_vm0, %v9058_v13  ;;  %v9075_v13 = vld [vmem:[%s13809_s1 + $0x268] sm:$0xff]  }
 0x101   :  { %v10555_v15 = vpop.f32.mrb[12].mxu0 }
 0x102   :  { %v10557_v16 = vpop.f32.mrb[13].mxu0 }
 0x103   :  { %v10562_v18 = vpop.f32.mrb[14].mxu0 }
 0x104   :  { %v10567_v20 = vpop.f32.mrb[15].mxu0 }
 0x106   :  { %8418 = vmatmul.mubr.msk.bf16.gmra.mrb[120].mxu0 %vm975_vm0, %v9059_v17 }
 0x107   :  { %8421 = vmatprep.mubr.msk.bf16.mxu0 %vm975_vm0, %v9060_v19  ;;  %v9076_v19 = vld [vmem:[%s13809_s1 + $0x270] sm:$0xff]  }
 0x109   :  { %v10571_v21 = vpop.f32.mrb[16].mxu0 }
 0x10a   :  { %v10573_v22 = vpop.f32.mrb[17].mxu0 }
 0x10b   :  { %v10578_v24 = vpop.f32.mrb[18].mxu0 }
 0x10c   :  { %v10583_v26 = vpop.f32.mrb[19].mxu0 }
 0x10e   :  { %8422 = vmatmul.mubr.msk.bf16.gmra.mrb[124].mxu0 %vm975_vm0, %v9061_v23 }
 0x10f   :  { %8425 = vmatprep.mubr.msk.bf16.mxu0 %vm975_vm0, %v9062_v25 }
 0x111   :  { %v10591_v28 = vpop.f32.mrb[20].mxu0 }
 0x112   :  { %v10593_v29 = vpop.f32.mrb[21].mxu0 }
 0x113   :  { %v10598_v31 = vpop.f32.mrb[22].mxu0 }
 0x114   :  { %v10603_v33 = vpop.f32.mrb[23].mxu0 }
 0x116   :  { %8426 = vmatmul.mubr.msk.bf16.gmra.mrb[128].mxu0 %vm975_vm0, %v9063_v30 }
 0x117   :  { %8429 = vmatprep.mubr.msk.bf16.mxu0 %vm975_vm0, %v9064_v32  ;;  %v9077_v32 = vld [vmem:[%s13809_s1 + $0x278] sm:$0xff]  }
 0x119   :  { %v10607_v34 = vpop.f32.mrb[24].mxu0 }
 0x11a   :  { %v10609_v35 = vpop.f32.mrb[25].mxu0 }
 0x11b   :  { %v10614_v37 = vpop.f32.mrb[26].mxu0 }
 0x11c   :  { %v10619_v39 = vpop.f32.mrb[27].mxu0 }
 0x11e   :  { %8430 = vmatmul.mubr.msk.bf16.gmra.mrb[132].mxu0 %vm975_vm0, %v9065_v36 }
 0x11f   :  { %8433 = vmatprep.mubr.msk.bf16.mxu0 %vm975_vm0, %v9066_v38  ;;  %v9078_v38 = vld [vmem:[%s13809_s1 + $0x280] sm:$0xff]  }
 0x121   :  { %v10623_v40 = vpop.f32.mrb[28].mxu0 }
 0x122   :  { %v10625_v41 = vpop.f32.mrb[29].mxu0 }
 0x123   :  { %v10630_v43 = vpop.f32.mrb[30].mxu0 }
 0x124   :  { %v10635_v45 = vpop.f32.mrb[31].mxu0 }
 0x126   :  { %8434 = vmatmul.mubr.msk.bf16.gmra.mrb[136].mxu0 %vm975_vm0, %v9067_v42 }
 0x127   :  { %8437 = vmatprep.mubr.msk.bf16.mxu0 %vm975_vm0, %v9068_v44 }
 0x129   :  { %v10639_v46 = vpop.f32.mrb[32].mxu0 }
 0x12a   :  { %v10641_v47 = vpop.f32.mrb[33].mxu0 }
 0x12b   :  { %v10646_v49 = vpop.f32.mrb[34].mxu0 }
 0x12c   :  { %13832 = vst [vmem:[#allocation2_spill] sm:$0xff] %v10646_v49  ;;  %v10651_v51 = vpop.f32.mrb[35].mxu0 }
 0x12d   :  { %13833 = vst [vmem:[#allocation3_spill] sm:$0xff] %v10651_v51 }
 0x12e   :  { %8438 = vmatmul.mubr.msk.bf16.gmra.mrb[140].mxu0 %vm975_vm0, %v9069_v48 }
 0x12f   :  { %8441 = vmatprep.mubr.msk.bf16.mxu0 %vm975_vm0, %v9070_v50  ;;  %v9079_v50 = vld [vmem:[%s13809_s1 + $0x288] sm:$0xff]  }
 0x131   :  { %v10655_v52 = vpop.f32.mrb[36].mxu0 }
 0x132   :  { %13834 = vst [vmem:[#allocation4_spill] sm:$0xff] %v10655_v52  ;;  %v10657_v53 = vpop.f32.mrb[37].mxu0 }
 0x133   :  { %13835 = vst [vmem:[#allocation5_spill] sm:$0xff] %v10657_v53  ;;  %v10662_v55 = vpop.f32.mrb[38].mxu0 }
 0x134   :  { %13836 = vst [vmem:[#allocation6_spill] sm:$0xff] %v10662_v55  ;;  %v10667_v57 = vpop.f32.mrb[39].mxu0 }
 0x135   :  { %13837 = vst [vmem:[#allocation7_spill] sm:$0xff] %v10667_v57 }
 0x136   :  { %8442 = vmatmul.mubr.msk.bf16.gmra.mrb[144].mxu0 %vm975_vm0, %v9071_v54 }
 0x137   :  { %8445 = vmatprep.mubr.msk.bf16.mxu0 %vm975_vm0, %v9072_v56  ;;  %v9080_v56 = vld [vmem:[%s13809_s1 + $0x290] sm:$0xff]  }
 0x139   :  { %v10671_v58 = vpop.f32.mrb[40].mxu0 }
 0x13a   :  { %13838 = vst [vmem:[#allocation8_spill] sm:$0xff] %v10671_v58  ;;  %v10673_v59 = vpop.f32.mrb[41].mxu0 }
 0x13b   :  { %13839 = vst [vmem:[#allocation9_spill] sm:$0xff] %v10673_v59  ;;  %v10678_v63 = vpop.f32.mrb[42].mxu0 }
 0x13c   :  { %13840 = vst [vmem:[#allocation10_spill] sm:$0xff] %v10678_v63  ;;  %v10683_v5 = vpop.f32.mrb[43].mxu0 }
 0x13d   :  { %13841 = vst [vmem:[#allocation11_spill] sm:$0xff] %v10683_v5 }
 0x13e   :  { %8446 = vmatmul.mubr.msk.bf16.gmra.mrb[148].mxu0 %vm975_vm0, %v9073_v60 }
 0x13f   :  { %8449 = vmatprep.mubr.msk.bf16.mxu0 %vm975_vm0, %v9074_v1 }
 0x141   :  { %v10687_v7 = vpop.f32.mrb[44].mxu0 }
 0x142   :  { %13842 = vst [vmem:[#allocation12_spill] sm:$0xff] %v10687_v7  ;;  %v10689_v11 = vpop.f32.mrb[45].mxu0 }
 0x143   :  { %13843 = vst [vmem:[#allocation13_spill] sm:$0xff] %v10689_v11  ;;  %v10694_v17 = vpop.f32.mrb[46].mxu0 }
 0x144   :  { %13844 = vst [vmem:[#allocation14_spill] sm:$0xff] %v10694_v17  ;;  %v10699_v23 = vpop.f32.mrb[47].mxu0 }
 0x145   :  { %13845 = vst [vmem:[#allocation15_spill] sm:$0xff] %v10699_v23 }
 0x146   :  { %8450 = vmatmul.mubr.msk.bf16.gmra.mrb[152].mxu0 %vm975_vm0, %v9075_v13 }
 0x147   :  { %8453 = vmatprep.mubr.msk.bf16.mxu0 %vm975_vm0, %v9076_v19  ;;  %v9081_v19 = vld [vmem:[%s13809_s1 + $0x298] sm:$0xff]  }
 0x149   :  { %v10703_v25 = vpop.f32.mrb[48].mxu0 }
 0x14a   :  { %13846 = vst [vmem:[#allocation16_spill] sm:$0xff] %v10703_v25  ;;  %v10705_v30 = vpop.f32.mrb[49].mxu0 }
 0x14b   :  { %13847 = vst [vmem:[#allocation17_spill] sm:$0xff] %v10705_v30  ;;  %v10710_v36 = vpop.f32.mrb[50].mxu0 }
 0x14c   :  { %13848 = vst [vmem:[#allocation18_spill] sm:$0xff] %v10710_v36  ;;  %v10715_v42 = vpop.f32.mrb[51].mxu0  ;;  %v241_v36 = vld [vmem:[%s13810_s2 + $0x38] sm:$0xff] }
 0x14d   :  { %13849 = vst [vmem:[#allocation19_spill] sm:$0xff] %v10715_v42 }
 0x14e   :  { %8454 = vmatmul.mubr.msk.bf16.gmra.mrb[156].mxu0 %vm975_vm0, %v9077_v32 }
 0x14f   :  { %8457 = vmatprep.mubr.msk.bf16.mxu0 %vm975_vm0, %v9078_v38  ;;  %v9082_v38 = vld [vmem:[%s13809_s1 + $0x2a0] sm:$0xff]  }
 0x151   :  { %v10719_v44 = vpop.f32.mrb[52].mxu0 }
 0x152   :  { %13850 = vst [vmem:[#allocation20_spill] sm:$0xff] %v10719_v44  ;;  %v10721_v48 = vpop.f32.mrb[53].mxu0 }
 0x153   :  { %13851 = vst [vmem:[#allocation21_spill] sm:$0xff] %v10721_v48  ;;  %v10726_v54 = vpop.f32.mrb[54].mxu0  ;;  %v9085_v48 = vld [vmem:[%s13809_s1 + $0x2b8] sm:$0xff]  }
 0x154   :  { %13852 = vst [vmem:[#allocation22_spill] sm:$0xff] %v10726_v54  ;;  %v10731_v60 = vpop.f32.mrb[55].mxu0  ;;  %v235_v54 = vld [vmem:[%s13810_s2 + $0x8] sm:$0xff] }
 0x155   :  { %13853 = vst [vmem:[#allocation23_spill] sm:$0xff] %v10731_v60  ;;  %v1324_v42 = vadd.f32 %v10519_v2, %v235_v54 }
 0x156   :  { %8458 = vmatmul.mubr.msk.bf16.gmra.mrb[160].mxu0 %vm975_vm0, %v9079_v50  ;;  %v236_v50 = vld [vmem:[%s13810_s2 + $0x10] sm:$0xff] }
 0x157   :  { %8461 = vmatprep.mubr.msk.bf16.mxu0 %vm975_vm0, %v9080_v56  ;;  %v7716_v17 = vmul.f32 -1.442695, %v1324_v42 }
 0x159   :  { %v10735_v1 = vpop.f32.mrb[56].mxu0 }
 0x15a   :  { %13854 = vst [vmem:[#allocation24_spill] sm:$0xff] %v10735_v1  ;;  %v10737_v13 = vpop.f32.mrb[57].mxu0 }
 0x15b   :  { %13855 = vst [vmem:[#allocation25_spill] sm:$0xff] %v10737_v13  ;;  %v10742_v32 = vpop.f32.mrb[58].mxu0  ;;  %v1329_v13 = vadd.f32 %v10507_v61, %v236_v50  ;;  %v237_v61 = vld [vmem:[%s13810_s2 + $0x18] sm:$0xff] }
 0x15c   :  { %13856 = vst [vmem:[#allocation26_spill] sm:$0xff] %v10742_v32  ;;  %v10747_v27 = vpop.f32.mrb[59].mxu0  ;;  %v9083_v32 = vld [vmem:[%s13809_s1 + $0x2a8] sm:$0xff]   ;;  %v1332_v60 = vadd.f32 %v10514_v0, %v237_v61  ;;  %v301_v0 = vld [vmem:[%s13810_s2 + $0x218] sm:$0xff] }
 0x15d   :  { %13857 = vst [vmem:[#allocation27_spill] sm:$0xff] %v10747_v27 }
 0x15e   :  { %8462 = vmatmul.mubr.msk.bf16.gmra.mrb[164].mxu0 %vm975_vm0, %v9081_v19  ;;  %v234_v19 = vld [vmem:[%s13810_s2] sm:$0xff]  ;;  %v7718_v44 = vmul.f32 -1.442695, %v1332_v60  ;;  %v299_v60 = vld [vmem:[%s13810_s2 + $0x208] sm:$0xff] }
 0x15f   :  { %8465 = vmatprep.mubr.msk.bf16.mxu0 %vm975_vm0, %v9082_v38  ;;  %v9084_v38 = vld [vmem:[%s13809_s1 + $0x2b0] sm:$0xff]  }
 0x161   :  { %v10754_v56 = vpop.f32.mrb[60].mxu0 }
 0x162   :  { %13858 = vst [vmem:[#allocation28_spill] sm:$0xff] %v10754_v56  ;;  %v10757_v1 = vpop.f32.mrb[61].mxu0  ;;  %v1321_v56 = vadd.f32 %v10509_v62, %v234_v19  ;;  %v240_v62 = vld [vmem:[%s13810_s2 + $0x30] sm:$0xff] }
 0x163   :  { %13859 = vst [vmem:[#allocation29_spill] sm:$0xff] %v10757_v1  ;;  %v10765_v27 = vpop.f32.mrb[62].mxu0  ;;  %v7717_v1 = vmul.f32 -1.442695, %v1329_v13  ;;  %v298_v13 = vld [vmem:[%s13810_s2 + $0x200] sm:$0xff] }
 0x164   :  { %13860 = vst [vmem:[#allocation30_spill] sm:$0xff] %v10765_v27  ;;  %v10773_v50 = vpop.f32.mrb[63].mxu0  ;;  %v300_v27 = vld [vmem:[%s13810_s2 + $0x210] sm:$0xff]  ;;  %v7715_v19 = vmul.f32 -1.442695, %v1321_v56  ;;  %v9086_v56 = vld [vmem:[%s13809_s1 + $0x2c0] sm:$0xff]  }
 0x165   :  { %13861 = vst [vmem:[#allocation31_spill] sm:$0xff] %v10773_v50  ;;  %9423 = vpow2.f32 %v7717_v1 }
 0x166   :  { %8466 = vmatmul.mubr.msk.bf16.gmra.mrb[168].mxu0 %vm975_vm0, %v9083_v32  ;;  %9425 = vpow2.f32 %v7715_v19  ;;  %v9087_v19 = vld [vmem:[%s13809_s1 + $0x2c8] sm:$0xff]  }
 0x167   :  { %8469 = vmatprep.mubr.msk.bf16.mxu0 %vm975_vm0, %v9084_v38  ;;  %v238_v38 = vld [vmem:[%s13810_s2 + $0x20] sm:$0xff]  ;;  %9427 = vpow2.f32 %v7718_v44 }
 0x168   :  { %v1337_v2 = vadd.f32 %v10525_v4, %v238_v38 }
 0x169   :  { %v8363_v32 = vpop.f32.mrb[64].mxu0 }
 0x16a   :  { %v1585_v61 = vadd.f32 %v8363_v32, %v300_v27  ;;  %v1576_v50 = vpop.f32.mrb[65].mxu0  ;;  %v1345_v27 = vadd.f32 %v10523_v3, %v240_v62  ;;  %v239_v3 = vld [vmem:[%s13810_s2 + $0x28] sm:$0xff] }
 0x16b   :  { %v1577_v30 = vadd.f32 %v1576_v50, %v298_v13  ;;  %v8364_v1 = vpop.f32.mrb[66].mxu0  ;;  %v1348_v50 = vadd.f32 %v10530_v6, %v241_v36  ;;  %v302_v6 = vld [vmem:[%s13810_s2 + $0x220] sm:$0xff]  ;;  %v305_v36 = vld [vmem:[%s13810_s2 + $0x238] sm:$0xff]  ;;  %v1340_v42 = vadd.f32 %v10535_v8, %v239_v3 }
 0x16c   :  { %v7781_v32 = vmul.f32 -1.442695, %v1585_v61  ;;  %v1588_v25 = vadd.f32 %v8364_v1, %v301_v0  ;;  %v1579_v23 = vpop.f32.mrb[67].mxu0  ;;  %v304_v0 = vld [vmem:[%s13810_s2 + $0x230] sm:$0xff]  ;;  %v7721_v4 = vmul.f32 -1.442695, %v1345_v27 }
 0x16d   :  { %v7779_v54 = vmul.f32 -1.442695, %v1577_v30  ;;  %v1580_v62 = vadd.f32 %v1579_v23, %v299_v60  ;;  %v7722_v23 = vmul.f32 -1.442695, %v1348_v50 }
 0x16e   :  { %v7782_v13 = vmul.f32 -1.442695, %v1588_v25  ;;  %8470 = vmatmul.mubr.msk.bf16.gmra.mrb[172].mxu0 %vm975_vm0, %v9085_v48  ;;  %9429 = vpow2.f32 %v7781_v32  ;;  %v7719_v25 = vmul.f32 -1.442695, %v1337_v2 }
 0x16f   :  { %8473 = vmatprep.mubr.msk.bf16.mxu0 %vm975_vm0, %v9086_v56  ;;  %9431 = vpow2.f32 %v7779_v54  ;;  %v7780_v38 = vmul.f32 -1.442695, %v1580_v62  ;;  %v9088_v56 = vld [vmem:[%s13809_s1 + $0x2d0] sm:$0xff]   ;;  %v9424_v27 = vpop.eup %9423  ;;  %v303_v54 = vld [vmem:[%s13810_s2 + $0x228] sm:$0xff] }
 0x170   :  { %9433 = vpow2.f32 %v7782_v13  ;;  %v2749_v50 = vadd.f32 1.0, %v9424_v27  ;;  %v308_v13 = vld [vmem:[%s13810_s2 + $0x250] sm:$0xff]  ;;  %v9426_v3 = vpop.eup %9425 }
 0x171   :  { %v8367_v30 = vpop.f32.mrb[68].mxu0  ;;  %9435 = vpow2.f32 %v7716_v17  ;;  %v7720_v17 = vmul.f32 -1.442695, %v1340_v42 }
 0x172   :  { %v1601_v44 = vadd.f32 %v8367_v30, %v304_v0  ;;  %v1592_v48 = vpop.f32.mrb[69].mxu0  ;;  %9437 = vpow2.f32 %v7721_v4  ;;  %v306_v4 = vld [vmem:[%s13810_s2 + $0x240] sm:$0xff]  ;;  %v309_v30 = vld [vmem:[%s13810_s2 + $0x258] sm:$0xff] }
 0x173   :  { %v1593_v61 = vadd.f32 %v1592_v48, %v302_v6  ;;  %v8368_v1 = vpop.f32.mrb[70].mxu0  ;;  %9439 = vpow2.f32 %v7719_v25  ;;  %v10845_v6 = vpop.eup %9427 }
 0x174   :  { %v7785_v32 = vmul.f32 -1.442695, %v1601_v44  ;;  %v1604_v60 = vadd.f32 %v8368_v1, %v305_v36  ;;  %v1595_v8 = vpop.f32.mrb[71].mxu0  ;;  %9441 = vpow2.f32 %v7722_v23  ;;  %v9089_v44 = vld [vmem:[%s13809_s1 + $0x2d8] sm:$0xff]   ;;  %v9090_v1 = vld [vmem:[%s13809_s1 + $0x2e0] sm:$0xff]  }
 0x175   :  { %v7783_v2 = vmul.f32 -1.442695, %v1593_v61  ;;  %9443 = vpow2.f32 %v7780_v38  ;;  %v1596_v0 = vadd.f32 %v1595_v8, %v303_v54 }
 0x176   :  { %8474 = vmatmul.mubr.msk.bf16.gmra.mrb[176].mxu0 %vm975_vm0, %v9087_v19  ;;  %9445 = vpow2.f32 %v7785_v32  ;;  %v7786_v62 = vmul.f32 -1.442695, %v1604_v60 }
 0x177   :  { %8477 = vmatprep.mubr.msk.bf16.mxu0 %vm975_vm0, %v9088_v56  ;;  %9447 = vpow2.f32 %v7783_v2  ;;  %v7784_v32 = vmul.f32 -1.442695, %v1596_v0  ;;  %v312_v0 = vld [vmem:[%s13810_s2 + $0x270] sm:$0xff] }
 0x178   :  { %v9430_v36 = vpop.eup %9429  ;;  %9449 = vpow2.f32 %v7720_v17 }
 0x179   :  { %v8371_v25 = vpop.f32.mrb[72].mxu0  ;;  %v9432_v48 = vpop.eup %9431  ;;  %9451 = vrcp.f32 %v2749_v50  ;;  %v2813_v19 = vadd.f32 1.0, %v9430_v36  ;;  %v307_v50 = vld [vmem:[%s13810_s2 + $0x248] sm:$0xff] }
 0x17a   :  { %v1617_v23 = vadd.f32 %v8371_v25, %v308_v13  ;;  %v1608_v42 = vpop.f32.mrb[73].mxu0  ;;  %v9434_v56 = vpop.eup %9433  ;;  %v2811_v27 = vadd.f32 1.0, %v9432_v48  ;;  %9453 = vpow2.f32 %v7786_v62 }
 0x17b   :  { %v1609_v38 = vadd.f32 %v1608_v42, %v306_v4  ;;  %v8372_v61 = vpop.f32.mrb[74].mxu0  ;;  %v10856_v2 = vpop.eup %9435  ;;  %9455 = vrcp.f32 %v2813_v19  ;;  %v2814_v54 = vadd.f32 1.0, %v9434_v56  ;;  %v313_v19 = vld [vmem:[%s13810_s2 + $0x278] sm:$0xff] }
 0x17c   :  { %v1620_v60 = vadd.f32 %v8372_v61, %v309_v30  ;;  %v1611_v8 = vpop.f32.mrb[75].mxu0  ;;  %v7789_v17 = vmul.f32 -1.442695, %v1617_v23  ;;  %v10861_v13 = vpop.eup %9437  ;;  %9457 = vrcp.f32 %v2811_v27  ;;  %v310_v23 = vld [vmem:[%s13810_s2 + $0x260] sm:$0xff]  ;;  %v311_v27 = vld [vmem:[%s13810_s2 + $0x268] sm:$0xff] }
 0x17d   :  { %v7787_v4 = vmul.f32 -1.442695, %v1609_v38  ;;  %v10864_v25 = vpop.eup %9439  ;;  %9459 = vrcp.f32 %v2814_v54  ;;  %v1612_v36 = vadd.f32 %v1611_v8, %v307_v50 }
 0x17e   :  { %8478 = vmatmul.mubr.msk.bf16.gmra.mrb[180].mxu0 %vm975_vm0, %v9089_v44  ;;  %v7790_v62 = vmul.f32 -1.442695, %v1620_v60  ;;  %v10870_v30 = vpop.eup %9441  ;;  %9461 = vpow2.f32 %v7784_v32  ;;  %v2747_v44 = vadd.f32 1.0, %v9426_v3  ;;  %v9091_v32 = vld [vmem:[%s13809_s1 + $0x2e8] sm:$0xff]  }
 0x17f   :  { %8481 = vmatprep.mubr.msk.bf16.mxu0 %vm975_vm0, %v9090_v1  ;;  %v9444_v42 = vpop.eup %9443  ;;  %9463 = vpow2.f32 %v7789_v17  ;;  %v9092_v17 = vld [vmem:[%s13809_s1 + $0x2f0] sm:$0xff]  }
 0x180   :  { %v9446_v38 = vpop.eup %9445  ;;  %v2812_v61 = vadd.f32 1.0, %v9444_v42  ;;  %9465 = vpow2.f32 %v7787_v4 }
 0x181   :  { %v8375_v48 = vpop.f32.mrb[76].mxu0  ;;  %v9448_v3 = vpop.eup %9447  ;;  %v2817_v60 = vadd.f32 1.0, %v9446_v38  ;;  %9467 = vpow2.f32 %v7790_v62 }
 0x182   :  { %v1633_v1 = vadd.f32 %v8375_v48, %v312_v0  ;;  %v1624_v56 = vpop.f32.mrb[77].mxu0  ;;  %v10887_v50 = vpop.eup %9449  ;;  %9469 = vrcp.f32 %v2812_v61  ;;  %v2815_v4 = vadd.f32 1.0, %v9448_v3  ;;  %v7788_v0 = vmul.f32 -1.442695, %v1612_v36  ;;  %v316_v61 = vld [vmem:[%s13810_s2 + $0x290] sm:$0xff] }
 0x183   :  { %v1625_v8 = vadd.f32 %v1624_v56, %v310_v23  ;;  %v8376_v54 = vpop.f32.mrb[78].mxu0  ;;  %v10889_v11 = vpop.eup %9451  ;;  %9471 = vrcp.f32 %v2747_v44  ;;  %v314_v44 = vld [vmem:[%s13810_s2 + $0x280] sm:$0xff] }
 0x184   :  { %v1636_v42 = vadd.f32 %v8376_v54, %v313_v19  ;;  %v1627_v48 = vpop.f32.mrb[79].mxu0  ;;  %v7793_v7 = vmul.f32 -1.442695, %v1633_v1  ;;  %v9454_v38 = vpop.eup %9453  ;;  %9473 = vrcp.f32 %v2815_v4  ;;  %v315_v54 = vld [vmem:[%s13810_s2 + $0x288] sm:$0xff] }
 0x185   :  { %v1628_v5 = vadd.f32 %v1627_v48, %v311_v27  ;;  %v7791_v62 = vmul.f32 -1.442695, %v1625_v8  ;;  %v9456_v23 = vpop.eup %9455  ;;  %9475 = vrcp.f32 %v2817_v60  ;;  %v2818_v3 = vadd.f32 1.0, %v9454_v38 }
 0x186   :  { %8482 = vmatmul.mubr.msk.bf16.gmra.mrb[184].mxu0 %vm975_vm0, %v9091_v32  ;;  %v7794_v56 = vmul.f32 -1.442695, %v1636_v42  ;;  %v9458_v36 = vpop.eup %9457  ;;  %9477 = vpow2.f32 %v7788_v0  ;;  %3895 = vperm.xlu1 %8992, %v9456_v23  }
 0x187   :  { %8485 = vmatprep.mubr.msk.bf16.mxu0 %vm975_vm0, %v9092_v17  ;;  %v7792_v19 = vmul.f32 -1.442695, %v1628_v5  ;;  %v9460_v1 = vpop.eup %9459  ;;  %9479 = vpow2.f32 %v7793_v7  ;;  %3885 = vperm.xlu0 %8991, %v9458_v36   ;;  %v9093_v5 = vld [vmem:[%s13809_s1 + $0x2f8] sm:$0xff]  }
 0x188   :  { %v9462_v32 = vpop.eup %9461  ;;  %9481 = vpow2.f32 %v7791_v62  ;;  %v317_v7 = vld [vmem:[%s13810_s2 + $0x298] sm:$0xff] }
 0x189   :  { %v8379_v27 = vpop.f32.mrb[80].mxu0  ;;  %v9464_v17 = vpop.eup %9463  ;;  %v2816_v4 = vadd.f32 1.0, %v9462_v32  ;;  %9483 = vpow2.f32 %v7794_v56 }
 0x18a   :  { %v1649_v60 = vadd.f32 %v8379_v27, %v316_v61  ;;  %v1640_v8 = vpop.f32.mrb[81].mxu0  ;;  %v9466_v48 = vpop.eup %9465  ;;  %v2821_v38 = vadd.f32 1.0, %v9464_v17  ;;  %9485 = vpow2.f32 %v7792_v19  ;;  %3900 = vperm.xlu1 %8992, %v9460_v1   ;;  %v320_v19 = vld [vmem:[%s13810_s2 + $0x2b0] sm:$0xff] }
 0x18b   :  { %v1641_v0 = vadd.f32 %v1640_v8, %v314_v44  ;;  %v8380_v42 = vpop.f32.mrb[82].mxu0  ;;  %v9468_v23 = vpop.eup %9467  ;;  %9487 = vrcp.f32 %v2816_v4  ;;  %v2819_v61 = vadd.f32 1.0, %v9466_v48 }
 0x18c   :  { %v1643_v62 = vpop.f32.mrb[83].mxu0  ;;  %v7797_v36 = vmul.f32 -1.442695, %v1649_v60  ;;  %v9470_v63 = vpop.eup %9469  ;;  %9489 = vrcp.f32 %v2818_v3  ;;  %v1652_v56 = vadd.f32 %v8380_v42, %v317_v7  ;;  %v2822_v8 = vadd.f32 1.0, %v9468_v23  ;;  %v318_v3 = vld [vmem:[%s13810_s2 + $0x2a0] sm:$0xff]  ;;  %v319_v42 = vld [vmem:[%s13810_s2 + $0x2a8] sm:$0xff] }
 0x18d   :  { %v1644_v27 = vadd.f32 %v1643_v62, %v315_v54  ;;  %v7795_v32 = vmul.f32 -1.442695, %v1641_v0  ;;  %v10909_v44 = vpop.eup %9471  ;;  %9491 = vrcp.f32 %v2819_v61  ;;  %3890 = vperm.xlu0 %8991, %v9470_v63  }
 0x18e   :  { %8486 = vmatmul.mubr.msk.bf16.gmra.mrb[188].mxu0 %vm975_vm0, %v9093_v5  ;;  %v9474_v1 = vpop.eup %9473  ;;  %9493 = vrcp.f32 %v2821_v38  ;;  %v321_v5 = vld [vmem:[%s13810_s2 + $0x2b8] sm:$0xff]  ;;  %v7798_v63 = vmul.f32 -1.442695, %v1652_v56 }
 0x18f   :  { %v7796_v17 = vmul.f32 -1.442695, %v1644_v27  ;;  %v9476_v60 = vpop.eup %9475  ;;  %9495 = vpow2.f32 %v7797_v36 }
 0x190   :  { %v9478_v4 = vpop.eup %9477  ;;  %9497 = vpow2.f32 %v7795_v32 }
 0x191   :  { %v8383_v54 = vpop.f32.mrb[84].mxu0  ;;  %v9480_v48 = vpop.eup %9479  ;;  %9499 = vrcp.f32 %v2822_v8  ;;  %v2820_v38 = vadd.f32 1.0, %v9478_v4  ;;  %3905 = vperm.xlu0 %8991, %v9474_v1   ;;  %v324_v1 = vld [vmem:[%s13810_s2 + $0x2d0] sm:$0xff] }
 0x192   :  { %v1665_v0 = vadd.f32 %v8383_v54, %v320_v19  ;;  %v1656_v7 = vpop.f32.mrb[85].mxu0  ;;  %v9482_v61 = vpop.eup %9481  ;;  %v2825_v36 = vadd.f32 1.0, %v9480_v48  ;;  %9501 = vpow2.f32 %v7796_v17 }
 0x193   :  { %v1657_v62 = vadd.f32 %v1656_v7, %v318_v3  ;;  %v8384_v23 = vpop.f32.mrb[86].mxu0  ;;  %v9484_v58 = vpop.eup %9483  ;;  %9503 = vrcp.f32 %v2820_v38  ;;  %v2823_v32 = vadd.f32 1.0, %v9482_v61  ;;  %v9094_v38 = vld [vmem:[%s13809_s1 + $0x300] sm:$0xff]  }
 0x194   :  { %v1668_v27 = vadd.f32 %v8384_v23, %v321_v5  ;;  %v1659_v59 = vpop.f32.mrb[87].mxu0  ;;  %v9486_v19 = vpop.eup %9485  ;;  %9505 = vpow2.f32 %v7798_v63  ;;  %v7801_v54 = vmul.f32 -1.442695, %v1665_v0  ;;  %v2826_v7 = vadd.f32 1.0, %v9484_v58  ;;  %v9095_v58 = vld [vmem:[%s13809_s1 + $0x308] sm:$0xff]   ;;  %8489 = vmatprep.mubr.msk.bf16.mxu0 %vm975_vm0, %v9094_v38 }
 0x195   :  { %v1660_v56 = vadd.f32 %v1659_v59, %v319_v42  ;;  %v9488_v57 = vpop.eup %9487  ;;  %9507 = vrcp.f32 %v2823_v32  ;;  %v2824_v55 = vadd.f32 1.0, %v9486_v19  ;;  %v7799_v8 = vmul.f32 -1.442695, %v1657_v62  ;;  %3915 = vperm.xlu0 %8991, %v9476_v60   ;;  %v322_v59 = vld [vmem:[%s13810_s2 + $0x2c0] sm:$0xff]  ;;  %v325_v60 = vld [vmem:[%s13810_s2 + $0x2d8] sm:$0xff] }
 0x196   :  { %v9490_v3 = vpop.eup %9489  ;;  %9509 = vrcp.f32 %v2825_v36  ;;  %3910 = vperm.xlu1 %8992, %v9488_v57   ;;  %v7802_v17 = vmul.f32 -1.442695, %v1668_v27  ;;  %v323_v57 = vld [vmem:[%s13810_s2 + $0x2c8] sm:$0xff]  ;;  %8490 = vmatmul.mubr.msk.bf16.gmra.mrb[192].mxu0 %vm975_vm0, %v9095_v58 }
 0x197   :  { %v9492_v5 = vpop.eup %9491  ;;  %9511 = vrcp.f32 %v2824_v55  ;;  %v7800_v4 = vmul.f32 -1.442695, %v1660_v56 }
 0x198   :  { %v9494_v0 = vpop.eup %9493  ;;  %9513 = vpow2.f32 %v7801_v54 }
 0x199   :  { %v8387_v63 = vpop.f32.mrb[88].mxu0  ;;  %v9496_v55 = vpop.eup %9495  ;;  %9515 = vpow2.f32 %v7799_v8  ;;  %3925 = vperm.xlu0 %8991, %v9492_v5  }
 0x19a   :  { %v1681_v42 = vadd.f32 %v8387_v63, %v324_v1  ;;  %v1672_v48 = vpop.f32.mrb[89].mxu0  ;;  %v9498_v61 = vpop.eup %9497  ;;  %v2829_v36 = vadd.f32 1.0, %v9496_v55  ;;  %9517 = vpow2.f32 %v7802_v17  ;;  %3920 = vperm.xlu1 %8992, %v9490_v3   ;;  %v328_v3 = vld [vmem:[%s13810_s2 + $0x2f0] sm:$0xff] }
 0x19b   :  { %v1673_v62 = vadd.f32 %v1672_v48, %v322_v59  ;;  %v8388_v23 = vpop.f32.mrb[90].mxu0  ;;  %v9500_v56 = vpop.eup %9499  ;;  %v2827_v19 = vadd.f32 1.0, %v9498_v61  ;;  %9519 = vpow2.f32 %v7800_v4  ;;  %v326_v4 = vld [vmem:[%s13810_s2 + $0x2e0] sm:$0xff] }
 0x19c   :  { %v1684_v27 = vadd.f32 %v8388_v23, %v325_v60  ;;  %v1675_v32 = vpop.f32.mrb[91].mxu0  ;;  %v9502_v8 = vpop.eup %9501  ;;  %9521 = vrcp.f32 %v2826_v7  ;;  %v7805_v1 = vmul.f32 -1.442695, %v1681_v42  ;;  %v9096_v23 = vld [vmem:[%s13809_s1 + $0x310] sm:$0xff]  }
 0x19d   :  { %v1676_v54 = vadd.f32 %v1675_v32, %v323_v57  ;;  %v9504_v59 = vpop.eup %9503  ;;  %9523 = vrcp.f32 %v2827_v19  ;;  %v2828_v5 = vadd.f32 1.0, %v9502_v8  ;;  %v7803_v63 = vmul.f32 -1.442695, %v1673_v62  ;;  %3935 = vperm.xlu0 %8991, %v9494_v0   ;;  %v329_v0 = vld [vmem:[%s13810_s2 + $0x2f8] sm:$0xff]  ;;  %v327_v62 = vld [vmem:[%s13810_s2 + $0x2e8] sm:$0xff]  ;;  %8493 = vmatprep.mubr.msk.bf16.mxu0 %vm975_vm0, %v9096_v23 }
 0x19e   :  { %v9506_v17 = vpop.eup %9505  ;;  %9525 = vrcp.f32 %v2829_v36  ;;  %3930 = vperm.xlu1 %8992, %v9504_v59   ;;  %v7806_v60 = vmul.f32 -1.442695, %v1684_v27  ;;  %v9097_v32 = vld [vmem:[%s13809_s1 + $0x318] sm:$0xff]  }
 0x19f   :  { %v9508_v48 = vpop.eup %9507  ;;  %9527 = vrcp.f32 %v2828_v5  ;;  %v7804_v7 = vmul.f32 -1.442695, %v1676_v54  ;;  %v2830_v61 = vadd.f32 1.0, %v9506_v17  ;;  %8494 = vmatmul.mubr.msk.bf16.gmra.mrb[196].mxu0 %vm975_vm0, %v9097_v32 }
 0x1a0   :  { %v9510_v57 = vpop.eup %9509  ;;  %9529 = vpow2.f32 %v7805_v1 }
 0x1a1   :  { %v8391_v42 = vpop.f32.mrb[92].mxu0  ;;  %v9512_v58 = vpop.eup %9511  ;;  %9531 = vpow2.f32 %v7803_v63  ;;  %3945 = vperm.xlu0 %8991, %v9508_v48  }
 0x1a2   :  { %v1697_v38 = vadd.f32 %v8391_v42, %v328_v3  ;;  %v1688_v55 = vpop.f32.mrb[93].mxu0  ;;  %v9514_v19 = vpop.eup %9513  ;;  %9533 = vpow2.f32 %v7806_v60  ;;  %3940 = vperm.xlu1 %8992, %v9500_v56   ;;  %v332_v56 = vld [vmem:[%s13810_s2 + $0x310] sm:$0xff] }
 0x1a3   :  { %v1689_v36 = vadd.f32 %v1688_v55, %v326_v4  ;;  %v8392_v27 = vpop.f32.mrb[94].mxu0  ;;  %v9516_v59 = vpop.eup %9515  ;;  %v2833_v5 = vadd.f32 1.0, %v9514_v19  ;;  %9535 = vpow2.f32 %v7804_v7 }
 0x1a4   :  { %v7809_v54 = vmul.f32 -1.442695, %v1697_v38  ;;  %v1700_v8 = vadd.f32 %v8392_v27, %v329_v0  ;;  %v1691_v1 = vpop.f32.mrb[95].mxu0  ;;  %v9518_v63 = vpop.eup %9517  ;;  %v2831_v17 = vadd.f32 1.0, %v9516_v59  ;;  %v333_v27 = vld [vmem:[%s13810_s2 + $0x318] sm:$0xff] }
 0x1a5   :  { %v1692_v3 = vadd.f32 %v1691_v1, %v327_v62  ;;  %v9520_v4 = vpop.eup %9519  ;;  %v7807_v48 = vmul.f32 -1.442695, %v1689_v36  ;;  %3955 = vperm.xlu0 %8991, %v9510_v57   ;;  %v330_v62 = vld [vmem:[%s13810_s2 + $0x300] sm:$0xff] }
 0x1a6   :  { %9537 = vpow2.f32 %v7809_v54  ;;  %v9522_v60 = vpop.eup %9521  ;;  %v2832_v42 = vadd.f32 1.0, %v9520_v4  ;;  %3950 = vperm.xlu1 %8992, %v9512_v58   ;;  %v7810_v0 = vmul.f32 -1.442695, %v1700_v8  ;;  %v9098_v58 = vld [vmem:[%s13809_s1 + $0x320] sm:$0xff]   ;;  %v331_v54 = vld [vmem:[%s13810_s2 + $0x308] sm:$0xff] }
 0x1a7   :  { %9539 = vrcp.f32 %v2830_v61  ;;  %v9524_v7 = vpop.eup %9523  ;;  %v7808_v38 = vmul.f32 -1.442695, %v1692_v3  ;;  %v2834_v61 = vadd.f32 1.0, %v9518_v63  ;;  %v9099_v8 = vld [vmem:[%s13809_s1 + $0x328] sm:$0xff]   ;;  %8497 = vmatprep.mubr.msk.bf16.mxu0 %vm975_vm0, %v9098_v58 }
 0x1a8   :  { %9541 = vrcp.f32 %v2831_v17  ;;  %v9526_v23 = vpop.eup %9525  ;;  %8498 = vmatmul.mubr.msk.bf16.gmra.mrb[200].mxu0 %vm975_vm0, %v9099_v8  ;;  %v337_v8 = vld [vmem:[%s13810_s2 + $0x338] sm:$0xff] }
 0x1a9   :  { %9543 = vrcp.f32 %v2833_v5  ;;  %v8395_v55 = vpop.f32.mrb[96].mxu0  ;;  %v9528_v32 = vpop.eup %9527  ;;  %3965 = vperm.xlu0 %8991, %v9524_v7  }
 0x1aa   :  { %9545 = vrcp.f32 %v2832_v42  ;;  %v1713_v57 = vadd.f32 %v8395_v55, %v332_v56  ;;  %v1704_v36 = vpop.f32.mrb[97].mxu0  ;;  %v9530_v1 = vpop.eup %9529  ;;  %3960 = vperm.xlu1 %8992, %v9522_v60   ;;  %v336_v60 = vld [vmem:[%s13810_s2 + $0x330] sm:$0xff] }
 0x1ab   :  { %9547 = vpow2.f32 %v7807_v48  ;;  %v8396_v19 = vpop.f32.mrb[98].mxu0  ;;  %v1705_v5 = vadd.f32 %v1704_v36, %v330_v62  ;;  %v9532_v63 = vpop.eup %9531  ;;  %v2837_v17 = vadd.f32 1.0, %v9530_v1 }
 0x1ac   :  { %9549 = vpow2.f32 %v7810_v0  ;;  %v7813_v59 = vmul.f32 -1.442695, %v1713_v57  ;;  %v1707_v3 = vpop.f32.mrb[99].mxu0  ;;  %v1716_v4 = vadd.f32 %v8396_v19, %v333_v27  ;;  %v9534_v48 = vpop.eup %9533  ;;  %v2835_v56 = vadd.f32 1.0, %v9532_v63 }
 0x1ad   :  { %9551 = vpow2.f32 %v7808_v38  ;;  %v1708_v42 = vadd.f32 %v1707_v3, %v331_v54  ;;  %v9536_v7 = vpop.eup %9535  ;;  %v2838_v55 = vadd.f32 1.0, %v9534_v48  ;;  %3975 = vperm.xlu0 %8991, %v9526_v23   ;;  %v7811_v38 = vmul.f32 -1.442695, %v1705_v5  ;;  %v335_v5 = vld [vmem:[%s13810_s2 + $0x328] sm:$0xff] }
 0x1ae   :  { %9553 = vrcp.f32 %v2834_v61  ;;  %v2836_v62 = vadd.f32 1.0, %v9536_v7  ;;  %3970 = vperm.xlu1 %8992, %v9528_v32   ;;  %v7814_v36 = vmul.f32 -1.442695, %v1716_v4  ;;  %v334_v61 = vld [vmem:[%s13810_s2 + $0x320] sm:$0xff] }
 0x1af   :  { %9555 = vpow2.f32 %v7813_v59  ;;  %v7812_v23 = vmul.f32 -1.442695, %v1708_v42 }
 0x1b0   :  { %v9538_v0 = vpop.eup %9537  ;;  %9557 = vrcp.f32 %v2835_v56 }
 0x1b1   :  { %v9540_v57 = vpop.eup %9539  ;;  %9559 = vrcp.f32 %v2837_v17  ;;  %v8399_v27 = vpop.f32.mrb[100].mxu0  ;;  %v2841_v32 = vadd.f32 1.0, %v9538_v0 }
 0x1b2   :  { %v9542_v58 = vpop.eup %9541  ;;  %9561 = vrcp.f32 %v2838_v55  ;;  %v1729_v19 = vadd.f32 %v8399_v27, %v336_v60  ;;  %v1720_v54 = vpop.f32.mrb[101].mxu0  ;;  %3980 = vperm.xlu1 %8992, %v9540_v57  }
 0x1b3   :  { %v9544_v1 = vpop.eup %9543  ;;  %9563 = vrcp.f32 %v2836_v62  ;;  %3985 = vperm.xlu0 %8991, %v9542_v58   ;;  %v8400_v59 = vpop.f32.mrb[102].mxu0  ;;  %v1721_v63 = vadd.f32 %v1720_v54, %v334_v61  ;;  %v340_v62 = vld [vmem:[%s13810_s2 + $0x350] sm:$0xff] }
 0x1b4   :  { %v9546_v3 = vpop.eup %9545  ;;  %9565 = vpow2.f32 %v7811_v38  ;;  %v1723_v17 = vpop.f32.mrb[103].mxu0  ;;  %v7817_v48 = vmul.f32 -1.442695, %v1729_v19  ;;  %v1732_v56 = vadd.f32 %v8400_v59, %v337_v8 }
 0x1b5   :  { %v9548_v4 = vpop.eup %9547  ;;  %9567 = vpow2.f32 %v7814_v36  ;;  %v1724_v55 = vadd.f32 %v1723_v17, %v335_v5  ;;  %v7815_v27 = vmul.f32 -1.442695, %v1721_v63  ;;  %v338_v36 = vld [vmem:[%s13810_s2 + $0x340] sm:$0xff]  ;;  %v339_v63 = vld [vmem:[%s13810_s2 + $0x348] sm:$0xff] }
 0x1b6   :  { %v9550_v42 = vpop.eup %9549  ;;  %v2839_v7 = vadd.f32 1.0, %v9548_v4  ;;  %9569 = vpow2.f32 %v7812_v23  ;;  %3990 = vperm.xlu1 %8992, %v9546_v3   ;;  %v7818_v58 = vmul.f32 -1.442695, %v1732_v56 }
 0x1b7   :  { %v9552_v60 = vpop.eup %9551  ;;  %9571 = vrcp.f32 %v2841_v32  ;;  %v2842_v0 = vadd.f32 1.0, %v9550_v42  ;;  %3995 = vperm.xlu0 %8991, %v9544_v1   ;;  %v7816_v54 = vmul.f32 -1.442695, %v1724_v55  ;;  %v341_v32 = vld [vmem:[%s13810_s2 + $0x358] sm:$0xff] }
 0x1b8   :  { %v9554_v38 = vpop.eup %9553  ;;  %9573 = vrcp.f32 %v2839_v7  ;;  %v2840_v57 = vadd.f32 1.0, %v9552_v60 }
 0x1b9   :  { %v9556_v61 = vpop.eup %9555  ;;  %9575 = vpow2.f32 %v7817_v48  ;;  %v8403_v23 = vpop.f32.mrb[104].mxu0 }
 0x1ba   :  { %v9558_v19 = vpop.eup %9557  ;;  %9577 = vrcp.f32 %v2842_v0  ;;  %v1745_v8 = vadd.f32 %v8403_v23, %v340_v62  ;;  %v1736_v1 = vpop.f32.mrb[105].mxu0  ;;  %4000 = vperm.xlu1 %8992, %v9554_v38   ;;  %v2845_v60 = vadd.f32 1.0, %v9556_v61 }
 0x1bb   :  { %v9560_v59 = vpop.eup %9559  ;;  %9579 = vrcp.f32 %v2840_v57  ;;  %4005 = vperm.xlu0 %8991, %v9558_v19   ;;  %v1737_v5 = vadd.f32 %v1736_v1, %v338_v36  ;;  %v8404_v3 = vpop.f32.mrb[106].mxu0  ;;  %v344_v36 = vld [vmem:[%s13810_s2 + $0x370] sm:$0xff] }
 0x1bc   :  { %v9562_v17 = vpop.eup %9561  ;;  %9581 = vpow2.f32 %v7815_v27  ;;  %v7821_v4 = vmul.f32 -1.442695, %v1745_v8  ;;  %v1739_v48 = vpop.f32.mrb[107].mxu0  ;;  %v1748_v7 = vadd.f32 %v8404_v3, %v341_v32 }
 0x1bd   :  { %v9564_v56 = vpop.eup %9563  ;;  %9583 = vpow2.f32 %v7818_v58  ;;  %v7819_v42 = vmul.f32 -1.442695, %v1737_v5  ;;  %v1740_v0 = vadd.f32 %v1739_v48, %v339_v63  ;;  %v342_v58 = vld [vmem:[%s13810_s2 + $0x360] sm:$0xff]  ;;  %v345_v63 = vld [vmem:[%s13810_s2 + $0x378] sm:$0xff] }
 0x1be   :  { %v9566_v55 = vpop.eup %9565  ;;  %9585 = vpow2.f32 %v7816_v54  ;;  %4010 = vperm.xlu1 %8992, %v9564_v56   ;;  %v7822_v19 = vmul.f32 -1.442695, %v1748_v7  ;;  %v343_v7 = vld [vmem:[%s13810_s2 + $0x368] sm:$0xff] }
 0x1bf   :  { %v9568_v62 = vpop.eup %9567  ;;  %v2843_v57 = vadd.f32 1.0, %v9566_v55  ;;  %9587 = vpow2.f32 %v7821_v4  ;;  %4015 = vperm.xlu0 %8991, %v9560_v59   ;;  %v7820_v1 = vmul.f32 -1.442695, %v1740_v0 }
 0x1c0   :  { %v9570_v27 = vpop.eup %9569  ;;  %v2846_v38 = vadd.f32 1.0, %v9568_v62  ;;  %9589 = vpow2.f32 %v7819_v42 }
 0x1c1   :  { %v9572_v23 = vpop.eup %9571  ;;  %9591 = vrcp.f32 %v2843_v57  ;;  %v2844_v61 = vadd.f32 1.0, %v9570_v27  ;;  %v8407_v54 = vpop.f32.mrb[108].mxu0 }
 0x1c2   :  { %v9574_v8 = vpop.eup %9573  ;;  %9593 = vrcp.f32 %v2845_v60  ;;  %v1761_v32 = vadd.f32 %v8407_v54, %v344_v36  ;;  %v1752_v59 = vpop.f32.mrb[109].mxu0  ;;  %4020 = vperm.xlu1 %8992, %v9562_v17   ;;  %v348_v17 = vld [vmem:[%s13810_s2 + $0x390] sm:$0xff] }
 0x1c3   :  { %v9576_v5 = vpop.eup %9575  ;;  %9595 = vrcp.f32 %v2844_v61  ;;  %4025 = vperm.xlu0 %8991, %v9574_v8   ;;  %v1753_v3 = vadd.f32 %v1752_v59, %v342_v58  ;;  %v8408_v4 = vpop.f32.mrb[110].mxu0 }
 0x1c4   :  { %v9578_v48 = vpop.eup %9577  ;;  %9597 = vrcp.f32 %v2846_v38  ;;  %v7825_v56 = vmul.f32 -1.442695, %v1761_v32  ;;  %v1755_v42 = vpop.f32.mrb[111].mxu0  ;;  %v2849_v62 = vadd.f32 1.0, %v9576_v5  ;;  %v1764_v57 = vadd.f32 %v8408_v4, %v345_v63 }
 0x1c5   :  { %v9580_v55 = vpop.eup %9579  ;;  %9599 = vpow2.f32 %v7822_v19  ;;  %v7823_v60 = vmul.f32 -1.442695, %v1753_v3  ;;  %v1756_v58 = vadd.f32 %v1755_v42, %v343_v7  ;;  %v346_v19 = vld [vmem:[%s13810_s2 + $0x380] sm:$0xff]  ;;  %v349_v42 = vld [vmem:[%s13810_s2 + $0x398] sm:$0xff] }
 0x1c6   :  { %v9582_v0 = vpop.eup %9581  ;;  %9601 = vpow2.f32 %v7820_v1  ;;  %4030 = vperm.xlu1 %8992, %v9580_v55  }
 0x1c7   :  { %v9584_v36 = vpop.eup %9583  ;;  %v2847_v27 = vadd.f32 1.0, %v9582_v0  ;;  %9603 = vpow2.f32 %v7825_v56  ;;  %4035 = vperm.xlu0 %8991, %v9572_v23   ;;  %v7826_v23 = vmul.f32 -1.442695, %v1764_v57  ;;  %v7824_v4 = vmul.f32 -1.442695, %v1756_v58 }
 0x1c8   :  { %v9586_v38 = vpop.eup %9585  ;;  %v2850_v61 = vadd.f32 1.0, %v9584_v36  ;;  %9605 = vpow2.f32 %v7823_v60 }
 0x1c9   :  { %v9588_v54 = vpop.eup %9587  ;;  %9607 = vrcp.f32 %v2847_v27  ;;  %v2848_v8 = vadd.f32 1.0, %v9586_v38  ;;  %v8411_v1 = vpop.f32.mrb[112].mxu0 }
 0x1ca   :  { %v9590_v32 = vpop.eup %9589  ;;  %9609 = vrcp.f32 %v2849_v62  ;;  %v1777_v59 = vadd.f32 %v8411_v1, %v348_v17  ;;  %v1768_v5 = vpop.f32.mrb[113].mxu0  ;;  %4040 = vperm.xlu1 %8992, %v9578_v48   ;;  %v347_v62 = vld [vmem:[%s13810_s2 + $0x388] sm:$0xff]  ;;  %v2853_v58 = vadd.f32 1.0, %v9588_v54  ;;  %v352_v48 = vld [vmem:[%s13810_s2 + $0x3b0] sm:$0xff]  ;;  %v350_v1 = vld [vmem:[%s13810_s2 + $0x3a0] sm:$0xff] }
 0x1cb   :  { %v9592_v3 = vpop.eup %9591  ;;  %9611 = vrcp.f32 %v2848_v8  ;;  %v2851_v63 = vadd.f32 1.0, %v9590_v32  ;;  %v1769_v56 = vadd.f32 %v1768_v5, %v346_v19  ;;  %v8412_v7 = vpop.f32.mrb[114].mxu0 }
 0x1cc   :  { %v9594_v55 = vpop.eup %9593  ;;  %9613 = vrcp.f32 %v2850_v61  ;;  %4045 = vperm.xlu0 %8991, %v9592_v3   ;;  %v7829_v60 = vmul.f32 -1.442695, %v1777_v59  ;;  %v1771_v0 = vpop.f32.mrb[115].mxu0  ;;  %v1780_v17 = vadd.f32 %v8412_v7, %v349_v42  ;;  %v353_v59 = vld [vmem:[%s13810_s2 + $0x3b8] sm:$0xff] }
 0x1cd   :  { %v9596_v57 = vpop.eup %9595  ;;  %9615 = vrcp.f32 %v2851_v63  ;;  %v7827_v36 = vmul.f32 -1.442695, %v1769_v56  ;;  %v1772_v19 = vadd.f32 %v1771_v0, %v347_v62  ;;  %v351_v56 = vld [vmem:[%s13810_s2 + $0x3a8] sm:$0xff]  ;;  %v9102_v62 = vld [vmem:[%s13811_s4 + $0xe4] ss:$52 sps:$4 sm:$0xff]  }
 0x1ce   :  { %v9598_v27 = vpop.eup %9597  ;;  %9617 = vpow2.f32 %v7826_v23  ;;  %4050 = vperm.xlu1 %8992, %v9596_v57   ;;  %v7830_v3 = vmul.f32 -1.442695, %v1780_v17  ;;  %6670 = vmatprep.mubr.bf16.mxu1 %v9102_v62 }
 0x1cf   :  { %v9600_v38 = vpop.eup %9599  ;;  %9619 = vpow2.f32 %v7824_v4 }
 0x1d0   :  { %v9602_v61 = vpop.eup %9601  ;;  %v2854_v8 = vadd.f32 1.0, %v9600_v38  ;;  %9621 = vpow2.f32 %v7829_v60  ;;  %4055 = vperm.xlu0 %8991, %v9594_v55   ;;  %v7828_v55 = vmul.f32 -1.442695, %v1772_v19  ;;  %v356_v19 = vld [vmem:[%s13810_s2 + $0x3d0] sm:$0xff] }
 0x1d1   :  { %v9604_v32 = vpop.eup %9603  ;;  %v2852_v54 = vadd.f32 1.0, %v9602_v61  ;;  %9623 = vpow2.f32 %v7827_v36  ;;  %v8415_v23 = vpop.f32.mrb[116].mxu0 }
 0x1d2   :  { %v9606_v5 = vpop.eup %9605  ;;  %9625 = vrcp.f32 %v2853_v58  ;;  %v1793_v63 = vadd.f32 %v8415_v23, %v352_v48  ;;  %v1784_v4 = vpop.f32.mrb[117].mxu0  ;;  %4060 = vperm.xlu1 %8992, %v9598_v27  }
 0x1d3   :  { %v9608_v42 = vpop.eup %9607  ;;  %9627 = vrcp.f32 %v2852_v54  ;;  %v2855_v7 = vadd.f32 1.0, %v9606_v5  ;;  %v1785_v60 = vadd.f32 %v1784_v4, %v350_v1  ;;  %v8416_v0 = vpop.f32.mrb[118].mxu0  ;;  %v2857_v54 = vadd.f32 1.0, %v9604_v32 }
 0x1d4   :  { %v9610_v57 = vpop.eup %9609  ;;  %9629 = vrcp.f32 %v2854_v8  ;;  %4065 = vperm.xlu0 %8991, %v9608_v42   ;;  %v7833_v36 = vmul.f32 -1.442695, %v1793_v63  ;;  %v1796_v58 = vadd.f32 %v8416_v0, %v353_v59  ;;  %v1787_v17 = vpop.f32.mrb[119].mxu0  ;;  %v354_v8 = vld [vmem:[%s13810_s2 + $0x3c0] sm:$0xff] }
 0x1d5   :  { %v9612_v38 = vpop.eup %9611  ;;  %9631 = vrcp.f32 %v2855_v7  ;;  %v7831_v48 = vmul.f32 -1.442695, %v1785_v60  ;;  %v1788_v23 = vadd.f32 %v1787_v17, %v351_v56 }
 0x1d6   :  { %v9614_v61 = vpop.eup %9613  ;;  %9633 = vpow2.f32 %v7830_v3  ;;  %v7834_v1 = vmul.f32 -1.442695, %v1796_v58  ;;  %4070 = vperm.xlu1 %8992, %v9612_v38   ;;  %v357_v3 = vld [vmem:[%s13810_s2 + $0x3d8] sm:$0xff] }
 0x1d7   :  { %v9616_v27 = vpop.eup %9615  ;;  %9635 = vpow2.f32 %v7828_v55  ;;  %v7832_v56 = vmul.f32 -1.442695, %v1788_v23 }
 0x1d8   :  { %v9618_v59 = vpop.eup %9617  ;;  %9637 = vpow2.f32 %v7833_v36  ;;  %4075 = vperm.xlu0 %8991, %v9610_v57  }
 0x1d9   :  { %v9620_v5 = vpop.eup %9619  ;;  %v2858_v63 = vadd.f32 1.0, %v9618_v59  ;;  %9639 = vpow2.f32 %v7831_v48  ;;  %v8419_v32 = vpop.f32.mrb[120].mxu0 }
 0x1da   :  { %v9622_v4 = vpop.eup %9621  ;;  %9641 = vrcp.f32 %v2857_v54  ;;  %v2856_v42 = vadd.f32 1.0, %v9620_v5  ;;  %v1809_v7 = vadd.f32 %v8419_v32, %v356_v19  ;;  %v1800_v60 = vpop.f32.mrb[121].mxu0  ;;  %4080 = vperm.xlu1 %8992, %v9614_v61   ;;  %v355_v54 = vld [vmem:[%s13810_s2 + $0x3c8] sm:$0xff]  ;;  %v358_v61 = vld [vmem:[%s13810_s2 + $0x3e0] sm:$0xff] }
 0x1db   :  { %v9624_v55 = vpop.eup %9623  ;;  %9643 = vpow2.f32 %v7834_v1  ;;  %v1801_v0 = vadd.f32 %v1800_v60, %v354_v8  ;;  %v8420_v62 = vpop.f32.mrb[122].mxu0  ;;  %v2861_v1 = vadd.f32 1.0, %v9622_v4  ;;  %v360_v8 = vld [vmem:[%s13810_s2 + $0x3f0] sm:$0xff] }
 0x1dc   :  { %v9626_v36 = vpop.eup %9625  ;;  %9645 = vrcp.f32 %v2856_v42  ;;  %v2859_v57 = vadd.f32 1.0, %v9624_v55  ;;  %4085 = vperm.xlu0 %8991, %v9616_v27   ;;  %v7837_v58 = vmul.f32 -1.442695, %v1809_v7  ;;  %v1812_v17 = vadd.f32 %v8420_v62, %v357_v3  ;;  %v1803_v38 = vpop.f32.mrb[123].mxu0  ;;  %v361_v42 = vld [vmem:[%s13810_s2 + $0x3f8] sm:$0xff] }
 0x1dd   :  { %v9628_v48 = vpop.eup %9627  ;;  %9647 = vrcp.f32 %v2858_v63  ;;  %v7835_v59 = vmul.f32 -1.442695, %v1801_v0  ;;  %v1804_v63 = vadd.f32 %v1803_v38, %v355_v54 }
 0x1de   :  { %v9630_v19 = vpop.eup %9629  ;;  %9649 = vrcp.f32 %v2859_v57  ;;  %v7838_v23 = vmul.f32 -1.442695, %v1812_v17  ;;  %4090 = vperm.xlu1 %8992, %v9628_v48  }
 0x1df   :  { %v9632_v27 = vpop.eup %9631  ;;  %9651 = vpow2.f32 %v7832_v56  ;;  %v7836_v38 = vmul.f32 -1.442695, %v1804_v63 }
 0x1e0   :  { %v9634_v5 = vpop.eup %9633  ;;  %9653 = vpow2.f32 %v7837_v58  ;;  %4095 = vperm.xlu0 %8991, %v9626_v36  }
 0x1e1   :  { %v9636_v32 = vpop.eup %9635  ;;  %v2862_v3 = vadd.f32 1.0, %v9634_v5  ;;  %9655 = vpow2.f32 %v7835_v59  ;;  %v8423_v4 = vpop.f32.mrb[124].mxu0 }
 0x1e2   :  { %v9638_v7 = vpop.eup %9637  ;;  %9657 = vrcp.f32 %v2861_v1  ;;  %v2860_v60 = vadd.f32 1.0, %v9636_v32  ;;  %v1825_v55 = vadd.f32 %v8423_v4, %v360_v8  ;;  %v1816_v0 = vpop.f32.mrb[125].mxu0  ;;  %4100 = vperm.xlu1 %8992, %v9630_v19   ;;  %v359_v1 = vld [vmem:[%s13810_s2 + $0x3e8] sm:$0xff]  ;;  %v362_v19 = vld [vmem:[%s13810_s2 + $0x400] sm:$0xff] }
 0x1e3   :  { %v9640_v56 = vpop.eup %9639  ;;  %v2865_v62 = vadd.f32 1.0, %v9638_v7  ;;  %9659 = vpow2.f32 %v7838_v23  ;;  %v1817_v57 = vadd.f32 %v1816_v0, %v358_v61  ;;  %v8424_v58 = vpop.f32.mrb[126].mxu0  ;;  %v364_v61 = vld [vmem:[%s13810_s2 + $0x410] sm:$0xff] }
 0x1e4   :  { %v9642_v36 = vpop.eup %9641  ;;  %9661 = vrcp.f32 %v2860_v60  ;;  %v2863_v17 = vadd.f32 1.0, %v9640_v56  ;;  %4105 = vperm.xlu0 %8991, %v9632_v27   ;;  %v1828_v48 = vadd.f32 %v8424_v58, %v361_v42  ;;  %v1819_v59 = vpop.f32.mrb[127].mxu0  ;;  %v7841_v5 = vmul.f32 -1.442695, %v1825_v55  ;;  %v365_v60 = vld [vmem:[%s13810_s2 + $0x418] sm:$0xff] }
 0x1e5   :  { %v9644_v54 = vpop.eup %9643  ;;  %9663 = vrcp.f32 %v2862_v3  ;;  %v7839_v23 = vmul.f32 -1.442695, %v1817_v57  ;;  %v1820_v3 = vadd.f32 %v1819_v59, %v359_v1  ;;  %v363_v57 = vld [vmem:[%s13810_s2 + $0x408] sm:$0xff] }
 0x1e6   :  { %v9646_v8 = vpop.eup %9645  ;;  %9665 = vrcp.f32 %v2865_v62  ;;  %v7842_v63 = vmul.f32 -1.442695, %v1828_v48  ;;  %v2866_v42 = vadd.f32 1.0, %v9644_v54 }
 0x1e7   :  { %v9648_v27 = vpop.eup %9647  ;;  %9667 = vrcp.f32 %v2863_v17  ;;  %4110 = vperm.xlu1 %8992, %v9646_v8   ;;  %v7840_v54 = vmul.f32 -1.442695, %v1820_v3 }
 0x1e8   :  { %v9650_v32 = vpop.eup %9649  ;;  %9669 = vpow2.f32 %v7836_v38  ;;  %4115 = vperm.xlu0 %8991, %v9642_v36  }
 0x1e9   :  { %v9652_v4 = vpop.eup %9651  ;;  %9671 = vpow2.f32 %v7841_v5  ;;  %v8427_v7 = vpop.f32.mrb[128].mxu0 }
 0x1ea   :  { %v9654_v55 = vpop.eup %9653  ;;  %v2864_v0 = vadd.f32 1.0, %v9652_v4  ;;  %9673 = vpow2.f32 %v7839_v23  ;;  %v1841_v56 = vadd.f32 %v8427_v7, %v364_v61  ;;  %v1832_v62 = vpop.f32.mrb[129].mxu0 }
 0x1eb   :  { %v9656_v58 = vpop.eup %9655  ;;  %v2869_v36 = vadd.f32 1.0, %v9654_v55  ;;  %9675 = vpow2.f32 %v7842_v63  ;;  %v1833_v17 = vadd.f32 %v1832_v62, %v362_v19  ;;  %v8428_v38 = vpop.f32.mrb[130].mxu0  ;;  %4120 = vperm.xlu1 %8992, %v9648_v27   ;;  %v368_v19 = vld [vmem:[%s13810_s2 + $0x430] sm:$0xff]  ;;  %v366_v63 = vld [vmem:[%s13810_s2 + $0x420] sm:$0xff] }
 0x1ec   :  { %v9658_v48 = vpop.eup %9657  ;;  %9677 = vrcp.f32 %v2864_v0  ;;  %v2867_v59 = vadd.f32 1.0, %v9656_v58  ;;  %4125 = vperm.xlu0 %8991, %v9650_v32   ;;  %v1844_v5 = vadd.f32 %v8428_v38, %v365_v60  ;;  %v1835_v1 = vpop.f32.mrb[131].mxu0  ;;  %v7845_v23 = vmul.f32 -1.442695, %v1841_v56  ;;  %v367_v58 = vld [vmem:[%s13810_s2 + $0x428] sm:$0xff] }
 0x1ed   :  { %v9660_v8 = vpop.eup %9659  ;;  %9679 = vrcp.f32 %v2866_v42  ;;  %v1836_v61 = vadd.f32 %v1835_v1, %v363_v57  ;;  %v7843_v7 = vmul.f32 -1.442695, %v1833_v17 }
 0x1ee   :  { %v9662_v4 = vpop.eup %9661  ;;  %9681 = vrcp.f32 %v2869_v36  ;;  %v7846_v27 = vmul.f32 -1.442695, %v1844_v5  ;;  %v2870_v56 = vadd.f32 1.0, %v9660_v8 }
 0x1ef   :  { %v9664_v3 = vpop.eup %9663  ;;  %9683 = vrcp.f32 %v2867_v59  ;;  %4130 = vperm.xlu1 %8992, %v9662_v4   ;;  %v7844_v42 = vmul.f32 -1.442695, %v1836_v61 }
 0x1f0   :  { %v9666_v32 = vpop.eup %9665  ;;  %9685 = vpow2.f32 %v7840_v54  ;;  %4135 = vperm.xlu0 %8991, %v9658_v48   ;;  %v369_v48 = vld [vmem:[%s13810_s2 + $0x438] sm:$0xff] }
 0x1f1   :  { %v9668_v60 = vpop.eup %9667  ;;  %9687 = vpow2.f32 %v7845_v23  ;;  %v8431_v55 = vpop.f32.mrb[132].mxu0 }
 0x1f2   :  { %v9670_v0 = vpop.eup %9669  ;;  %9689 = vpow2.f32 %v7843_v7  ;;  %v1857_v62 = vadd.f32 %v8431_v55, %v368_v19  ;;  %v1848_v57 = vpop.f32.mrb[133].mxu0 }
 0x1f3   :  { %v9672_v36 = vpop.eup %9671  ;;  %v2868_v17 = vadd.f32 1.0, %v9670_v0  ;;  %9691 = vpow2.f32 %v7846_v27  ;;  %v1849_v38 = vadd.f32 %v1848_v57, %v366_v63  ;;  %v8432_v59 = vpop.f32.mrb[134].mxu0  ;;  %4140 = vperm.xlu1 %8992, %v9664_v3   ;;  %v372_v27 = vld [vmem:[%s13810_s2 + $0x450] sm:$0xff]  ;;  %v373_v57 = vld [vmem:[%s13810_s2 + $0x458] sm:$0xff] }
 0x1f4   :  { %v9674_v54 = vpop.eup %9673  ;;  %v2873_v5 = vadd.f32 1.0, %v9672_v36  ;;  %9693 = vpow2.f32 %v7844_v42  ;;  %4145 = vperm.xlu0 %8991, %v9668_v60   ;;  %v1851_v1 = vpop.f32.mrb[135].mxu0  ;;  %v7849_v61 = vmul.f32 -1.442695, %v1857_v62  ;;  %v1860_v63 = vadd.f32 %v8432_v59, %v369_v48  ;;  %v370_v42 = vld [vmem:[%s13810_s2 + $0x440] sm:$0xff]  ;;  %v371_v48 = vld [vmem:[%s13810_s2 + $0x448] sm:$0xff] }
 0x1f5   :  { %v9676_v8 = vpop.eup %9675  ;;  %9695 = vrcp.f32 %v2868_v17  ;;  %v2871_v23 = vadd.f32 1.0, %v9674_v54  ;;  %v1852_v4 = vadd.f32 %v1851_v1, %v367_v58  ;;  %v7847_v19 = vmul.f32 -1.442695, %v1849_v38 }
 0x1f6   :  { %v9678_v7 = vpop.eup %9677  ;;  %9697 = vrcp.f32 %v2870_v56  ;;  %v2874_v60 = vadd.f32 1.0, %v9676_v8  ;;  %v7850_v36 = vmul.f32 -1.442695, %v1860_v63 }
 0x1f7   :  { %v9680_v3 = vpop.eup %9679  ;;  %9699 = vrcp.f32 %v2871_v23  ;;  %4150 = vperm.xlu1 %8992, %v9678_v7   ;;  %v7848_v0 = vmul.f32 -1.442695, %v1852_v4 }
 0x1f8   :  { %v9682_v55 = vpop.eup %9681  ;;  %9701 = vrcp.f32 %v2873_v5  ;;  %4155 = vperm.xlu0 %8991, %v9666_v32  }
 0x1f9   :  { %v9684_v62 = vpop.eup %9683  ;;  %9703 = vpow2.f32 %v7849_v61  ;;  %v8435_v56 = vpop.f32.mrb[136].mxu0 }
 0x1fa   :  { %v9686_v58 = vpop.eup %9685  ;;  %9705 = vpow2.f32 %v7847_v19  ;;  %v1873_v17 = vadd.f32 %v8435_v56, %v372_v27  ;;  %v1864_v38 = vpop.f32.mrb[137].mxu0 }
 0x1fb   :  { %v9688_v59 = vpop.eup %9687  ;;  %9707 = vrcp.f32 %v2874_v60  ;;  %v2872_v32 = vadd.f32 1.0, %v9686_v58  ;;  %v1865_v54 = vadd.f32 %v1864_v38, %v370_v42  ;;  %v8436_v5 = vpop.f32.mrb[138].mxu0  ;;  %4160 = vperm.xlu1 %8992, %v9680_v3   ;;  %v376_v60 = vld [vmem:[%s13810_s2 + $0x470] sm:$0xff]  ;;  %v374_v42 = vld [vmem:[%s13810_s2 + $0x460] sm:$0xff]  ;;  %v377_v38 = vld [vmem:[%s13810_s2 + $0x478] sm:$0xff] }
 0x1fc   :  { %v9690_v1 = vpop.eup %9689  ;;  %v2877_v8 = vadd.f32 1.0, %v9688_v59  ;;  %9709 = vpow2.f32 %v7848_v0  ;;  %4165 = vperm.xlu0 %8991, %v9684_v62   ;;  %v1876_v23 = vadd.f32 %v8436_v5, %v373_v57  ;;  %v1867_v61 = vpop.f32.mrb[139].mxu0  ;;  %v7853_v27 = vmul.f32 -1.442695, %v1873_v17 }
 0x1fd   :  { %v9692_v4 = vpop.eup %9691  ;;  %9711 = vrcp.f32 %v2872_v32  ;;  %v2875_v7 = vadd.f32 1.0, %v9690_v1  ;;  %v1868_v19 = vadd.f32 %v1867_v61, %v371_v48  ;;  %v7851_v62 = vmul.f32 -1.442695, %v1865_v54  ;;  %v375_v54 = vld [vmem:[%s13810_s2 + $0x468] sm:$0xff] }
 0x1fe   :  { %v9694_v63 = vpop.eup %9693  ;;  %9713 = vpow2.f32 %v7850_v36  ;;  %v7854_v57 = vmul.f32 -1.442695, %v1876_v23  ;;  %v2878_v59 = vadd.f32 1.0, %v9692_v4 }
 0x1ff   :  { %v9696_v0 = vpop.eup %9695  ;;  %9715 = vrcp.f32 %v2875_v7  ;;  %v2876_v3 = vadd.f32 1.0, %v9694_v63  ;;  %v7852_v36 = vmul.f32 -1.442695, %v1868_v19 }
 0x200   :  { %v9698_v56 = vpop.eup %9697  ;;  %9717 = vrcp.f32 %v2877_v8  ;;  %4170 = vperm.xlu1 %8992, %v9696_v0   ;;  %4175 = vperm.xlu0 %8991, %v9682_v55  }
 0x201   :  { %v9700_v58 = vpop.eup %9699  ;;  %9719 = vrcp.f32 %v2876_v3  ;;  %v8439_v17 = vpop.f32.mrb[140].mxu0  ;;  %v380_v3 = vld [vmem:[%s13810_s2 + $0x490] sm:$0xff] }
 0x202   :  { %v9702_v48 = vpop.eup %9701  ;;  %9721 = vpow2.f32 %v7853_v27  ;;  %v1889_v32 = vadd.f32 %v8439_v17, %v376_v60  ;;  %v1880_v5 = vpop.f32.mrb[141].mxu0 }
 0x203   :  { %v9704_v1 = vpop.eup %9703  ;;  %9723 = vpow2.f32 %v7851_v62  ;;  %v1881_v55 = vadd.f32 %v1880_v5, %v374_v42  ;;  %v8440_v8 = vpop.f32.mrb[142].mxu0  ;;  %v378_v42 = vld [vmem:[%s13810_s2 + $0x480] sm:$0xff] }
 0x204   :  { %v9706_v23 = vpop.eup %9705  ;;  %v2881_v61 = vadd.f32 1.0, %v9704_v1  ;;  %9725 = vpow2.f32 %v7854_v57  ;;  %4180 = vperm.xlu1 %8992, %v9698_v56   ;;  %4185 = vperm.xlu0 %8991, %v9700_v58   ;;  %v1892_v7 = vadd.f32 %v8440_v8, %v377_v38  ;;  %v1883_v19 = vpop.f32.mrb[143].mxu0  ;;  %v7857_v0 = vmul.f32 -1.442695, %v1889_v32 }
 0x205   :  { %v9708_v63 = vpop.eup %9707  ;;  %v2879_v4 = vadd.f32 1.0, %v9706_v23  ;;  %9727 = vpow2.f32 %v7852_v36  ;;  %v1884_v27 = vadd.f32 %v1883_v19, %v375_v54  ;;  %v7855_v57 = vmul.f32 -1.442695, %v1881_v55  ;;  %v11124_v17 = vpop.permute.xlu1 %3895  ;;  %v381_v54 = vld [vmem:[%s13810_s2 + $0x498] sm:$0xff]  ;;  %v3423_v55 = vld [vmem:[%s13812_s3 + $0x200] sm:$0xff] }
 0x206   :  { %v9710_v60 = vpop.eup %9709  ;;  %9729 = vrcp.f32 %v2878_v59  ;;  %v7858_v36 = vmul.f32 -1.442695, %v1892_v7  ;;  %v3886_v38 = vpop.permute.xlu0 %3885 }
 0x207   :  { %v9712_v62 = vpop.eup %9711  ;;  %9731 = vrcp.f32 %v2879_v4  ;;  %v2880_v56 = vadd.f32 1.0, %v9710_v60  ;;  %v7856_v32 = vmul.f32 -1.442695, %v1884_v27  ;;  %v3424_v4 = vld [vmem:[%s13812_s3 + $0x208] sm:$0xff] }
 0x208   :  { %v9714_v58 = vpop.eup %9713  ;;  %9733 = vrcp.f32 %v2881_v61  ;;  %4190 = vperm.xlu1 %8992, %v9712_v62   ;;  %4195 = vperm.xlu0 %8991, %v9702_v48   ;;  %v379_v48 = vld [vmem:[%s13810_s2 + $0x488] sm:$0xff] }
 0x209   :  { %v9716_v59 = vpop.eup %9715  ;;  %9735 = vrcp.f32 %v2880_v56  ;;  %v8443_v5 = vpop.f32.mrb[144].mxu0  ;;  %v2882_v7 = vadd.f32 1.0, %v9714_v58 }
 0x20a   :  { %v9718_v1 = vpop.eup %9717  ;;  %9737 = vpow2.f32 %v7857_v0  ;;  %v1905_v8 = vadd.f32 %v8443_v5, %v380_v3  ;;  %v1896_v23 = vpop.f32.mrb[145].mxu0 }
 0x20b   :  { %v9720_v61 = vpop.eup %9719  ;;  %9739 = vpow2.f32 %v7855_v57  ;;  %v1897_v19 = vadd.f32 %v1896_v23, %v378_v42  ;;  %v8444_v27 = vpop.f32.mrb[146].mxu0  ;;  %v3425_v42 = vld [vmem:[%s13812_s3 + $0x210] sm:$0xff]  ;;  %v3426_v57 = vld [vmem:[%s13812_s3 + $0x218] sm:$0xff] }
 0x20c   :  { %v9722_v60 = vpop.eup %9721  ;;  %9741 = vpow2.f32 %v7858_v36  ;;  %4200 = vperm.xlu1 %8992, %v9708_v63   ;;  %4205 = vperm.xlu0 %8991, %v9716_v59   ;;  %v7861_v0 = vmul.f32 -1.442695, %v1905_v8  ;;  %v1908_v3 = vadd.f32 %v8444_v27, %v381_v54  ;;  %v1899_v62 = vpop.f32.mrb[147].mxu0  ;;  %v384_v59 = vld [vmem:[%s13810_s2 + $0x4b0] sm:$0xff] }
 0x20d   :  { %v9724_v56 = vpop.eup %9723  ;;  %v2885_v5 = vadd.f32 1.0, %v9722_v60  ;;  %9743 = vpow2.f32 %v7856_v32  ;;  %v1900_v53 = vadd.f32 %v1899_v62, %v379_v48  ;;  %v3901_v36 = vpop.permute.xlu1 %3900  ;;  %v4647_v32 = vmul.f32 %v3886_v38, %v3423_v55 }
 0x20e   :  { %v9726_v52 = vpop.eup %9725  ;;  %v2883_v58 = vadd.f32 1.0, %v9724_v56  ;;  %9745 = vpow2.f32 %v7861_v0  ;;  %v3891_v63 = vpop.permute.xlu0 %3890  ;;  %v7859_v8 = vmul.f32 -1.442695, %v1897_v19  ;;  %v7862_v60 = vmul.f32 -1.442695, %v1908_v3 }
 0x20f   :  { %v9728_v54 = vpop.eup %9727  ;;  %9747 = vrcp.f32 %v2882_v7  ;;  %v4648_v23 = vmul.f32 %v3891_v63, %v3424_v4  ;;  %v4650_v56 = vmul.f32 %v3901_v36, %v3426_v57  ;;  %v7860_v0 = vmul.f32 -1.442695, %v1900_v53  ;;  %v382_v7 = vld [vmem:[%s13810_s2 + $0x4a0] sm:$0xff] }
 0x210   :  { %v9730_v48 = vpop.eup %9729  ;;  %9749 = vrcp.f32 %v2883_v58  ;;  %v2884_v27 = vadd.f32 1.0, %v9728_v54  ;;  %4210 = vperm.xlu1 %8992, %v9720_v61   ;;  %4215 = vperm.xlu0 %8991, %v9718_v1   ;;  %v2886_v55 = vadd.f32 1.0, %v9726_v52  ;;  %v385_v1 = vld [vmem:[%s13810_s2 + $0x4b8] sm:$0xff]  ;;  %v4649_v53 = vmul.f32 %v11124_v17, %v3425_v42  ;;  %v3428_v54 = vld [vmem:[%s13812_s3 + $0x228] sm:$0xff] }
 0x211   :  { %v9732_v62 = vpop.eup %9731  ;;  %9751 = vrcp.f32 %v2885_v5  ;;  %v11147_v51 = vpack.c.bf16 %v4648_v23, %v4647_v32  ;;  %v8447_v49 = vpop.f32.mrb[148].mxu0  ;;  %v383_v5 = vld [vmem:[%s13810_s2 + $0x4a8] sm:$0xff]  ;;  %v13864_v32 = vmov 0  }
 0x212   :  { %v9734_v38 = vpop.eup %9733  ;;  %9753 = vrcp.f32 %v2884_v27  ;;  %v3906_v19 = vpop.permute.xlu0 %3905  ;;  %v1921_v4 = vadd.f32 %v8447_v49, %v384_v59  ;;  %v3427_v49 = vld [vmem:[%s13812_s3 + $0x220] sm:$0xff]  ;;  %v11163_v59 = vpack.c.bf16 %v4650_v56, %v4649_v53 }
 0x213   :  { %13862 = vst [vmem:[#allocation32_spill] sm:$0xff] %v11147_v51  ;;  %v1912_v58 = vpop.f32.mrb[149].mxu0  ;;  %v9736_v61 = vpop.eup %9735  ;;  %9755 = vpow2.f32 %v7859_v8  ;;  %8597 = vmatpush1.bf16.msra.mxu1 %v11147_v51 }
 0x214   :  { %v8448_v3 = vpop.f32.mrb[150].mxu0  ;;  %v9738_v52 = vpop.eup %9737  ;;  %9757 = vpow2.f32 %v7862_v60  ;;  %4220 = vperm.xlu1 %8992, %v9730_v48   ;;  %4225 = vperm.xlu0 %8991, %v9732_v62   ;;  %v7865_v57 = vmul.f32 -1.442695, %v1921_v4  ;;  %v1913_v36 = vadd.f32 %v1912_v58, %v382_v7  ;;  %13863 = vst [vmem:[#allocation33_spill] sm:$0xff] %v11163_v59  ;;  %v388_v62 = vld [vmem:[%s13810_s2 + $0x4d0] sm:$0xff] }
 0x215   :  { %v1915_v63 = vpop.f32.mrb[151].mxu0  ;;  %v9740_v17 = vpop.eup %9739  ;;  %v2889_v42 = vadd.f32 1.0, %v9738_v52  ;;  %9759 = vpow2.f32 %v7860_v0  ;;  %8582 = vmatprep.subr.bf16.mxu1 %v13864_v32  ;;  %v1924_v8 = vadd.f32 %v8448_v3, %v385_v1  ;;  %v4651_v3 = vmul.f32 %v3906_v19, %v3427_v49  ;;  %v3430_v52 = vld [vmem:[%s13812_s3 + $0x238] sm:$0xff] }
 0x216   :  { %v9742_v23 = vpop.eup %9741  ;;  %9761 = vrcp.f32 %v2886_v55  ;;  %v2887_v48 = vadd.f32 1.0, %v9740_v17  ;;  %v3916_v27 = vpop.permute.xlu0 %3915  ;;  %v1916_v60 = vadd.f32 %v1915_v63, %v383_v5  ;;  %v7863_v1 = vmul.f32 -1.442695, %v1913_v36  ;;  %v386_v63 = vld [vmem:[%s13810_s2 + $0x4c0] sm:$0xff] }
 0x217   :  { %v9744_v7 = vpop.eup %9743  ;;  %v2890_v56 = vadd.f32 1.0, %v9742_v23  ;;  %v3911_v4 = vpop.permute.xlu1 %3910  ;;  %9763 = vpow2.f32 %v7865_v57  ;;  %8598 = vmatpush1.bf16.msra.mxu1 %v11163_v59  ;;  %v7866_v5 = vmul.f32 -1.442695, %v1924_v8 }
 0x218   :  { %v9746_v0 = vpop.eup %9745  ;;  %9765 = vrcp.f32 %v2887_v48  ;;  %v2888_v58 = vadd.f32 1.0, %v9744_v7  ;;  %v4652_v53 = vmul.f32 %v3911_v4, %v3428_v54  ;;  %4230 = vperm.xlu1 %8992, %v9736_v61   ;;  %4235 = vperm.xlu0 %8991, %v9734_v38   ;;  %v3429_v38 = vld [vmem:[%s13812_s3 + $0x230] sm:$0xff]  ;;  %v7864_v61 = vmul.f32 -1.442695, %v1916_v60 }
 0x219   :  { %v9748_v55 = vpop.eup %9747  ;;  %9767 = vrcp.f32 %v2889_v42  ;;  %8583 = vmatprep.subr.bf16.mxu1 %v13864_v32  ;;  %v8451_v57 = vpop.f32.mrb[152].mxu0  ;;  %v389_v42 = vld [vmem:[%s13810_s2 + $0x4d8] sm:$0xff]  ;;  %v2893_v8 = vadd.f32 1.0, %v9746_v0 }
 0x21a   :  { %v9750_v17 = vpop.eup %9749  ;;  %9769 = vrcp.f32 %v2890_v56  ;;  %v3926_v19 = vpop.permute.xlu0 %3925  ;;  %v1937_v49 = vadd.f32 %v8451_v57, %v388_v62  ;;  %v11186_v23 = vpack.c.bf16 %v4652_v53, %v4651_v3  ;;  %v387_v56 = vld [vmem:[%s13810_s2 + $0x4c8] sm:$0xff]  ;;  %v3431_v62 = vld [vmem:[%s13812_s3 + $0x240] sm:$0xff]  ;;  %v4653_v53 = vmul.f32 %v3916_v27, %v3429_v38  ;;  %v392_v27 = vld [vmem:[%s13810_s2 + $0x4f0] sm:$0xff] }
 0x21b   :  { %v1928_v36 = vpop.f32.mrb[153].mxu0  ;;  %v9752_v54 = vpop.eup %9751  ;;  %9771 = vrcp.f32 %v2888_v58  ;;  %v3432_v3 = vld [vmem:[%s13812_s3 + $0x248] sm:$0xff] }
 0x21c   :  { %13865 = vst [vmem:[#allocation34_spill] sm:$0xff] %v11186_v23  ;;  %v3921_v48 = vpop.permute.xlu1 %3920  ;;  %v8452_v7 = vpop.f32.mrb[154].mxu0  ;;  %9773 = vpow2.f32 %v7863_v1  ;;  %4240 = vperm.xlu1 %8992, %v9748_v55   ;;  %4245 = vperm.xlu0 %8991, %v9750_v17   ;;  %v1929_v57 = vadd.f32 %v1928_v36, %v386_v63  ;;  %v7869_v59 = vmul.f32 -1.442695, %v1937_v49 }
 0x21d   :  { %v9754_v4 = vpop.eup %9753  ;;  %v4654_v60 = vmul.f32 %v3921_v48, %v3430_v52  ;;  %v1931_v58 = vpop.f32.mrb[155].mxu0  ;;  %9775 = vpow2.f32 %v7866_v5  ;;  %8599 = vmatpush1.bf16.msra.mxu1 %v11186_v23  ;;  %v1940_v1 = vadd.f32 %v8452_v7, %v389_v42  ;;  %v390_v5 = vld [vmem:[%s13810_s2 + $0x4e0] sm:$0xff] }
 0x21e   :  { %v9756_v0 = vpop.eup %9755  ;;  %9777 = vpow2.f32 %v7864_v61  ;;  %8584 = vmatprep.subr.bf16.mxu1 %v13864_v32  ;;  %v3936_v48 = vpop.permute.xlu0 %3935  ;;  %v1932_v17 = vadd.f32 %v1931_v58, %v387_v56  ;;  %v7867_v56 = vmul.f32 -1.442695, %v1929_v57 }
 0x21f   :  { %v9758_v52 = vpop.eup %9757  ;;  %v2891_v55 = vadd.f32 1.0, %v9756_v0  ;;  %9779 = vrcp.f32 %v2893_v8  ;;  %v11205_v49 = vpack.c.bf16 %v4654_v60, %v4653_v53  ;;  %v4655_v0 = vmul.f32 %v3926_v19, %v3431_v62  ;;  %v3434_v8 = vld [vmem:[%s13812_s3 + $0x258] sm:$0xff] }
 0x220   :  { %v9760_v63 = vpop.eup %9759  ;;  %v2894_v38 = vadd.f32 1.0, %v9758_v52  ;;  %v3931_v36 = vpop.permute.xlu1 %3930  ;;  %4250 = vperm.xlu1 %8992, %v9754_v4   ;;  %4255 = vperm.xlu0 %8991, %v9752_v54   ;;  %v7870_v23 = vmul.f32 -1.442695, %v1940_v1  ;;  %v7868_v4 = vmul.f32 -1.442695, %v1932_v17  ;;  %v393_v62 = vld [vmem:[%s13810_s2 + $0x4f8] sm:$0xff] }
 0x221   :  { %13866 = vst [vmem:[#allocation35_spill] sm:$0xff] %v11205_v49  ;;  %v9762_v42 = vpop.eup %9761  ;;  %9781 = vrcp.f32 %v2891_v55  ;;  %v2892_v61 = vadd.f32 1.0, %v9760_v63  ;;  %v4656_v7 = vmul.f32 %v3931_v36, %v3432_v3  ;;  %8600 = vmatpush1.bf16.msra.mxu1 %v11205_v49  ;;  %v8455_v60 = vpop.f32.mrb[156].mxu0  ;;  %v3433_v3 = vld [vmem:[%s13812_s3 + $0x250] sm:$0xff]  ;;  %v391_v17 = vld [vmem:[%s13810_s2 + $0x4e8] sm:$0xff] }
 0x222   :  { %v9764_v58 = vpop.eup %9763  ;;  %9783 = vpow2.f32 %v7869_v59  ;;  %8585 = vmatprep.subr.bf16.mxu1 %v13864_v32  ;;  %v3946_v54 = vpop.permute.xlu0 %3945  ;;  %v1953_v19 = vadd.f32 %v8455_v60, %v392_v27  ;;  %v4657_v51 = vmul.f32 %v3936_v48, %v3433_v3  ;;  %v3435_v48 = vld [vmem:[%s13812_s3 + $0x260] sm:$0xff] }
 0x223   :  { %v9766_v53 = vpop.eup %9765  ;;  %9785 = vrcp.f32 %v2894_v38  ;;  %v1944_v59 = vpop.f32.mrb[157].mxu0  ;;  %v11218_v1 = vpack.c.bf16 %v4656_v7, %v4655_v0  ;;  %v242_v3 = vld [vmem:[%s13810_s2 + $0x40] sm:$0xff] }
 0x224   :  { %v9768_v57 = vpop.eup %9767  ;;  %9787 = vrcp.f32 %v2892_v61  ;;  %v3941_v52 = vpop.permute.xlu1 %3940  ;;  %v1945_v55 = vadd.f32 %v1944_v59, %v390_v5  ;;  %4260 = vperm.xlu1 %8992, %v9762_v42   ;;  %4265 = vperm.xlu0 %8991, %v9766_v53   ;;  %v7873_v27 = vmul.f32 -1.442695, %v1953_v19  ;;  %v3436_v5 = vld [vmem:[%s13812_s3 + $0x268] sm:$0xff]  ;;  %v2897_v42 = vadd.f32 1.0, %v9764_v58 }
 0x225   :  { %13867 = vst [vmem:[#allocation36_spill] sm:$0xff] %v11218_v1  ;;  %v8456_v63 = vpop.f32.mrb[158].mxu0  ;;  %v9770_v38 = vpop.eup %9769  ;;  %9789 = vpow2.f32 %v7867_v56  ;;  %v4658_v36 = vmul.f32 %v3941_v52, %v3434_v8  ;;  %8601 = vmatpush1.bf16.msra.mxu1 %v11218_v1  ;;  %v244_v56 = vld [vmem:[%s13810_s2 + $0x50] sm:$0xff] }
 0x226   :  { %v1947_v60 = vpop.f32.mrb[159].mxu0  ;;  %v9772_v49 = vpop.eup %9771  ;;  %9791 = vpow2.f32 %v7870_v23  ;;  %v7871_v61 = vmul.f32 -1.442695, %v1945_v55  ;;  %v1956_v7 = vadd.f32 %v8456_v63, %v393_v62  ;;  %8586 = vmatprep.subr.bf16.mxu1 %v13864_v32 }
 0x227   :  { %v9774_v0 = vpop.eup %9773  ;;  %9793 = vpow2.f32 %v7868_v4  ;;  %v3956_v23 = vpop.permute.xlu0 %3955  ;;  %v1948_v8 = vadd.f32 %v1947_v60, %v391_v17  ;;  %v11237_v59 = vpack.c.bf16 %v4658_v36, %v4657_v51  ;;  %v2750_v4 = vadd.f32 1.0, %v10845_v6  ;;  %v3438_v51 = vld [vmem:[%s13812_s3 + $0x278] sm:$0xff]  ;;  %v3437_v6 = vld [vmem:[%s13812_s3 + $0x270] sm:$0xff] }
 0x228   :  { %v9776_v53 = vpop.eup %9775  ;;  %v2895_v19 = vadd.f32 1.0, %v9774_v0  ;;  %v3951_v62 = vpop.permute.xlu1 %3950  ;;  %9795 = vpow2.f32 %v7873_v27  ;;  %4270 = vperm.xlu1 %8992, %v9772_v49   ;;  %4275 = vperm.xlu0 %8991, %v9768_v57   ;;  %v4659_v17 = vmul.f32 %v3946_v54, %v3435_v48  ;;  %v7874_v60 = vmul.f32 -1.442695, %v1956_v7 }
 0x229   :  { %13868 = vst [vmem:[#allocation37_spill] sm:$0xff] %v11237_v59  ;;  %v9778_v58 = vpop.eup %9777  ;;  %v4660_v52 = vmul.f32 %v3951_v62, %v3436_v5  ;;  %9797 = vpow2.f32 %v7871_v61  ;;  %8602 = vmatpush1.bf16.msra.mxu1 %v11237_v59  ;;  %v11244_v36 = vpop.f32.mrb[160].mxu0  ;;  %v7872_v49 = vmul.f32 -1.442695, %v1948_v8  ;;  %v1361_v61 = vadd.f32 %v10539_v9, %v244_v56 }
 0x22a   :  { %v9780_v55 = vpop.eup %9779  ;;  %9799 = vrcp.f32 %v2895_v19  ;;  %v2896_v63 = vadd.f32 1.0, %v9778_v58  ;;  %8587 = vmatprep.subr.bf16.mxu1 %v13864_v32  ;;  %v11250_v54 = vpop.f32.mrb[161].mxu0  ;;  %v2898_v7 = vadd.f32 1.0, %v9776_v53  ;;  %v2748_v62 = vadd.f32 1.0, %v10856_v2  ;;  %v245_v58 = vld [vmem:[%s13810_s2 + $0x58] sm:$0xff]  ;;  %v3440_v2 = vld [vmem:[%s13812_s3 + $0x288] sm:$0xff] }
 0x22b   :  { %v9782_v27 = vpop.eup %9781  ;;  %9801 = vrcp.f32 %v2897_v42  ;;  %v3966_v57 = vpop.permute.xlu0 %3965  ;;  %v11253_v0 = vpack.c.bf16 %v4660_v52, %v4659_v17  ;;  %v1353_v8 = vadd.f32 %v10541_v10, %v242_v3  ;;  %v4661_v53 = vmul.f32 %v3956_v23, %v3437_v6  ;;  %v3439_v3 = vld [vmem:[%s13812_s3 + $0x280] sm:$0xff]  ;;  %v243_v23 = vld [vmem:[%s13810_s2 + $0x48] sm:$0xff] }
 0x22c   :  { %v9784_v5 = vpop.eup %9783  ;;  %9803 = vrcp.f32 %v2896_v63  ;;  %v3961_v48 = vpop.permute.xlu1 %3960  ;;  %4280 = vperm.xlu1 %8992, %v9770_v38   ;;  %4285 = vperm.xlu0 %8991, %v9782_v27   ;;  %v7725_v63 = vmul.f32 -1.442695, %v1361_v61 }
 0x22d   :  { %13869 = vst [vmem:[#allocation38_spill] sm:$0xff] %v11253_v0  ;;  %v11255_v19 = vpop.f32.mrb[162].mxu0  ;;  %v9786_v42 = vpop.eup %9785  ;;  %9805 = vrcp.f32 %v2750_v4  ;;  %v4662_v59 = vmul.f32 %v3961_v48, %v3438_v51  ;;  %8603 = vmatpush1.bf16.msra.mxu1 %v11253_v0  ;;  %v2901_v10 = vadd.f32 1.0, %v9784_v5  ;;  %v7723_v6 = vmul.f32 -1.442695, %v1353_v8 }
 0x22e   :  { %v11262_v9 = vpop.f32.mrb[163].mxu0  ;;  %v9788_v56 = vpop.eup %9787  ;;  %9807 = vpow2.f32 %v7874_v60  ;;  %8588 = vmatprep.subr.bf16.mxu1 %v13864_v32  ;;  %v1364_v48 = vadd.f32 %v10546_v12, %v245_v58  ;;  %v4663_v0 = vmul.f32 %v3966_v57, %v3439_v3  ;;  %v248_v58 = vld [vmem:[%s13810_s2 + $0x70] sm:$0xff] }
 0x22f   :  { %v9790_v4 = vpop.eup %9789  ;;  %9809 = vpow2.f32 %v7872_v49  ;;  %v3976_v38 = vpop.permute.xlu0 %3975  ;;  %v11275_v60 = vpack.c.bf16 %v4662_v59, %v4661_v53  ;;  %v3442_v59 = vld [vmem:[%s13812_s3 + $0x298] sm:$0xff] }
 0x230   :  { %v9792_v52 = vpop.eup %9791  ;;  %9811 = vrcp.f32 %v2898_v7  ;;  %v2899_v17 = vadd.f32 1.0, %v9790_v4  ;;  %v3971_v51 = vpop.permute.xlu1 %3970  ;;  %4290 = vperm.xlu1 %8992, %v9788_v56   ;;  %4295 = vperm.xlu0 %8991, %v9780_v55   ;;  %v3441_v55 = vld [vmem:[%s13812_s3 + $0x290] sm:$0xff] }
 0x231   :  { %13870 = vst [vmem:[#allocation39_spill] sm:$0xff] %v11275_v60  ;;  %v9794_v27 = vpop.eup %9793  ;;  %9813 = vrcp.f32 %v2748_v62  ;;  %v4664_v49 = vmul.f32 %v3971_v51, %v3440_v2  ;;  %8604 = vmatpush1.bf16.msra.mxu1 %v11275_v60  ;;  %v11282_v7 = vpop.f32.mrb[164].mxu0  ;;  %v2902_v62 = vadd.f32 1.0, %v9792_v52  ;;  %v1356_v52 = vadd.f32 %v10551_v14, %v243_v23  ;;  %v249_v23 = vld [vmem:[%s13810_s2 + $0x78] sm:$0xff] }
 0x232   :  { %v9796_v5 = vpop.eup %9795  ;;  %9815 = vrcp.f32 %v2899_v17  ;;  %v2900_v61 = vadd.f32 1.0, %v9794_v27  ;;  %8589 = vmatprep.subr.bf16.mxu1 %v13864_v32  ;;  %v11288_v8 = vpop.f32.mrb[165].mxu0  ;;  %v246_v17 = vld [vmem:[%s13810_s2 + $0x60] sm:$0xff] }
 0x233   :  { %v9798_v53 = vpop.eup %9797  ;;  %9817 = vrcp.f32 %v2901_v10  ;;  %v3986_v12 = vpop.permute.xlu0 %3985  ;;  %v11293_v2 = vpack.c.bf16 %v4664_v49, %v4663_v0  ;;  %v7726_v0 = vmul.f32 -1.442695, %v1364_v48  ;;  %v4665_v49 = vmul.f32 %v3976_v38, %v3441_v55 }
 0x234   :  { %v9800_v57 = vpop.eup %9799  ;;  %9819 = vrcp.f32 %v2900_v61  ;;  %v2903_v56 = vadd.f32 1.0, %v9798_v53  ;;  %v3981_v4 = vpop.permute.xlu1 %3980  ;;  %4300 = vperm.xlu1 %8992, %v9786_v42   ;;  %v2905_v42 = vadd.f32 1.0, %v9796_v5  ;;  %v1369_v60 = vadd.f32 %v10557_v16, %v246_v17  ;;  %v3445_v16 = vld [vmem:[%s13812_s3 + $0x2b0] sm:$0xff] }
 0x235   :  { %13871 = vst [vmem:[#allocation40_spill] sm:$0xff] %v11293_v2  ;;  %v11295_v10 = vpop.f32.mrb[166].mxu0  ;;  %v9802_v3 = vpop.eup %9801  ;;  %9821 = vpow2.f32 %v7725_v63  ;;  %v4666_v51 = vmul.f32 %v3981_v4, %v3442_v59  ;;  %4305 = vperm.xlu0 %8991, %v9800_v57   ;;  %8605 = vmatpush1.bf16.msra.mxu1 %v11293_v2  ;;  %v3444_v63 = vld [vmem:[%s13812_s3 + $0x2a8] sm:$0xff]  ;;  %v2753_v57 = vadd.f32 1.0, %v10861_v13  ;;  %v7724_v4 = vmul.f32 -1.442695, %v1356_v52 }
 0x236   :  { %v11301_v27 = vpop.f32.mrb[167].mxu0  ;;  %v9804_v61 = vpop.eup %9803  ;;  %9823 = vpow2.f32 %v7723_v6  ;;  %v3443_v6 = vld [vmem:[%s13812_s3 + $0x2a0] sm:$0xff]  ;;  %8590 = vmatprep.subr.bf16.mxu1 %v13864_v32  ;;  %v1377_v2 = vadd.f32 %v10555_v15, %v248_v58  ;;  %v2751_v15 = vadd.f32 1.0, %v10864_v25  ;;  %v247_v58 = vld [vmem:[%s13810_s2 + $0x68] sm:$0xff]  ;;  %v1380_v17 = vadd.f32 %v10562_v18, %v249_v23  ;;  %v252_v25 = vld [vmem:[%s13810_s2 + $0x90] sm:$0xff] }
 0x237   :  { %13872 = vst [vmem:[#allocation41_spill] sm:$0xff] %v11301_v27  ;;  %v11307_v14 = vpop.eup %9805  ;;  %9825 = vrcp.f32 %v2902_v62  ;;  %v3996_v38 = vpop.permute.xlu0 %3995  ;;  %v11316_v59 = vpack.c.bf16 %v4666_v51, %v4665_v49  ;;  %v4667_v27 = vmul.f32 %v3986_v12, %v3443_v6 }
 0x238   :  { %v9808_v48 = vpop.eup %9807  ;;  %9827 = vrcp.f32 %v2903_v56  ;;  %v3991_v53 = vpop.permute.xlu1 %3990  ;;  %4310 = vperm.xlu1 %8992, %v9804_v61   ;;  %v3446_v56 = vld [vmem:[%s13812_s3 + $0x2b8] sm:$0xff]  ;;  %v7729_v6 = vmul.f32 -1.442695, %v1377_v2  ;;  %v3448_v2 = vld [vmem:[%s13812_s3 + $0x2c8] sm:$0xff] }
 0x239   :  { %13873 = vst [vmem:[#allocation42_spill] sm:$0xff] %v11316_v59  ;;  %v9810_v55 = vpop.eup %9809  ;;  %v4668_v62 = vmul.f32 %v3991_v53, %v3444_v63  ;;  %4315 = vperm.xlu0 %8991, %v9802_v3   ;;  %9829 = vpow2.f32 %v7726_v0  ;;  %8606 = vmatpush1.bf16.msra.mxu1 %v11316_v59  ;;  %v11325_v51 = vpop.f32.mrb[168].mxu0  ;;  %v2906_v61 = vadd.f32 1.0, %v9808_v48  ;;  %v250_v53 = vld [vmem:[%s13810_s2 + $0x80] sm:$0xff]  ;;  %v4669_v48 = vmul.f32 %v3996_v38, %v3445_v16 }
 0x23a   :  { %v9812_v5 = vpop.eup %9811  ;;  %v2904_v1 = vadd.f32 1.0, %v9810_v55  ;;  %9831 = vrcp.f32 %v2905_v42  ;;  %8591 = vmatprep.subr.bf16.mxu1 %v13864_v32  ;;  %v11337_v3 = vpop.f32.mrb[169].mxu0  ;;  %v1393_v16 = vadd.f32 %v10571_v21, %v252_v25  ;;  %v1385_v59 = vadd.f32 %v10573_v22, %v250_v53  ;;  %v251_v21 = vld [vmem:[%s13810_s2 + $0x88] sm:$0xff]  ;;  %v256_v25 = vld [vmem:[%s13810_s2 + $0xb0] sm:$0xff] }
 0x23b   :  { %v11327_v13 = vpop.eup %9813  ;;  %v4006_v12 = vpop.permute.xlu0 %4005  ;;  %v11343_v0 = vpack.c.bf16 %v4668_v62, %v4667_v27  ;;  %v1372_v27 = vadd.f32 %v10567_v20, %v247_v58  ;;  %v2754_v62 = vadd.f32 1.0, %v10870_v30  ;;  %v3449_v22 = vld [vmem:[%s13812_s3 + $0x2d0] sm:$0xff] }
 0x23c   :  { %v9816_v52 = vpop.eup %9815  ;;  %9833 = vrcp.f32 %v2904_v1  ;;  %v4001_v49 = vpop.permute.xlu1 %4000  ;;  %4320 = vperm.xlu1 %8992, %v9812_v5   ;;  %v7727_v1 = vmul.f32 -1.442695, %v1369_v60  ;;  %v253_v5 = vld [vmem:[%s13810_s2 + $0x98] sm:$0xff]  ;;  %v3447_v60 = vld [vmem:[%s13812_s3 + $0x2c0] sm:$0xff] }
 0x23d   :  { %13874 = vst [vmem:[#allocation43_spill] sm:$0xff] %v11343_v0  ;;  %v11345_v63 = vpop.f32.mrb[170].mxu0  ;;  %v9818_v42 = vpop.eup %9817  ;;  %9835 = vpow2.f32 %v7724_v4  ;;  %v4670_v55 = vmul.f32 %v4001_v49, %v3446_v56  ;;  %4325 = vperm.xlu0 %8991, %v9816_v52   ;;  %8607 = vmatpush1.bf16.msra.mxu1 %v11343_v0  ;;  %v7730_v56 = vmul.f32 -1.442695, %v1380_v17  ;;  %v7728_v0 = vmul.f32 -1.442695, %v1372_v27 }
 0x23e   :  { %v11350_v18 = vpop.f32.mrb[171].mxu0  ;;  %v9820_v23 = vpop.eup %9819  ;;  %9837 = vrcp.f32 %v2753_v57  ;;  %8592 = vmatprep.subr.bf16.mxu1 %v13864_v32  ;;  %v2752_v57 = vadd.f32 1.0, %v10887_v50  ;;  %v3450_v50 = vld [vmem:[%s13812_s3 + $0x2d8] sm:$0xff]  ;;  %v1396_v53 = vadd.f32 %v10578_v24, %v253_v5 }
 0x23f   :  { %13875 = vst [vmem:[#allocation44_spill] sm:$0xff] %v11350_v18  ;;  %v9822_v4 = vpop.eup %9821  ;;  %9839 = vrcp.f32 %v2751_v15  ;;  %v4016_v20 = vpop.permute.xlu0 %4015  ;;  %v11366_v58 = vpack.c.bf16 %v4670_v55, %v4669_v48  ;;  %v4671_v18 = vmul.f32 %v4006_v12, %v3447_v60  ;;  %v254_v55 = vld [vmem:[%s13810_s2 + $0xa0] sm:$0xff] }
 0x240   :  { %v9824_v38 = vpop.eup %9823  ;;  %9841 = vrcp.f32 %v2906_v61  ;;  %v4011_v15 = vpop.permute.xlu1 %4010  ;;  %4330 = vperm.xlu1 %8992, %v9820_v23   ;;  %v2757_v61 = vadd.f32 1.0, %v9822_v4  ;;  %v257_v23 = vld [vmem:[%s13810_s2 + $0xb8] sm:$0xff] }
 0x241   :  { %13876 = vst [vmem:[#allocation45_spill] sm:$0xff] %v11366_v58  ;;  %v9826_v30 = vpop.eup %9825  ;;  %9843 = vpow2.f32 %v7729_v6  ;;  %v4672_v52 = vmul.f32 %v4011_v15, %v3448_v2  ;;  %4335 = vperm.xlu0 %8991, %v9818_v42   ;;  %8608 = vmatpush1.bf16.msra.mxu1 %v11366_v58  ;;  %v11374_v17 = vpop.f32.mrb[172].mxu0  ;;  %v2755_v4 = vadd.f32 1.0, %v9824_v38  ;;  %v1388_v15 = vadd.f32 %v10583_v26, %v251_v21  ;;  %v3452_v38 = vld [vmem:[%s13812_s3 + $0x2e8] sm:$0xff]  ;;  %v3451_v26 = vld [vmem:[%s13812_s3 + $0x2e0] sm:$0xff] }
 0x242   :  { %v9828_v49 = vpop.eup %9827  ;;  %9845 = vpow2.f32 %v7727_v1  ;;  %8593 = vmatprep.subr.bf16.mxu1 %v13864_v32  ;;  %v11386_v42 = vpop.f32.mrb[173].mxu0 }
 0x243   :  { %9847 = vrcp.f32 %v2754_v62  ;;  %v4026_v12 = vpop.permute.xlu0 %4025  ;;  %v9830_v6 = vpop.eup %9829  ;;  %v11395_v1 = vpack.c.bf16 %v4672_v52, %v4671_v18  ;;  %v7733_v62 = vmul.f32 -1.442695, %v1393_v16  ;;  %v255_v18 = vld [vmem:[%s13810_s2 + $0xa8] sm:$0xff]  ;;  %v4673_v52 = vmul.f32 %v4016_v20, %v3449_v22 }
 0x244   :  { %9849 = vrcp.f32 %v2752_v57  ;;  %v4021_v27 = vpop.permute.xlu1 %4020  ;;  %v11397_v48 = vpop.f32.mrb[174].mxu0  ;;  %4340 = vperm.xlu1 %8992, %v9826_v30   ;;  %v7731_v57 = vmul.f32 -1.442695, %v1385_v59  ;;  %v2758_v30 = vadd.f32 1.0, %v9830_v6  ;;  %v1409_v16 = vadd.f32 %v10591_v28, %v256_v25 }
 0x245   :  { %13877 = vst [vmem:[#allocation46_spill] sm:$0xff] %v11395_v1  ;;  %v9832_v2 = vpop.eup %9831  ;;  %9851 = vpow2.f32 %v7730_v56  ;;  %v4674_v60 = vmul.f32 %v4021_v27, %v3450_v50  ;;  %4345 = vperm.xlu0 %8991, %v9828_v49   ;;  %v11399_v24 = vpop.f32.mrb[175].mxu0  ;;  %8609 = vmatpush1.bf16.msra.mxu1 %v11395_v1  ;;  %v7734_v20 = vmul.f32 -1.442695, %v1396_v53  ;;  %v1401_v49 = vadd.f32 %v10593_v29, %v254_v55  ;;  %v3454_v29 = vld [vmem:[%s13812_s3 + $0x2f8] sm:$0xff] }
 0x246   :  { %v9834_v5 = vpop.eup %9833  ;;  %9853 = vpow2.f32 %v7728_v0  ;;  %8594 = vmatprep.subr.bf16.mxu1 %v13864_v32  ;;  %v1412_v50 = vadd.f32 %v10598_v31, %v257_v23  ;;  %v7732_v6 = vmul.f32 -1.442695, %v1388_v15  ;;  %v1404_v27 = vadd.f32 %v10603_v33, %v255_v18  ;;  %v260_v23 = vld [vmem:[%s13810_s2 + $0xd0] sm:$0xff] }
 0x247   :  { %v9836_v56 = vpop.eup %9835  ;;  %9855 = vrcp.f32 %v2757_v61  ;;  %v4036_v59 = vpop.permute.xlu0 %4035  ;;  %v11418_v21 = vpack.c.bf16 %v4674_v60, %v4673_v52  ;;  %v4675_v1 = vmul.f32 %v4026_v12, %v3451_v26  ;;  %v7737_v55 = vmul.f32 -1.442695, %v1409_v16  ;;  %v3453_v33 = vld [vmem:[%s13812_s3 + $0x2f0] sm:$0xff]  ;;  %v258_v52 = vld [vmem:[%s13810_s2 + $0xc0] sm:$0xff]  ;;  %v261_v26 = vld [vmem:[%s13810_s2 + $0xd8] sm:$0xff] }
 0x248   :  { %v11414_v0 = vpop.eup %9837  ;;  %v4031_v61 = vpop.permute.xlu1 %4030  ;;  %9857 = vrcp.f32 %v2755_v4  ;;  %4350 = vperm.xlu1 %8992, %v9834_v5   ;;  %v7735_v4 = vmul.f32 -1.442695, %v1401_v49  ;;  %v2756_v16 = vadd.f32 1.0, %v9836_v56  ;;  %v3456_v49 = vld [vmem:[%s13812_s3 + $0x308] sm:$0xff]  ;;  %v1425_v56 = vadd.f32 %v10607_v34, %v260_v23  ;;  %v9100_v23 = vld [vmem:[%s13811_s4 + $0xe0] ss:$52 sps:$4 sm:$0xff]  }
 0x249   :  { %13878 = vst [vmem:[#allocation47_spill] sm:$0xff] %v11418_v21  ;;  %v11420_v22 = vpop.eup %9839  ;;  %v4676_v28 = vmul.f32 %v4031_v61, %v3452_v38  ;;  %4355 = vperm.xlu0 %8991, %v9832_v2   ;;  %9859 = vpow2.f32 %v7733_v62  ;;  %8610 = vmatpush1.bf16.msra.mxu1 %v11418_v21  ;;  %v11427_v31 = vpop.f32.mrb[176].mxu0  ;;  %v7738_v62 = vmul.f32 -1.442695, %v1412_v50 }
 0x24a   :  { %v9842_v25 = vpop.eup %9841  ;;  %9861 = vrcp.f32 %v2758_v30  ;;  %8595 = vmatprep.subr.bf16.mxu1 %v13864_v32  ;;  %v11436_v12 = vpop.f32.mrb[177].mxu0 }
 0x24b   :  { %v9844_v53 = vpop.eup %9843  ;;  %9863 = vpow2.f32 %v7731_v57  ;;  %v11438_v60 = vpack.c.bf16 %v4676_v28, %v4675_v1  ;;  %v4046_v15 = vpop.permute.xlu0 %4045  ;;  %v7736_v1 = vmul.f32 -1.442695, %v1404_v27  ;;  %v1417_v27 = vadd.f32 %v10609_v35, %v258_v52 }
 0x24c   :  { %v9846_v2 = vpop.eup %9845  ;;  %v4041_v5 = vpop.permute.xlu1 %4040  ;;  %9865 = vpow2.f32 %v7734_v20  ;;  %4360 = vperm.xlu1 %8992, %v9842_v25   ;;  %v4677_v20 = vmul.f32 %v4036_v59, %v3453_v33  ;;  %v2761_v61 = vadd.f32 1.0, %v9844_v53  ;;  %v259_v25 = vld [vmem:[%s13810_s2 + $0xc8] sm:$0xff]  ;;  %v3455_v59 = vld [vmem:[%s13812_s3 + $0x300] sm:$0xff]  ;;  %v1428_v35 = vadd.f32 %v10614_v37, %v261_v26 }
 0x24d   :  { %13879 = vst [vmem:[#allocation48_spill] sm:$0xff] %v11438_v60  ;;  %v11440_v18 = vpop.eup %9847  ;;  %v4678_v38 = vmul.f32 %v4041_v5, %v3454_v29  ;;  %3565 = vperm.xlu0 %8991, %v10909_v44   ;;  %v11446_v30 = vpop.f32.mrb[178].mxu0  ;;  %9867 = vpow2.f32 %v7732_v6  ;;  %8611 = vmatpush1.bf16.msra.mxu1 %v11438_v60  ;;  %v2759_v28 = vadd.f32 1.0, %v9846_v2  ;;  %v1420_v52 = vadd.f32 %v10619_v39, %v259_v25  ;;  %v9103_v37 = vld [vmem:[%s13811_s4 + $0x14c] ss:$52 sps:$4 sm:$0xff]  }
 0x24e   :  { %v11448_v57 = vpop.eup %9849  ;;  %v11457_v50 = vpop.f32.mrb[179].mxu0  ;;  %9869 = vpow2.f32 %v7737_v55  ;;  %8596 = vmatprep.subr.bf16.mxu1 %v13864_v32  ;;  %v7739_v26 = vmul.f32 -1.442695, %v1417_v27 }
 0x24f   :  { %v9852_v44 = vpop.eup %9851  ;;  %9871 = vpow2.f32 %v7735_v4  ;;  %v11468_v29 = vpack.c.bf16 %v4678_v38, %v4677_v20  ;;  %v4056_v55 = vpop.permute.xlu0 %4055  ;;  %v4679_v4 = vmul.f32 %v4046_v15, %v3455_v59  ;;  %v3457_v38 = vld [vmem:[%s13812_s3 + $0x310] sm:$0xff] }
 0x250   :  { %v9854_v6 = vpop.eup %9853  ;;  %v4051_v53 = vpop.permute.xlu1 %4050  ;;  %9873 = vpow2.f32 %v7738_v62  ;;  %3570 = vperm.xlu1 %8992, %v11327_v13   ;;  %v2762_v2 = vadd.f32 1.0, %v9852_v44  ;;  %v3458_v62 = vld [vmem:[%s13812_s3 + $0x318] sm:$0xff] }
 0x251   :  { %13880 = vst [vmem:[#allocation49_spill] sm:$0xff] %v11468_v29  ;;  %v11470_v33 = vpop.eup %9855  ;;  %v4680_v34 = vmul.f32 %v4051_v53, %v3456_v49  ;;  %3575 = vperm.xlu0 %8991, %v10889_v11   ;;  %9875 = vpow2.f32 %v7736_v1  ;;  %8612 = vmatpush1.bf16.msra.mxu1 %v11468_v29  ;;  %v11482_v5 = vpop.f32.mrb[180].mxu0  ;;  %v7741_v11 = vmul.f32 -1.442695, %v1425_v56  ;;  %v2760_v39 = vadd.f32 1.0, %v9854_v6 }
 0x252   :  { %v11484_v13 = vpop.eup %9857  ;;  %9877 = vrcp.f32 %v2756_v16  ;;  %6791 = vmatprep.subr.bf16.mxu1 %v13864_v32  ;;  %v11494_v15 = vpop.f32.mrb[181].mxu0  ;;  %v7742_v53 = vmul.f32 -1.442695, %v1428_v35  ;;  %v4681_v29 = vmul.f32 %v4056_v55, %v3457_v38 }
 0x253   :  { %v9860_v1 = vpop.eup %9859  ;;  %9879 = vrcp.f32 %v2761_v61  ;;  %v4835_v20 = vpack.c.bf16 %v4680_v34, %v4679_v4  ;;  %v4066_v49 = vpop.permute.xlu0 %4065  ;;  %v3460_v61 = vld [vmem:[%s13812_s3 + $0x328] sm:$0xff]  ;;  %v3459_v34 = vld [vmem:[%s13812_s3 + $0x320] sm:$0xff] }
 0x254   :  { %v4061_v16 = vpop.permute.xlu1 %4060  ;;  %v11496_v44 = vpop.eup %9861  ;;  %9881 = vrcp.f32 %v2759_v28  ;;  %3580 = vperm.xlu1 %8992, %v11307_v14   ;;  %6671 = vmatmul.mubr.bf16.vlgmr.msra.gmra.mrb[0].mxu1 %v9100_v23  ;;  %v2765_v6 = vadd.f32 1.0, %v9860_v1  ;;  %v7740_v14 = vmul.f32 -1.442695, %v1420_v52  ;;  %v9105_v52 = vld [vmem:[%s13811_s4 + $0x148] ss:$52 sps:$4 sm:$0xff]   ;;  %v4683_v1 = vmul.f32 %v4066_v49, %v3459_v34  ;;  %v3461_v49 = vld [vmem:[%s13812_s3 + $0x330] sm:$0xff] }
 0x255   :  { %v4682_v56 = vmul.f32 %v4061_v16, %v3458_v62  ;;  %v11499_v25 = vpop.f32.mrb[182].mxu0  ;;  %v9864_v59 = vpop.eup %9863  ;;  %9883 = vrcp.f32 %v2762_v2  ;;  %6792 = vmatpush1.bf16.msra.mxu1 %v4835_v20  ;;  %3585 = vperm.xlu0 %8991, %v11420_v22   ;;  %v264_v62 = vld [vmem:[%s13810_s2 + $0xf0] sm:$0xff] }
 0x256   :  { %v11505_v27 = vpop.f32.mrb[183].mxu0  ;;  %v9866_v28 = vpop.eup %9865  ;;  %9885 = vpow2.f32 %v7741_v11  ;;  %6793 = vmatprep.subr.bf16.mxu1 %v13864_v32  ;;  %6678 = vmatprep.mubr.bf16.mxu1 %v9103_v37  ;;  %v2763_v4 = vadd.f32 1.0, %v9864_v59 }
 0x257   :  { %v9868_v55 = vpop.eup %9867  ;;  %9887 = vpow2.f32 %v7739_v26  ;;  %v4836_v22 = vpack.c.bf16 %v4682_v56, %v4681_v29  ;;  %v4076_v2 = vpop.permute.xlu0 %4075  ;;  %v2766_v37 = vadd.f32 1.0, %v9866_v28  ;;  %v262_v29 = vld [vmem:[%s13810_s2 + $0xe0] sm:$0xff]  ;;  %v3462_v26 = vld [vmem:[%s13812_s3 + $0x338] sm:$0xff]  ;;  %v263_v28 = vld [vmem:[%s13810_s2 + $0xe8] sm:$0xff] }
 0x258   :  { %v4071_v23 = vpop.permute.xlu1 %4070  ;;  %v9870_v35 = vpop.eup %9869  ;;  %9889 = vrcp.f32 %v2760_v39  ;;  %3590 = vperm.xlu1 %8992, %v11448_v57   ;;  %v2764_v16 = vadd.f32 1.0, %v9868_v55  ;;  %v265_v39 = vld [vmem:[%s13810_s2 + $0xf8] sm:$0xff]  ;;  %v1433_v60 = vadd.f32 %v10625_v41, %v262_v29  ;;  %v3464_v41 = vld [vmem:[%s13812_s3 + $0x348] sm:$0xff] }
 0x259   :  { %v4684_v11 = vmul.f32 %v4071_v23, %v3460_v61  ;;  %v9872_v38 = vpop.eup %9871  ;;  %9891 = vpow2.f32 %v7742_v53  ;;  %6794 = vmatpush1.bf16.msra.mxu1 %v4836_v22  ;;  %3595 = vperm.xlu0 %8991, %v11414_v0   ;;  %v11525_v57 = vpop.f32.mrb[184].mxu0  ;;  %v9106_v0 = vld [vmem:[%s13811_s4 + $0x1b4] ss:$52 sps:$4 sm:$0xff]   ;;  %v2769_v53 = vadd.f32 1.0, %v9870_v35  ;;  %v1441_v61 = vadd.f32 %v10623_v40, %v264_v62 }
 0x25a   :  { %v9874_v20 = vpop.eup %9873  ;;  %9893 = vrcp.f32 %v2765_v6  ;;  %6795 = vmatprep.subr.bf16.mxu1 %v13864_v32  ;;  %v11537_v56 = vpop.f32.mrb[185].mxu0  ;;  %v2767_v23 = vadd.f32 1.0, %v9872_v38  ;;  %v1444_v62 = vadd.f32 %v10630_v43, %v265_v39  ;;  %v1436_v38 = vadd.f32 %v10635_v45, %v263_v28  ;;  %v396_v43 = vld [vmem:[%s13810_s2 + $0x510] sm:$0xff] }
 0x25b   :  { %v9876_v59 = vpop.eup %9875  ;;  %9895 = vpow2.f32 %v7740_v14  ;;  %v4837_v6 = vpack.c.bf16 %v4684_v11, %v4683_v1  ;;  %v4086_v55 = vpop.permute.xlu0 %4085  ;;  %v2770_v40 = vadd.f32 1.0, %v9874_v20  ;;  %v4685_v11 = vmul.f32 %v4076_v2, %v3461_v49  ;;  %v9108_v39 = vld [vmem:[%s13811_s4 + $0x1b0] ss:$52 sps:$4 sm:$0xff]  }
 0x25c   :  { %v4081_v34 = vpop.permute.xlu1 %4080  ;;  %v9878_v22 = vpop.eup %9877  ;;  %9897 = vrcp.f32 %v2763_v4  ;;  %3600 = vperm.xlu1 %8992, %v11440_v18   ;;  %6679 = vmatmul.mubr.bf16.gmra.mrb[4].mxu1 %v9105_v52  ;;  %v2768_v52 = vadd.f32 1.0, %v9876_v59  ;;  %v7745_v2 = vmul.f32 -1.442695, %v1441_v61  ;;  %v7743_v45 = vmul.f32 -1.442695, %v1433_v60  ;;  %v394_v49 = vld [vmem:[%s13810_s2 + $0x500] sm:$0xff] }
 0x25d   :  { %v4686_v21 = vmul.f32 %v4081_v34, %v3462_v26  ;;  %v11545_v35 = vpop.f32.mrb[186].mxu0  ;;  %v11547_v14 = vpop.eup %9879  ;;  %9899 = vrcp.f32 %v2766_v37  ;;  %6796 = vmatpush1.bf16.msra.mxu1 %v4837_v6  ;;  %3605 = vperm.xlu0 %8991, %v11484_v13   ;;  %v3463_v37 = vld [vmem:[%s13812_s3 + $0x340] sm:$0xff]  ;;  %v7746_v59 = vmul.f32 -1.442695, %v1444_v62  ;;  %v3466_v60 = vld [vmem:[%s13812_s3 + $0x358] sm:$0xff]  ;;  %v1969_v61 = vadd.f32 %v11244_v36, %v396_v43 }
 0x25e   :  { %v11554_v4 = vpop.f32.mrb[187].mxu0  ;;  %v9882_v18 = vpop.eup %9881  ;;  %9901 = vrcp.f32 %v2764_v16  ;;  %6797 = vmatprep.subr.bf16.mxu1 %v13864_v32  ;;  %6686 = vmatprep.mubr.bf16.mxu1 %v9106_v0  ;;  %v7744_v34 = vmul.f32 -1.442695, %v1436_v38 }
 0x25f   :  { %v11564_v13 = vpop.eup %9883  ;;  %9903 = vrcp.f32 %v2769_v53  ;;  %v4838_v29 = vpack.c.bf16 %v4686_v21, %v4685_v11  ;;  %v4096_v26 = vpop.permute.xlu0 %4095  ;;  %v268_v21 = vld [vmem:[%s13810_s2 + $0x110] sm:$0xff]  ;;  %v4687_v53 = vmul.f32 %v4086_v55, %v3463_v37 }
 0x260   :  { %v4091_v1 = vpop.permute.xlu1 %4090  ;;  %v9886_v20 = vpop.eup %9885  ;;  %9905 = vrcp.f32 %v2767_v23  ;;  %3610 = vperm.xlu1 %8992, %v9878_v22   ;;  %v3465_v22 = vld [vmem:[%s13812_s3 + $0x350] sm:$0xff] }
 0x261   :  { %v4688_v16 = vmul.f32 %v4091_v1, %v3464_v41  ;;  %v9888_v0 = vpop.eup %9887  ;;  %9907 = vrcp.f32 %v2770_v40  ;;  %6798 = vmatpush1.bf16.msra.mxu1 %v4838_v29  ;;  %3615 = vperm.xlu0 %8991, %v11470_v33   ;;  %v11580_v28 = vpop.f32.mrb[188].mxu0  ;;  %v9109_v33 = vld [vmem:[%s13811_s4 + $0x21c] ss:$52 sps:$4 sm:$0xff]   ;;  %v2773_v40 = vadd.f32 1.0, %v9886_v20  ;;  %v1961_v41 = vadd.f32 %v11250_v54, %v394_v49 }
 0x262   :  { %v9890_v6 = vpop.eup %9889  ;;  %9909 = vrcp.f32 %v2768_v52  ;;  %6799 = vmatprep.subr.bf16.mxu1 %v13864_v32  ;;  %v11589_v55 = vpop.f32.mrb[189].mxu0  ;;  %v397_v52 = vld [vmem:[%s13810_s2 + $0x518] sm:$0xff]  ;;  %v2771_v37 = vadd.f32 1.0, %v9888_v0  ;;  %v1457_v54 = vadd.f32 %v10639_v46, %v268_v21  ;;  %v4689_v20 = vmul.f32 %v4096_v26, %v3465_v22  ;;  %v266_v46 = vld [vmem:[%s13810_s2 + $0x100] sm:$0xff] }
 0x263   :  { %v9892_v23 = vpop.eup %9891  ;;  %9911 = vpow2.f32 %v7745_v2  ;;  %v4839_v36 = vpack.c.bf16 %v4688_v16, %v4687_v53  ;;  %v4106_v11 = vpop.permute.xlu0 %4105  ;;  %v395_v2 = vld [vmem:[%s13810_s2 + $0x508] sm:$0xff]  ;;  %v7877_v16 = vmul.f32 -1.442695, %v1969_v61  ;;  %v1972_v26 = vadd.f32 %v11255_v19, %v397_v52  ;;  %v269_v21 = vld [vmem:[%s13810_s2 + $0x118] sm:$0xff] }
 0x264   :  { %v4101_v62 = vpop.permute.xlu1 %4100  ;;  %v11595_v38 = vpop.eup %9893  ;;  %9913 = vpow2.f32 %v7743_v45  ;;  %3620 = vperm.xlu1 %8992, %v11496_v44   ;;  %6687 = vmatmul.mubr.bf16.gmra.mrb[8].mxu1 %v9108_v39  ;;  %v3468_v45 = vld [vmem:[%s13812_s3 + $0x368] sm:$0xff]  ;;  %v400_v44 = vld [vmem:[%s13810_s2 + $0x530] sm:$0xff]  ;;  %v2774_v0 = vadd.f32 1.0, %v9892_v23  ;;  %v1964_v22 = vadd.f32 %v11262_v9, %v395_v2  ;;  %v1449_v9 = vadd.f32 %v10641_v47, %v266_v46  ;;  %v13881_v2 = vld [vmem:[#allocation2_spill] sm:$0xff] }
 0x265   :  { %v4690_v43 = vmul.f32 %v4101_v62, %v3466_v60  ;;  %v11601_v29 = vpop.f32.mrb[190].mxu0  ;;  %v9896_v1 = vpop.eup %9895  ;;  %9915 = vpow2.f32 %v7746_v59  ;;  %6800 = vmatpush1.bf16.msra.mxu1 %v4839_v36  ;;  %3625 = vperm.xlu0 %8991, %v9882_v18   ;;  %v3467_v18 = vld [vmem:[%s13812_s3 + $0x360] sm:$0xff]  ;;  %v267_v19 = vld [vmem:[%s13810_s2 + $0x108] sm:$0xff]  ;;  %v1985_v62 = vadd.f32 %v11282_v7, %v400_v44  ;;  %v3469_v7 = vld [vmem:[%s13812_s3 + $0x370] sm:$0xff]  ;;  %v7878_v47 = vmul.f32 -1.442695, %v1972_v26 }
 0x266   :  { %v11610_v39 = vpop.f32.mrb[191].mxu0  ;;  %v9898_v49 = vpop.eup %9897  ;;  %9917 = vpow2.f32 %v7744_v34  ;;  %6801 = vmatprep.subr.bf16.mxu1 %v13864_v32  ;;  %6694 = vmatprep.mubr.bf16.mxu1 %v9109_v33  ;;  %v7875_v34 = vmul.f32 -1.442695, %v1961_v41  ;;  %v2772_v36 = vadd.f32 1.0, %v9896_v1  ;;  %v7749_v41 = vmul.f32 -1.442695, %v1457_v54 }
 0x267   :  { %v11620_v59 = vpop.eup %9899  ;;  %9919 = vrcp.f32 %v2773_v40  ;;  %v4840_v53 = vpack.c.bf16 %v4690_v43, %v4689_v20  ;;  %v4116_v61 = vpop.permute.xlu0 %4115  ;;  %v9111_v40 = vld [vmem:[%s13811_s4 + $0x218] ss:$52 sps:$4 sm:$0xff]   ;;  %v4691_v43 = vmul.f32 %v4106_v11, %v3467_v18  ;;  %v1460_v1 = vadd.f32 %v13881_v2, %v269_v21 }
 0x268   :  { %v4111_v60 = vpop.permute.xlu1 %4110  ;;  %v11626_v23 = vpop.eup %9901  ;;  %9921 = vrcp.f32 %v2771_v37  ;;  %3630 = vperm.xlu1 %8992, %v9890_v6   ;;  %v3470_v37 = vld [vmem:[%s13812_s3 + $0x378] sm:$0xff]  ;;  %v13882_v54 = vld [vmem:[#allocation3_spill] sm:$0xff]  ;;  %v7881_v21 = vmul.f32 -1.442695, %v1985_v62 }
 0x269   :  { %v4692_v33 = vmul.f32 %v4111_v60, %v3468_v45  ;;  %v11635_v52 = vpop.eup %9903  ;;  %6802 = vmatpush1.bf16.msra.mxu1 %v4840_v53  ;;  %3635 = vperm.xlu0 %8991, %v11547_v14   ;;  %9923 = vpow2.f32 %v7877_v16  ;;  %v9112_v14 = vld [vmem:[%s13811_s4 + $0x284] ss:$52 sps:$4 sm:$0xff]   ;;  %v1452_v20 = vadd.f32 %v13882_v54, %v267_v19  ;;  %v3472_v19 = vld [vmem:[%s13812_s3 + $0x388] sm:$0xff]  ;;  %v404_v54 = vld [vmem:[%s13810_s2 + $0x550] sm:$0xff] }
 0x26a   :  { %v11642_v6 = vpop.eup %9905  ;;  %9925 = vrcp.f32 %v2774_v0  ;;  %6803 = vmatprep.subr.bf16.mxu1 %v13864_v32  ;;  %v7876_v0 = vmul.f32 -1.442695, %v1964_v22  ;;  %v401_v46 = vld [vmem:[%s13810_s2 + $0x538] sm:$0xff]  ;;  %v398_v53 = vld [vmem:[%s13810_s2 + $0x520] sm:$0xff]  ;;  %v4693_v22 = vmul.f32 %v4116_v61, %v3469_v7 }
 0x26b   :  { %v11652_v11 = vpop.eup %9907  ;;  %v4841_v45 = vpack.c.bf16 %v4692_v33, %v4691_v43  ;;  %v4126_v44 = vpop.permute.xlu0 %4125  ;;  %9927 = vpow2.f32 %v7875_v34  ;;  %v7747_v34 = vmul.f32 -1.442695, %v1449_v9  ;;  %v7750_v33 = vmul.f32 -1.442695, %v1460_v1 }
 0x26c   :  { %v4121_v16 = vpop.permute.xlu1 %4120  ;;  %v11658_v18 = vpop.eup %9909  ;;  %9929 = vrcp.f32 %v2772_v36  ;;  %3640 = vperm.xlu1 %8992, %v11564_v13   ;;  %6695 = vmatmul.mubr.bf16.gmra.mrb[12].mxu1 %v9111_v40  ;;  %v399_v13 = vld [vmem:[%s13810_s2 + $0x528] sm:$0xff]  ;;  %v3471_v40 = vld [vmem:[%s13812_s3 + $0x380] sm:$0xff]  ;;  %v7748_v62 = vmul.f32 -1.442695, %v1452_v20 }
 0x26d   :  { %v4694_v26 = vmul.f32 %v4121_v16, %v3470_v37  ;;  %v9912_v60 = vpop.eup %9911  ;;  %9931 = vpow2.f32 %v7749_v41  ;;  %6804 = vmatpush1.bf16.msra.mxu1 %v4841_v45  ;;  %3645 = vperm.xlu0 %8991, %v9898_v49   ;;  %v1988_v49 = vadd.f32 %v11295_v10, %v401_v46  ;;  %v1977_v37 = vadd.f32 %v11288_v8, %v398_v53  ;;  %v13883_v10 = vld [vmem:[#allocation41_spill] sm:$0xff] }
 0x26e   :  { %v9914_v36 = vpop.eup %9913  ;;  %9933 = vpow2.f32 %v7878_v47  ;;  %6805 = vmatprep.subr.bf16.mxu1 %v13864_v32  ;;  %6702 = vmatprep.mubr.bf16.mxu1 %v9112_v14  ;;  %v2777_v1 = vadd.f32 1.0, %v9912_v60  ;;  %v9114_v47 = vld [vmem:[%s13811_s4 + $0x280] ss:$52 sps:$4 sm:$0xff]   ;;  %v1980_v14 = vadd.f32 %v13883_v10, %v399_v13  ;;  %v4695_v8 = vmul.f32 %v4126_v44, %v3471_v40  ;;  %v3474_v16 = vld [vmem:[%s13812_s3 + $0x398] sm:$0xff] }
 0x26f   :  { %v11675_v61 = vpop.eup %9915  ;;  %v4842_v41 = vpack.c.bf16 %v4694_v26, %v4693_v22  ;;  %v4136_v43 = vpop.permute.xlu0 %4135  ;;  %9935 = vpow2.f32 %v7876_v0  ;;  %v2775_v45 = vadd.f32 1.0, %v9914_v36  ;;  %v7882_v26 = vmul.f32 -1.442695, %v1988_v49  ;;  %v9115_v44 = vld [vmem:[%s13811_s4 + $0x2ec] ss:$52 sps:$4 sm:$0xff]  }
 0x270   :  { %v4131_v9 = vpop.permute.xlu1 %4130  ;;  %v9918_v2 = vpop.eup %9917  ;;  %3650 = vperm.xlu1 %8992, %v11626_v23   ;;  %9937 = vpow2.f32 %v7881_v21  ;;  %v3473_v23 = vld [vmem:[%s13812_s3 + $0x390] sm:$0xff]  ;;  %v2001_v13 = vadd.f32 %v11325_v51, %v404_v54  ;;  %v402_v36 = vld [vmem:[%s13810_s2 + $0x540] sm:$0xff]  ;;  %v7880_v49 = vmul.f32 -1.442695, %v1980_v14  ;;  %v3476_v51 = vld [vmem:[%s13812_s3 + $0x3a8] sm:$0xff] }
 0x271   :  { %v4696_v7 = vmul.f32 %v4131_v9, %v3472_v19  ;;  %v11686_v20 = vpop.eup %9919  ;;  %9939 = vpow2.f32 %v7747_v34  ;;  %6806 = vmatpush1.bf16.msra.mxu1 %v4842_v41  ;;  %3655 = vperm.xlu0 %8991, %v11595_v38   ;;  %v11695_v0 = vpop.f32.mrb[192].mxu0  ;;  %v405_v38 = vld [vmem:[%s13810_s2 + $0x558] sm:$0xff]  ;;  %v7879_v19 = vmul.f32 -1.442695, %v1977_v37  ;;  %v2776_v9 = vadd.f32 1.0, %v9918_v2  ;;  %v3475_v10 = vld [vmem:[%s13812_s3 + $0x3a0] sm:$0xff] }
 0x272   :  { %v11697_v46 = vpop.eup %9921  ;;  %9941 = vpow2.f32 %v7750_v33  ;;  %6807 = vmatprep.subr.bf16.mxu1 %v13864_v32  ;;  %v11706_v21 = vpop.f32.mrb[193].mxu0  ;;  %v4697_v37 = vmul.f32 %v4136_v43, %v3473_v23  ;;  %v7885_v54 = vmul.f32 -1.442695, %v2001_v13 }
 0x273   :  { %v9924_v53 = vpop.eup %9923  ;;  %9943 = vpow2.f32 %v7748_v62  ;;  %v4843_v60 = vpack.c.bf16 %v4696_v7, %v4695_v8  ;;  %v4146_v22 = vpop.permute.xlu0 %4145 }
 0x274   :  { %v4141_v34 = vpop.permute.xlu1 %4140  ;;  %v11712_v33 = vpop.eup %9925  ;;  %9945 = vrcp.f32 %v2777_v1  ;;  %3660 = vperm.xlu1 %8992, %v11620_v59   ;;  %6703 = vmatmul.mubr.bf16.gmra.mrb[16].mxu1 %v9114_v47  ;;  %v2004_v1 = vadd.f32 %v11345_v63, %v405_v38  ;;  %v2909_v47 = vadd.f32 1.0, %v9924_v53  ;;  %v4699_v38 = vmul.f32 %v4146_v22, %v3475_v10  ;;  %v3477_v53 = vld [vmem:[%s13812_s3 + $0x3b0] sm:$0xff] }
 0x275   :  { %v4698_v40 = vmul.f32 %v4141_v34, %v3474_v16  ;;  %v11715_v41 = vpop.f32.mrb[194].mxu0  ;;  %v9928_v62 = vpop.eup %9927  ;;  %9947 = vrcp.f32 %v2775_v45  ;;  %6808 = vmatpush1.bf16.msra.mxu1 %v4843_v60  ;;  %3665 = vperm.xlu0 %8991, %v11642_v6   ;;  %v1993_v6 = vadd.f32 %v11337_v3, %v402_v36  ;;  %v403_v45 = vld [vmem:[%s13810_s2 + $0x548] sm:$0xff]  ;;  %v406_v34 = vld [vmem:[%s13810_s2 + $0x560] sm:$0xff]  ;;  %v13884_v36 = vld [vmem:[#allocation44_spill] sm:$0xff] }
 0x276   :  { %v11722_v7 = vpop.f32.mrb[195].mxu0  ;;  %v11724_v59 = vpop.eup %9929  ;;  %9949 = vpow2.f32 %v7882_v26  ;;  %6809 = vmatprep.subr.bf16.mxu1 %v13864_v32  ;;  %6710 = vmatprep.mubr.bf16.mxu1 %v9115_v44  ;;  %v2907_v23 = vadd.f32 1.0, %v9928_v62  ;;  %v9117_v3 = vld [vmem:[%s13811_s4 + $0x2e8] ss:$52 sps:$4 sm:$0xff]   ;;  %v408_v26 = vld [vmem:[%s13810_s2 + $0x570] sm:$0xff] }
 0x277   :  { %v11731_v43 = vpop.eup %9931  ;;  %v4844_v2 = vpack.c.bf16 %v4698_v40, %v4697_v37  ;;  %9951 = vpow2.f32 %v7879_v19  ;;  %v4156_v14 = vpop.permute.xlu0 %4155  ;;  %v7886_v60 = vmul.f32 -1.442695, %v2004_v1  ;;  %v7883_v22 = vmul.f32 -1.442695, %v1993_v6 }
 0x278   :  { %v4151_v63 = vpop.permute.xlu1 %4150  ;;  %v9934_v8 = vpop.eup %9933  ;;  %3670 = vperm.xlu1 %8992, %v11658_v18   ;;  %9953 = vpow2.f32 %v7880_v49  ;;  %v3478_v18 = vld [vmem:[%s13812_s3 + $0x3b8] sm:$0xff]  ;;  %v1996_v40 = vadd.f32 %v13884_v36, %v403_v45  ;;  %v2017_v10 = vadd.f32 %v11374_v17, %v408_v26  ;;  %v2009_v45 = vadd.f32 %v11386_v42, %v406_v34  ;;  %v3480_v17 = vld [vmem:[%s13812_s3 + $0x3c8] sm:$0xff]  ;;  %v3479_v42 = vld [vmem:[%s13812_s3 + $0x3c0] sm:$0xff] }
 0x279   :  { %v4700_v16 = vmul.f32 %v4151_v63, %v3476_v51  ;;  %v9936_v44 = vpop.eup %9935  ;;  %9955 = vrcp.f32 %v2776_v9  ;;  %6810 = vmatpush1.bf16.msra.mxu1 %v4844_v2  ;;  %3675 = vperm.xlu0 %8991, %v11635_v52   ;;  %v11753_v19 = vpop.f32.mrb[196].mxu0  ;;  %v9118_v52 = vld [vmem:[%s13811_s4 + $0x354] ss:$52 sps:$4 sm:$0xff]   ;;  %v409_v49 = vld [vmem:[%s13810_s2 + $0x578] sm:$0xff]  ;;  %v2910_v37 = vadd.f32 1.0, %v9934_v8 }
 0x27a   :  { %v9938_v13 = vpop.eup %9937  ;;  %9957 = vrcp.f32 %v2909_v47  ;;  %6811 = vmatprep.subr.bf16.mxu1 %v13864_v32  ;;  %v11763_v62 = vpop.f32.mrb[197].mxu0  ;;  %v2908_v2 = vadd.f32 1.0, %v9936_v44  ;;  %v7887_v34 = vmul.f32 -1.442695, %v2009_v45 }
 0x27b   :  { %v11765_v9 = vpop.eup %9939  ;;  %v4845_v51 = vpack.c.bf16 %v4700_v16, %v4699_v38  ;;  %9959 = vpow2.f32 %v7885_v54  ;;  %v4166_v47 = vpop.permute.xlu0 %4165  ;;  %v2913_v8 = vadd.f32 1.0, %v9938_v13  ;;  %v4701_v16 = vmul.f32 %v4156_v14, %v3477_v53  ;;  %v412_v13 = vld [vmem:[%s13810_s2 + $0x590] sm:$0xff] }
 0x27c   :  { %v4161_v1 = vpop.permute.xlu1 %4160  ;;  %v11768_v6 = vpop.eup %9941  ;;  %9961 = vrcp.f32 %v2907_v23  ;;  %3680 = vperm.xlu1 %8992, %v11652_v11   ;;  %6711 = vmatmul.mubr.bf16.gmra.mrb[20].mxu1 %v9117_v3  ;;  %v2020_v54 = vadd.f32 %v11397_v48, %v409_v49  ;;  %v7884_v14 = vmul.f32 -1.442695, %v1996_v40  ;;  %v7889_v38 = vmul.f32 -1.442695, %v2017_v10  ;;  %v407_v48 = vld [vmem:[%s13810_s2 + $0x568] sm:$0xff]  ;;  %v413_v10 = vld [vmem:[%s13810_s2 + $0x598] sm:$0xff] }
 0x27d   :  { %v4702_v63 = vmul.f32 %v4161_v1, %v3478_v18  ;;  %v11772_v36 = vpop.f32.mrb[198].mxu0  ;;  %v11774_v58 = vpop.eup %9943  ;;  %6812 = vmatpush1.bf16.msra.mxu1 %v4845_v51  ;;  %3685 = vperm.xlu0 %8991, %v11697_v46   ;;  %9963 = vpow2.f32 %v7886_v60  ;;  %v9120_v60 = vld [vmem:[%s13811_s4 + $0x350] ss:$52 sps:$4 sm:$0xff]   ;;  %v4703_v40 = vmul.f32 %v4166_v47, %v3479_v42  ;;  %v2778_v51 = vadd.f32 1.0, %v11675_v61 }
 0x27e   :  { %v11781_v11 = vpop.f32.mrb[199].mxu0  ;;  %v11783_v23 = vpop.eup %9945  ;;  %9965 = vpow2.f32 %v7883_v22  ;;  %6813 = vmatprep.subr.bf16.mxu1 %v13864_v32  ;;  %6718 = vmatprep.mubr.bf16.mxu1 %v9118_v52  ;;  %v3482_v52 = vld [vmem:[%s13812_s3 + $0x3d8] sm:$0xff]  ;;  %v3481_v1 = vld [vmem:[%s13812_s3 + $0x3d0] sm:$0xff]  ;;  %v2012_v47 = vadd.f32 %v11399_v24, %v407_v48 }
 0x27f   :  { %v9948_v46 = vpop.eup %9947  ;;  %9967 = vrcp.f32 %v2910_v37  ;;  %v4846_v3 = vpack.c.bf16 %v4702_v63, %v4701_v16  ;;  %v4176_v44 = vpop.permute.xlu0 %4175 }
 0x280   :  { %v4171_v26 = vpop.permute.xlu1 %4170  ;;  %v9950_v53 = vpop.eup %9949  ;;  %9969 = vrcp.f32 %v2908_v2  ;;  %3690 = vperm.xlu1 %8992, %v11724_v59   ;;  %v7890_v59 = vmul.f32 -1.442695, %v2020_v54 }
 0x281   :  { %v4704_v18 = vmul.f32 %v4171_v26, %v3480_v17  ;;  %v9952_v22 = vpop.eup %9951  ;;  %9971 = vrcp.f32 %v2913_v8  ;;  %6814 = vmatpush1.bf16.msra.mxu1 %v4846_v3  ;;  %3695 = vperm.xlu0 %8991, %v11686_v20   ;;  %v11803_v49 = vpop.f32.mrb[200].mxu0  ;;  %v9121_v20 = vld [vmem:[%s13811_s4 + $0x3bc] ss:$52 sps:$4 sm:$0xff]   ;;  %v2914_v63 = vadd.f32 1.0, %v9950_v53  ;;  %v2033_v17 = vadd.f32 %v11427_v31, %v412_v13  ;;  %v3484_v31 = vld [vmem:[%s13812_s3 + $0x3e8] sm:$0xff] }
 0x282   :  { %13885 = vst [vmem:[#allocation2_spill] sm:$0xff] %v11803_v49  ;;  %v9954_v37 = vpop.eup %9953  ;;  %9973 = vpow2.f32 %v7884_v14  ;;  %6815 = vmatprep.subr.bf16.mxu1 %v13864_v32  ;;  %v11817_v2 = vpop.f32.mrb[201].mxu0  ;;  %v2911_v24 = vadd.f32 1.0, %v9952_v22  ;;  %v410_v14 = vld [vmem:[%s13810_s2 + $0x580] sm:$0xff]  ;;  %v4705_v53 = vmul.f32 %v4176_v44, %v3481_v1  ;;  %v293_v49 = vld [vmem:[%s13810_s2 + $0x1d8] sm:$0xff] }
 0x283   :  { %13886 = vst [vmem:[#allocation3_spill] sm:$0xff] %v11817_v2  ;;  %v9956_v61 = vpop.eup %9955  ;;  %v4847_v45 = vpack.c.bf16 %v4704_v18, %v4703_v40  ;;  %9975 = vpow2.f32 %v7889_v38  ;;  %v4186_v16 = vpop.permute.xlu0 %4185  ;;  %v2912_v48 = vadd.f32 1.0, %v9954_v37  ;;  %v3483_v44 = vld [vmem:[%s13812_s3 + $0x3e0] sm:$0xff]  ;;  %v7893_v40 = vmul.f32 -1.442695, %v2033_v17  ;;  %v13918_v2 = vld [vmem:[#allocation24_spill] sm:$0xff] }
 0x284   :  { %v4181_v8 = vpop.permute.xlu1 %4180  ;;  %v9958_v54 = vpop.eup %9957  ;;  %3700 = vperm.xlu1 %8992, %v11712_v33   ;;  %6719 = vmatmul.mubr.bf16.gmra.mrb[24].mxu1 %v9120_v60  ;;  %9977 = vpow2.f32 %v7887_v34  ;;  %v2036_v33 = vadd.f32 %v11446_v30, %v413_v10  ;;  %v272_v60 = vld [vmem:[%s13810_s2 + $0x130] sm:$0xff] }
 0x285   :  { %v4706_v42 = vmul.f32 %v4181_v8, %v3482_v52  ;;  %v11824_v3 = vpop.f32.mrb[202].mxu0  ;;  %v9960_v26 = vpop.eup %9959  ;;  %6816 = vmatpush1.bf16.msra.mxu1 %v4847_v45  ;;  %3705 = vperm.xlu0 %8991, %v9948_v46   ;;  %9979 = vpow2.f32 %v7890_v59  ;;  %v7888_v46 = vmul.f32 -1.442695, %v2012_v47  ;;  %v2025_v52 = vadd.f32 %v11436_v12, %v410_v14  ;;  %v411_v59 = vld [vmem:[%s13810_s2 + $0x588] sm:$0xff]  ;;  %v13889_v10 = vld [vmem:[#allocation4_spill] sm:$0xff]  ;;  %v3486_v12 = vld [vmem:[%s13812_s3 + $0x3f8] sm:$0xff] }
 0x286   :  { %13887 = vst [vmem:[#allocation41_spill] sm:$0xff] %v11824_v3  ;;  %v11830_v38 = vpop.f32.mrb[203].mxu0  ;;  %v9962_v18 = vpop.eup %9961  ;;  %9981 = vrcp.f32 %v2778_v51  ;;  %6817 = vmatprep.subr.bf16.mxu1 %v13864_v32  ;;  %6726 = vmatprep.mubr.bf16.mxu1 %v9121_v20  ;;  %v2917_v51 = vadd.f32 1.0, %v9960_v26  ;;  %v9123_v47 = vld [vmem:[%s13811_s4 + $0x3b8] ss:$52 sps:$4 sm:$0xff]   ;;  %v4707_v45 = vmul.f32 %v4186_v16, %v3483_v44  ;;  %v13905_v3 = vld [vmem:[#allocation16_spill] sm:$0xff] }
 0x287   :  { %13888 = vst [vmem:[#allocation44_spill] sm:$0xff] %v11830_v38  ;;  %v9964_v34 = vpop.eup %9963  ;;  %9983 = vrcp.f32 %v2914_v63  ;;  %v4848_v13 = vpack.c.bf16 %v4706_v42, %v4705_v53  ;;  %v4196_v22 = vpop.permute.xlu0 %4195  ;;  %v1473_v63 = vadd.f32 %v13889_v10, %v272_v60  ;;  %v7894_v8 = vmul.f32 -1.442695, %v2036_v33  ;;  %v9124_v16 = vld [vmem:[%s13811_s4 + $0x424] ss:$52 sps:$4 sm:$0xff]  }
 0x288   :  { %v4191_v30 = vpop.permute.xlu1 %4190  ;;  %v9966_v37 = vpop.eup %9965  ;;  %9985 = vrcp.f32 %v2911_v24  ;;  %3710 = vperm.xlu1 %8992, %v9956_v61   ;;  %v2918_v24 = vadd.f32 1.0, %v9964_v34  ;;  %v3485_v61 = vld [vmem:[%s13812_s3 + $0x3f0] sm:$0xff]  ;;  %v2028_v42 = vadd.f32 %v11457_v50, %v411_v59  ;;  %v7891_v53 = vmul.f32 -1.442695, %v2025_v52  ;;  %v414_v50 = vld [vmem:[%s13810_s2 + $0x5a0] sm:$0xff] }
 0x289   :  { %v4708_v1 = vmul.f32 %v4191_v30, %v3484_v31  ;;  %v9968_v20 = vpop.eup %9967  ;;  %9987 = vrcp.f32 %v2912_v48  ;;  %6818 = vmatpush1.bf16.msra.mxu1 %v4848_v13  ;;  %4375 = vperm.xlu0 %8991, %v9958_v54   ;;  %v2915_v33 = vadd.f32 1.0, %v9966_v37  ;;  %v4709_v34 = vmul.f32 %v4196_v22, %v3485_v61  ;;  %v415_v13 = vld [vmem:[%s13810_s2 + $0x5a8] sm:$0xff] }
 0x28a   :  { %v9970_v17 = vpop.eup %9969  ;;  %9989 = vpow2.f32 %v7888_v46  ;;  %6819 = vmatprep.subr.bf16.mxu1 %v13864_v32  ;;  %v7753_v46 = vmul.f32 -1.442695, %v1473_v63  ;;  %v7892_v52 = vmul.f32 -1.442695, %v2028_v42  ;;  %v9126_v63 = vld [vmem:[%s13811_s4 + $0x420] ss:$52 sps:$4 sm:$0xff]  }
 0x28b   :  { %v9972_v54 = vpop.eup %9971  ;;  %v4849_v14 = vpack.c.bf16 %v4708_v1, %v4707_v45  ;;  %9991 = vpow2.f32 %v7893_v40  ;;  %v11858_v48 = vpop.permute.xlu0 %4205  ;;  %v270_v40 = vld [vmem:[%s13810_s2 + $0x120] sm:$0xff]  ;;  %v416_v1 = vld [vmem:[%s13810_s2 + $0x5b0] sm:$0xff]  ;;  %v2044_v45 = vadd.f32 %v11505_v27, %v415_v13  ;;  %v417_v27 = vld [vmem:[%s13810_s2 + $0x5b8] sm:$0xff] }
 0x28c   :  { %v4201_v26 = vpop.permute.xlu1 %4200  ;;  %v9974_v31 = vpop.eup %9973  ;;  %9993 = vrcp.f32 %v2917_v51  ;;  %4380 = vperm.xlu1 %8992, %v9968_v20   ;;  %6727 = vmatmul.mubr.bf16.gmra.mrb[28].mxu1 %v9123_v47  ;;  %v2041_v47 = vadd.f32 %v11494_v15, %v414_v50  ;;  %v9127_v15 = vld [vmem:[%s13811_s4 + $0x48c] ss:$52 sps:$4 sm:$0xff]   ;;  %v420_v13 = vld [vmem:[%s13810_s2 + $0x5d0] sm:$0xff] }
 0x28d   :  { %v4710_v60 = vmul.f32 %v4201_v26, %v3486_v12  ;;  %v9976_v44 = vpop.eup %9975  ;;  %6820 = vmatpush1.bf16.msra.mxu1 %v4849_v14  ;;  %4365 = vperm.xlu0 %8991, %v9962_v18   ;;  %9995 = vpow2.f32 %v7894_v8  ;;  %v2916_v37 = vadd.f32 1.0, %v9974_v31  ;;  %v13890_v8 = vld [vmem:[#allocation5_spill] sm:$0xff] }
 0x28e   :  { %v9978_v30 = vpop.eup %9977  ;;  %9997 = vrcp.f32 %v2918_v24  ;;  %6821 = vmatprep.subr.bf16.mxu1 %v13864_v32  ;;  %6734 = vmatprep.mubr.bf16.mxu1 %v9124_v16  ;;  %v2921_v10 = vadd.f32 1.0, %v9976_v44  ;;  %v1465_v24 = vadd.f32 %v13890_v8, %v270_v40  ;;  %v2052_v44 = vadd.f32 %v11499_v25, %v417_v27  ;;  %v419_v25 = vld [vmem:[%s13810_s2 + $0x5c8] sm:$0xff]  ;;  %v421_v27 = vld [vmem:[%s13810_s2 + $0x5d8] sm:$0xff] }
 0x28f   :  { %v9980_v59 = vpop.eup %9979  ;;  %v4850_v22 = vpack.c.bf16 %v4710_v60, %v4709_v34  ;;  %9999 = vpow2.f32 %v7891_v53  ;;  %v11872_v51 = vpop.permute.xlu0 %4215  ;;  %v2919_v61 = vadd.f32 1.0, %v9978_v30  ;;  %v7895_v53 = vmul.f32 -1.442695, %v2041_v47  ;;  %v9129_v47 = vld [vmem:[%s13811_s4 + $0x488] ss:$52 sps:$4 sm:$0xff]  }
 0x290   :  { %v11870_v18 = vpop.permute.xlu1 %4210  ;;  %v11878_v20 = vpop.eup %9981  ;;  %10001 = vrcp.f32 %v2915_v33  ;;  %4370 = vperm.xlu1 %8992, %v9970_v17   ;;  %v2922_v16 = vadd.f32 1.0, %v9980_v59  ;;  %v2049_v17 = vadd.f32 %v11482_v5, %v416_v1  ;;  %v7896_v33 = vmul.f32 -1.442695, %v2044_v45  ;;  %v418_v5 = vld [vmem:[%s13810_s2 + $0x5c0] sm:$0xff] }
 0x291   :  { %v9984_v12 = vpop.eup %9983  ;;  %10003 = vpow2.f32 %v7753_v46  ;;  %6822 = vmatpush1.bf16.msra.mxu1 %v4850_v22  ;;  %4395 = vperm.xlu0 %8991, %v9972_v54   ;;  %v7751_v50 = vmul.f32 -1.442695, %v1465_v24  ;;  %v7898_v45 = vmul.f32 -1.442695, %v2052_v44  ;;  %v271_v24 = vld [vmem:[%s13810_s2 + $0x128] sm:$0xff] }
 0x292   :  { %v9986_v42 = vpop.eup %9985  ;;  %10005 = vpow2.f32 %v7892_v52  ;;  %6960 = vmatprep.subr.bf16.mxu1 %v13864_v32  ;;  %v7897_v34 = vmul.f32 -1.442695, %v2049_v17 }
 0x293   :  { %v9988_v14 = vpop.eup %9987  ;;  %10007 = vrcp.f32 %v2916_v37  ;;  %v11895_v54 = vpop.permute.xlu0 %4225  ;;  %v2057_v37 = vadd.f32 %v11537_v56, %v418_v5  ;;  %v2065_v56 = vadd.f32 %v11525_v57, %v420_v13 }
 0x294   :  { %v11893_v26 = vpop.permute.xlu1 %4220  ;;  %v9990_v31 = vpop.eup %9989  ;;  %10009 = vrcp.f32 %v2921_v10  ;;  %4400 = vperm.xlu1 %8992, %v9984_v12   ;;  %6735 = vmatmul.mubr.bf16.gmra.mrb[32].mxu1 %v9126_v63  ;;  %v273_v63 = vld [vmem:[%s13810_s2 + $0x138] sm:$0xff]  ;;  %v9130_v12 = vld [vmem:[%s13811_s4 + $0x4f4] ss:$52 sps:$4 sm:$0xff]  }
 0x295   :  { %v9992_v60 = vpop.eup %9991  ;;  %10011 = vrcp.f32 %v2919_v61  ;;  %4385 = vperm.xlu0 %8991, %v9986_v42   ;;  %6742 = vmatprep.mubr.bf16.mxu1 %v9127_v15  ;;  %v2920_v40 = vadd.f32 1.0, %v9990_v31  ;;  %v2060_v15 = vadd.f32 %v11554_v4, %v419_v25  ;;  %v7899_v57 = vmul.f32 -1.442695, %v2057_v37  ;;  %v422_v4 = vld [vmem:[%s13810_s2 + $0x5e0] sm:$0xff] }
 0x296   :  { %v9994_v46 = vpop.eup %9993  ;;  %10013 = vrcp.f32 %v2922_v16  ;;  %v2925_v1 = vadd.f32 1.0, %v9992_v60  ;;  %v13892_v60 = vld [vmem:[#allocation7_spill] sm:$0xff]  ;;  %v7901_v44 = vmul.f32 -1.442695, %v2065_v56 }
 0x297   :  { %v9996_v30 = vpop.eup %9995  ;;  %10015 = vpow2.f32 %v7895_v53  ;;  %v11906_v59 = vpop.permute.xlu0 %4235  ;;  %v13891_v53 = vld [vmem:[#allocation6_spill] sm:$0xff]  ;;  %v7900_v13 = vmul.f32 -1.442695, %v2060_v15 }
 0x298   :  { %v11904_v52 = vpop.permute.xlu1 %4230  ;;  %v9998_v22 = vpop.eup %9997  ;;  %4390 = vperm.xlu1 %8992, %v9988_v14   ;;  %10017 = vpow2.f32 %v7896_v33  ;;  %v2926_v61 = vadd.f32 1.0, %v9996_v30  ;;  %v1476_v31 = vadd.f32 %v13891_v53, %v273_v63  ;;  %v424_v63 = vld [vmem:[%s13810_s2 + $0x5f0] sm:$0xff] }
 0x299   :  { %v10000_v10 = vpop.eup %9999  ;;  %10019 = vpow2.f32 %v7751_v50  ;;  %4415 = vperm.xlu0 %8991, %v9994_v46   ;;  %v1468_v50 = vadd.f32 %v13892_v60, %v271_v24 }
 0x29a   :  { %v10002_v8 = vpop.eup %10001  ;;  %10021 = vpow2.f32 %v7897_v34  ;;  %v2923_v33 = vadd.f32 1.0, %v10000_v10  ;;  %v2068_v34 = vadd.f32 %v11545_v35, %v421_v27  ;;  %v7754_v10 = vmul.f32 -1.442695, %v1476_v31  ;;  %v9132_v35 = vld [vmem:[%s13811_s4 + $0x4f0] ss:$52 sps:$4 sm:$0xff]   ;;  %v425_v31 = vld [vmem:[%s13810_s2 + $0x5f8] sm:$0xff] }
 0x29b   :  { %v11926_v42 = vpop.eup %10003  ;;  %10023 = vrcp.f32 %v2920_v40  ;;  %v11930_v17 = vpop.permute.xlu0 %4245  ;;  %v7752_v56 = vmul.f32 -1.442695, %v1468_v50 }
 0x29c   :  { %v11928_v16 = vpop.permute.xlu1 %4240  ;;  %v10006_v14 = vpop.eup %10005  ;;  %10025 = vrcp.f32 %v2925_v1  ;;  %4420 = vperm.xlu1 %8992, %v9998_v22   ;;  %6743 = vmatmul.mubr.bf16.gmra.mrb[36].mxu1 %v9129_v47  ;;  %v2073_v22 = vadd.f32 %v11589_v55, %v422_v4  ;;  %v423_v1 = vld [vmem:[%s13810_s2 + $0x5e8] sm:$0xff]  ;;  %v9133_v55 = vld [vmem:[%s13811_s4 + $0x55c] ss:$52 sps:$4 sm:$0xff]   ;;  %v7902_v24 = vmul.f32 -1.442695, %v2068_v34 }
 0x29d   :  { %v10008_v5 = vpop.eup %10007  ;;  %10027 = vpow2.f32 %v7898_v45  ;;  %4405 = vperm.xlu0 %8991, %v10002_v8   ;;  %6750 = vmatprep.mubr.bf16.mxu1 %v9130_v12  ;;  %v2924_v40 = vadd.f32 1.0, %v10006_v14  ;;  %v276_v8 = vld [vmem:[%s13810_s2 + $0x150] sm:$0xff]  ;;  %v2081_v14 = vadd.f32 %v11580_v28, %v424_v63  ;;  %v2084_v28 = vadd.f32 %v11601_v29, %v425_v31  ;;  %v9136_v29 = vld [vmem:[%s13811_s4 + $0x5c4] ss:$52 sps:$4 sm:$0xff]  }
 0x29e   :  { %v10010_v46 = vpop.eup %10009  ;;  %10029 = vrcp.f32 %v2926_v61  ;;  %v2076_v61 = vadd.f32 %v11610_v39, %v423_v1  ;;  %v7903_v53 = vmul.f32 -1.442695, %v2073_v22 }
 0x29f   :  { %v10012_v30 = vpop.eup %10011  ;;  %10031 = vpow2.f32 %v7899_v57  ;;  %v11943_v25 = vpop.permute.xlu0 %4255 }
 0x2a0   :  { %v11941_v37 = vpop.permute.xlu1 %4250  ;;  %v10014_v47 = vpop.eup %10013  ;;  %10033 = vrcp.f32 %v2923_v33  ;;  %4410 = vperm.xlu1 %8992, %v10008_v5   ;;  %v13893_v5 = vld [vmem:[#allocation8_spill] sm:$0xff] }
 0x2a1   :  { %v10016_v45 = vpop.eup %10015  ;;  %10035 = vpow2.f32 %v7901_v44  ;;  %4435 = vperm.xlu0 %8991, %v10010_v46   ;;  %v1489_v60 = vadd.f32 %v13893_v5, %v276_v8  ;;  %v7904_v46 = vmul.f32 -1.442695, %v2076_v61 }
 0x2a2   :  { %v10018_v12 = vpop.eup %10017  ;;  %10037 = vpow2.f32 %v7900_v13  ;;  %v2927_v4 = vadd.f32 1.0, %v10016_v45  ;;  %v274_v45 = vld [vmem:[%s13810_s2 + $0x140] sm:$0xff] }
 0x2a3   :  { %v11962_v15 = vpop.eup %10019  ;;  %10039 = vrcp.f32 %v2924_v40  ;;  %v11966_v27 = vpop.permute.xlu0 %4265  ;;  %v2928_v50 = vadd.f32 1.0, %v10018_v12  ;;  %v7905_v40 = vmul.f32 -1.442695, %v2081_v14  ;;  %v277_v12 = vld [vmem:[%s13810_s2 + $0x158] sm:$0xff] }
 0x2a4   :  { %v11964_v57 = vpop.permute.xlu1 %4260  ;;  %v10022_v33 = vpop.eup %10021  ;;  %10041 = vpow2.f32 %v7754_v10  ;;  %4440 = vperm.xlu1 %8992, %v10014_v47   ;;  %6751 = vmatmul.mubr.bf16.gmra.mrb[40].mxu1 %v9132_v35  ;;  %v7757_v35 = vmul.f32 -1.442695, %v1489_v60  ;;  %v2779_v60 = vadd.f32 1.0, %v11765_v9 }
 0x2a5   :  { %v10024_v39 = vpop.eup %10023  ;;  %10043 = vpow2.f32 %v7752_v56  ;;  %4425 = vperm.xlu0 %8991, %v10012_v30   ;;  %6758 = vmatprep.mubr.bf16.mxu1 %v9133_v55  ;;  %v2929_v47 = vadd.f32 1.0, %v10022_v33  ;;  %v9135_v30 = vld [vmem:[%s13811_s4 + $0x558] ss:$52 sps:$4 sm:$0xff]   ;;  %v7906_v56 = vmul.f32 -1.442695, %v2084_v28  ;;  %v2781_v33 = vadd.f32 1.0, %v11731_v43 }
 0x2a6   :  { %v10026_v44 = vpop.eup %10025  ;;  %10045 = vpow2.f32 %v7902_v24  ;;  %v275_v28 = vld [vmem:[%s13810_s2 + $0x148] sm:$0xff]  ;;  %v280_v43 = vld [vmem:[%s13810_s2 + $0x170] sm:$0xff] }
 0x2a7   :  { %v10028_v34 = vpop.eup %10027  ;;  %10047 = vpow2.f32 %v7903_v53  ;;  %v11976_v22 = vpop.permute.xlu0 %4275 }
 0x2a8   :  { %v11974_v13 = vpop.permute.xlu1 %4270  ;;  %v10030_v1 = vpop.eup %10029  ;;  %10049 = vrcp.f32 %v2927_v4  ;;  %4430 = vperm.xlu1 %8992, %v10024_v39   ;;  %v2930_v8 = vadd.f32 1.0, %v10028_v34  ;;  %v13894_v4 = vld [vmem:[#allocation9_spill] sm:$0xff] }
 0x2a9   :  { %v10032_v10 = vpop.eup %10031  ;;  %10051 = vrcp.f32 %v2928_v50  ;;  %4455 = vperm.xlu0 %8991, %v10026_v44   ;;  %v1481_v39 = vadd.f32 %v13894_v4, %v274_v45  ;;  %v13895_v50 = vld [vmem:[#allocation10_spill] sm:$0xff] }
 0x2aa   :  { %v10034_v63 = vpop.eup %10033  ;;  %10053 = vpow2.f32 %v7904_v46  ;;  %v2931_v53 = vadd.f32 1.0, %v10032_v10  ;;  %v1492_v44 = vadd.f32 %v13895_v50, %v277_v12  ;;  %v9139_v45 = vld [vmem:[%s13811_s4 + $0x62c] ss:$52 sps:$4 sm:$0xff]   ;;  %v13897_v12 = vld [vmem:[#allocation12_spill] sm:$0xff] }
 0x2ab   :  { %v10036_v55 = vpop.eup %10035  ;;  %10055 = vpow2.f32 %v7905_v40  ;;  %v11992_v61 = vpop.permute.xlu0 %4285 }
 0x2ac   :  { %v11990_v24 = vpop.permute.xlu1 %4280  ;;  %v10038_v14 = vpop.eup %10037  ;;  %10057 = vrcp.f32 %v2929_v47  ;;  %4460 = vperm.xlu1 %8992, %v10030_v1   ;;  %6759 = vmatmul.mubr.bf16.gmra.mrb[44].mxu1 %v9135_v30  ;;  %v2933_v47 = vadd.f32 1.0, %v10036_v55  ;;  %v9138_v30 = vld [vmem:[%s13811_s4 + $0x5c0] ss:$52 sps:$4 sm:$0xff]   ;;  %v7758_v55 = vmul.f32 -1.442695, %v1492_v44 }
 0x2ad   :  { %v10040_v31 = vpop.eup %10039  ;;  %10059 = vpow2.f32 %v7757_v35  ;;  %4445 = vperm.xlu0 %8991, %v10034_v63   ;;  %6766 = vmatprep.mubr.bf16.mxu1 %v9136_v29  ;;  %v2932_v34 = vadd.f32 1.0, %v10038_v14  ;;  %v7755_v35 = vmul.f32 -1.442695, %v1481_v39  ;;  %v13896_v29 = vld [vmem:[#allocation11_spill] sm:$0xff] }
 0x2ae   :  { %v11996_v5 = vpop.eup %10041  ;;  %10061 = vpow2.f32 %v7906_v56  ;;  %v1484_v63 = vadd.f32 %v13896_v29, %v275_v28  ;;  %v2782_v29 = vadd.f32 1.0, %v11768_v6  ;;  %v281_v6 = vld [vmem:[%s13810_s2 + $0x178] sm:$0xff] }
 0x2af   :  { %v12003_v46 = vpop.eup %10043  ;;  %10063 = vrcp.f32 %v2930_v8  ;;  %v12010_v1 = vpop.permute.xlu0 %4295  ;;  %v1505_v8 = vadd.f32 %v13897_v12, %v280_v43  ;;  %v278_v43 = vld [vmem:[%s13810_s2 + $0x160] sm:$0xff]  ;;  %v13899_v12 = vld [vmem:[#allocation13_spill] sm:$0xff] }
 0x2b0   :  { %v12008_v40 = vpop.permute.xlu1 %4290  ;;  %v10046_v9 = vpop.eup %10045  ;;  %10065 = vrcp.f32 %v2931_v53  ;;  %4450 = vperm.xlu1 %8992, %v10040_v31   ;;  %v7756_v50 = vmul.f32 -1.442695, %v1484_v63  ;;  %v9142_v63 = vld [vmem:[%s13811_s4 + $0x694] ss:$52 sps:$4 sm:$0xff]  }
 0x2b1   :  { %v10048_v10 = vpop.eup %10047  ;;  %10067 = vrcp.f32 %v2781_v33  ;;  %3715 = vperm.xlu0 %8991, %v11783_v23   ;;  %v2934_v53 = vadd.f32 1.0, %v10046_v9  ;;  %v7761_v44 = vmul.f32 -1.442695, %v1505_v8  ;;  %v1497_v8 = vadd.f32 %v13899_v12, %v278_v43  ;;  %v13901_v43 = vld [vmem:[#allocation14_spill] sm:$0xff] }
 0x2b2   :  { %v10050_v56 = vpop.eup %10049  ;;  %10069 = vrcp.f32 %v2779_v60  ;;  %v2935_v39 = vadd.f32 1.0, %v10048_v10  ;;  %v9141_v10 = vld [vmem:[%s13811_s4 + $0x628] ss:$52 sps:$4 sm:$0xff]  }
 0x2b3   :  { %v10052_v14 = vpop.eup %10051  ;;  %10071 = vrcp.f32 %v2932_v34 }
 0x2b4   :  { %v12021_v31 = vpop.permute.xlu1 %4300  ;;  %v12023_v33 = vpop.permute.xlu0 %4305  ;;  %10073 = vrcp.f32 %v2933_v47  ;;  %3720 = vperm.xlu1 %8992, %v11878_v20   ;;  %6767 = vmatmul.mubr.bf16.gmra.mrb[48].mxu1 %v9138_v30 }
 0x2b5   :  { %v10054_v4 = vpop.eup %10053  ;;  %10075 = vpow2.f32 %v7755_v35  ;;  %4465 = vperm.xlu0 %8991, %v10050_v56   ;;  %6774 = vmatprep.mubr.bf16.mxu1 %v9139_v45  ;;  %v9189_v45 = vld [vmem:[%s13811_s4 + $0x4] ss:$52 sps:$4 sm:$0xff]  }
 0x2b6   :  { %v10056_v23 = vpop.eup %10055  ;;  %10077 = vpow2.f32 %v7758_v55  ;;  %v2936_v34 = vadd.f32 1.0, %v10054_v4  ;;  %v2780_v55 = vadd.f32 1.0, %v11774_v58  ;;  %6316 = vmatprep.mubr.bf16.mxu0 %v9189_v45  ;;  %v2785_v58 = vadd.f32 1.0, %v11926_v42 }
 0x2b7   :  { %v10058_v60 = vpop.eup %10057  ;;  %10079 = vrcp.f32 %v2934_v53  ;;  %v2937_v30 = vadd.f32 1.0, %v10056_v23  ;;  %v7759_v45 = vmul.f32 -1.442695, %v1497_v8  ;;  %v9147_v8 = vld [vmem:[%s13811_s4 + $0x1c] ss:$52 sps:$4 sm:$0xff]  }
 0x2b8   :  { %v10060_v28 = vpop.eup %10059  ;;  %v12029_v9 = vpop.permute.xlu1 %4310  ;;  %10081 = vrcp.f32 %v2935_v39  ;;  %4470 = vperm.xlu1 %8992, %v10052_v14  }
 0x2b9   :  { %v12031_v47 = vpop.permute.xlu0 %4315  ;;  %v10062_v20 = vpop.eup %10061  ;;  %10083 = vpow2.f32 %v7756_v50  ;;  %4475 = vperm.xlu0 %8991, %v10058_v60   ;;  %v279_v50 = vld [vmem:[%s13810_s2 + $0x168] sm:$0xff] }
 0x2ba   :  { %13898 = vst [vmem:[#allocation4_spill] sm:$0xff] %v12031_v47  ;;  %v10064_v35 = vpop.eup %10063  ;;  %10085 = vpow2.f32 %v7761_v44  ;;  %v2938_v53 = vadd.f32 1.0, %v10062_v20  ;;  %v2783_v44 = vadd.f32 1.0, %v11962_v15  ;;  %v284_v20 = vld [vmem:[%s13810_s2 + $0x190] sm:$0xff] }
 0x2bb   :  { %v10066_v56 = vpop.eup %10065  ;;  %10087 = vrcp.f32 %v2936_v34  ;;  %v1508_v34 = vadd.f32 %v13901_v43, %v281_v6  ;;  %v2784_v43 = vadd.f32 1.0, %v12003_v46 }
 0x2bc   :  { %v12048_v14 = vpop.eup %10067  ;;  %v12050_v4 = vpop.permute.xlu1 %4320  ;;  %10089 = vrcp.f32 %v2937_v30  ;;  %4480 = vperm.xlu1 %8992, %v10064_v35   ;;  %6775 = vmatmul.mubr.bf16.gmra.mrb[52].mxu1 %v9141_v10  ;;  %v2786_v30 = vadd.f32 1.0, %v11996_v5  ;;  %v13902_v35 = vld [vmem:[#allocation15_spill] sm:$0xff] }
 0x2bd   :  { %v12052_v39 = vpop.permute.xlu0 %4325  ;;  %v12054_v23 = vpop.eup %10069  ;;  %10091 = vrcp.f32 %v2782_v29  ;;  %4485 = vperm.xlu0 %8991, %v10066_v56   ;;  %6782 = vmatprep.mubr.bf16.mxu1 %v9142_v63  ;;  %v1500_v10 = vadd.f32 %v13902_v35, %v279_v50  ;;  %v1521_v56 = vadd.f32 %v13905_v3, %v284_v20  ;;  %v9144_v63 = vld [vmem:[%s13811_s4 + $0x690] ss:$52 sps:$4 sm:$0xff]   ;;  %v7762_v5 = vmul.f32 -1.442695, %v1508_v34  ;;  %v13908_v35 = vld [vmem:[#allocation17_spill] sm:$0xff] }
 0x2be   :  { %13900 = vst [vmem:[#allocation5_spill] sm:$0xff] %v12052_v39  ;;  %v10072_v60 = vpop.eup %10071  ;;  %10093 = vrcp.f32 %v2780_v55  ;;  %v2789_v50 = vadd.f32 1.0, %v10060_v28  ;;  %v282_v3 = vld [vmem:[%s13810_s2 + $0x180] sm:$0xff]  ;;  %v3488_v28 = vld [vmem:[%s13812_s3 + $0x408] sm:$0xff] }
 0x2bf   :  { %v10074_v42 = vpop.eup %10073  ;;  %10095 = vrcp.f32 %v2938_v53 }
 0x2c0   :  { %v10076_v12 = vpop.eup %10075  ;;  %v12067_v29 = vpop.permute.xlu1 %4330  ;;  %10097 = vrcp.f32 %v2785_v58  ;;  %4490 = vperm.xlu1 %8992, %v10072_v60   ;;  %v7760_v58 = vmul.f32 -1.442695, %v1500_v10  ;;  %v285_v60 = vld [vmem:[%s13810_s2 + $0x198] sm:$0xff]  ;;  %v1513_v10 = vadd.f32 %v13908_v35, %v282_v3  ;;  %v13912_v35 = vld [vmem:[#allocation19_spill] sm:$0xff] }
 0x2c1   :  { %13903 = vst [vmem:[#allocation6_spill] sm:$0xff] %v12067_v29  ;;  %v12069_v15 = vpop.permute.xlu0 %4335  ;;  %v10078_v6 = vpop.eup %10077  ;;  %10099 = vrcp.f32 %v2783_v44  ;;  %4495 = vperm.xlu0 %8991, %v10074_v42   ;;  %v7765_v42 = vmul.f32 -1.442695, %v1521_v56  ;;  %v13909_v56 = vld [vmem:[#allocation18_spill] sm:$0xff] }
 0x2c2   :  { %13904 = vst [vmem:[#allocation7_spill] sm:$0xff] %v12069_v15  ;;  %v10080_v55 = vpop.eup %10079  ;;  %10101 = vpow2.f32 %v7759_v45  ;;  %v283_v15 = vld [vmem:[%s13810_s2 + $0x188] sm:$0xff] }
 0x2c3   :  { %v10082_v53 = vpop.eup %10081  ;;  %10103 = vrcp.f32 %v2786_v30  ;;  %v2787_v30 = vadd.f32 1.0, %v10076_v12  ;;  %v3487_v12 = vld [vmem:[%s13812_s3 + $0x400] sm:$0xff] }
 0x2c4   :  { %v10084_v46 = vpop.eup %10083  ;;  %v12085_v44 = vpop.permute.xlu1 %4340  ;;  %10105 = vrcp.f32 %v2784_v43  ;;  %4500 = vperm.xlu1 %8992, %v10080_v55   ;;  %6783 = vmatmul.mubr.bf16.gmra.mrb[56].mxu1 %v9144_v63  ;;  %v2790_v43 = vadd.f32 1.0, %v10078_v6  ;;  %v288_v63 = vld [vmem:[%s13810_s2 + $0x1b0] sm:$0xff]  ;;  %v4712_v6 = vmul.f32 %v11870_v18, %v3488_v28  ;;  %v7763_v28 = vmul.f32 -1.442695, %v1513_v10  ;;  %v9148_v10 = vld [vmem:[%s13811_s4 + $0x84] ss:$52 sps:$4 sm:$0xff]  }
 0x2c5   :  { %13906 = vst [vmem:[#allocation8_spill] sm:$0xff] %v12085_v44  ;;  %v12087_v34 = vpop.permute.xlu0 %4345  ;;  %v10086_v20 = vpop.eup %10085  ;;  %10107 = vpow2.f32 %v7762_v5  ;;  %4505 = vperm.xlu0 %8991, %v10082_v53   ;;  %6823 = vmatprep.mubr.bf16.mxu1 %v9147_v8  ;;  %v1524_v44 = vadd.f32 %v13909_v56, %v285_v60  ;;  %v2788_v5 = vadd.f32 1.0, %v10084_v46  ;;  %v286_v8 = vld [vmem:[%s13810_s2 + $0x1a0] sm:$0xff]  ;;  %v1516_v56 = vadd.f32 %v13912_v35, %v283_v15  ;;  %v3490_v46 = vld [vmem:[%s13812_s3 + $0x418] sm:$0xff] }
 0x2c6   :  { %13907 = vst [vmem:[#allocation9_spill] sm:$0xff] %v12087_v34  ;;  %v10088_v45 = vpop.eup %10087  ;;  %10109 = vrcp.f32 %v2789_v50  ;;  %v2793_v60 = vadd.f32 1.0, %v10086_v20  ;;  %v4711_v38 = vmul.f32 %v11858_v48, %v3487_v12 }
 0x2c7   :  { %v10090_v34 = vpop.eup %10089  ;;  %10111 = vpow2.f32 %v7760_v58  ;;  %v9145_v58 = vld [vmem:[%s13811_s4 + $0x18] ss:$52 sps:$4 sm:$0xff]   ;;  %v7766_v15 = vmul.f32 -1.442695, %v1524_v44  ;;  %v4714_v44 = vmul.f32 %v11893_v26, %v3490_v46  ;;  %v13916_v26 = vld [vmem:[#allocation22_spill] sm:$0xff] }
 0x2c8   :  { %v12103_v55 = vpop.eup %10091  ;;  %v12109_v53 = vpop.permute.xlu1 %4350  ;;  %10113 = vpow2.f32 %v7765_v42  ;;  %4510 = vperm.xlu1 %8992, %v10088_v45   ;;  %v13914_v42 = vld [vmem:[#allocation21_spill] sm:$0xff]  ;;  %v3359_v46 = vld [vmem:[%s13812_s3] sm:$0xff] }
 0x2c9   :  { %13910 = vst [vmem:[#allocation10_spill] sm:$0xff] %v12109_v53  ;;  %v12111_v50 = vpop.permute.xlu0 %4355  ;;  %v12113_v3 = vpop.eup %10093  ;;  %10115 = vrcp.f32 %v2787_v30  ;;  %v13913_v53 = vld [vmem:[#allocation20_spill] sm:$0xff]  ;;  %4515 = vperm.xlu0 %8991, %v10090_v34   ;;  %v1529_v35 = vadd.f32 %v13914_v42, %v286_v8  ;;  %v289_v45 = vld [vmem:[%s13810_s2 + $0x1b8] sm:$0xff]  ;;  %v4851_v34 = vpack.c.bf16 %v4712_v6, %v4711_v38  ;;  %v7764_v8 = vmul.f32 -1.442695, %v1516_v56  ;;  %v3492_v42 = vld [vmem:[%s13812_s3 + $0x428] sm:$0xff] }
 0x2ca   :  { %13911 = vst [vmem:[#allocation11_spill] sm:$0xff] %v12111_v50  ;;  %v10096_v18 = vpop.eup %10095  ;;  %v1537_v50 = vadd.f32 %v13913_v53, %v288_v63  ;;  %10117 = vrcp.f32 %v2790_v43  ;;  %v3489_v30 = vld [vmem:[%s13812_s3 + $0x410] sm:$0xff]  ;;  %v287_v53 = vld [vmem:[%s13810_s2 + $0x1a8] sm:$0xff]  ;;  %v1540_v6 = vadd.f32 %v13916_v26, %v289_v45 }
 0x2cb   :  { %v12124_v20 = vpop.eup %10097  ;;  %10119 = vrcp.f32 %v2788_v5  ;;  %v4713_v56 = vmul.f32 %v11872_v51, %v3489_v30  ;;  %v3491_v51 = vld [vmem:[%s13812_s3 + $0x420] sm:$0xff]  ;;  %v13917_v30 = vld [vmem:[#allocation23_spill] sm:$0xff] }
 0x2cc   :  { %v12136_v48 = vpop.eup %10099  ;;  %v12139_v43 = vpop.permute.xlu1 %4360  ;;  %10121 = vrcp.f32 %v2793_v60  ;;  %4520 = vperm.xlu1 %8992, %v10096_v18   ;;  %6824 = vmatmul.mubr.bf16.vlgmr.msra.gmra.mrb[60].mxu1 %v9145_v58  ;;  %v7769_v38 = vmul.f32 -1.442695, %v1537_v50  ;;  %v292_v60 = vld [vmem:[%s13810_s2 + $0x1d0] sm:$0xff]  ;;  %v3360_v58 = vld [vmem:[%s13812_s3 + $0x8] sm:$0xff]  ;;  %v7767_v18 = vmul.f32 -1.442695, %v1529_v35 }
 0x2cd   :  { %13915 = vst [vmem:[#allocation12_spill] sm:$0xff] %v12139_v43  ;;  %v3566_v63 = vpop.permute.xlu0 %3565  ;;  %v10102_v12 = vpop.eup %10101  ;;  %10123 = vpow2.f32 %v7763_v28  ;;  %6961 = vmatpush1.bf16.msra.mxu1 %v4851_v34  ;;  %3725 = vperm.xlu0 %8991, %v12054_v23   ;;  %v290_v28 = vld [vmem:[%s13810_s2 + $0x1c0] sm:$0xff]  ;;  %v1532_v34 = vadd.f32 %v13917_v30, %v287_v53  ;;  %v4852_v26 = vpack.c.bf16 %v4714_v44, %v4713_v56  ;;  %v7770_v44 = vmul.f32 -1.442695, %v1540_v6  ;;  %v3493_v30 = vld [vmem:[%s13812_s3 + $0x430] sm:$0xff] }
 0x2ce   :  { %v12147_v5 = vpop.eup %10103  ;;  %10125 = vpow2.f32 %v7766_v15  ;;  %6962 = vmatprep.subr.bf16.mxu1 %v13864_v32  ;;  %6831 = vmatprep.mubr.bf16.mxu1 %v9148_v10  ;;  %v2791_v45 = vadd.f32 1.0, %v10102_v12  ;;  %v4716_v43 = vmul.f32 %v11904_v52, %v3492_v42  ;;  %v1553_v29 = vadd.f32 %v13918_v2, %v292_v60  ;;  %v3494_v10 = vld [vmem:[%s13812_s3 + $0x438] sm:$0xff]  ;;  %v3361_v2 = vld [vmem:[%s13812_s3 + $0x10] sm:$0xff] }
 0x2cf   :  { %v12161_v50 = vpop.eup %10105  ;;  %10127 = vpow2.f32 %v7764_v8  ;;  %v4583_v12 = vmul.f32 %v3566_v63, %v3359_v46  ;;  %v13919_v42 = vld [vmem:[#allocation25_spill] sm:$0xff]  ;;  %v4715_v8 = vmul.f32 %v11895_v54, %v3491_v51  ;;  %v291_v54 = vld [vmem:[%s13810_s2 + $0x1c8] sm:$0xff] }
 0x2d0   :  { %v10108_v23 = vpop.eup %10107  ;;  %v3571_v15 = vpop.permute.xlu1 %3570  ;;  %3730 = vperm.xlu1 %8992, %v12113_v3   ;;  %10129 = vpow2.f32 %v7769_v38  ;;  %v1545_v56 = vadd.f32 %v13919_v42, %v290_v28  ;;  %v3362_v63 = vld [vmem:[%s13812_s3 + $0x18] sm:$0xff]  ;;  %v9150_v3 = vld [vmem:[%s13811_s4 + $0x80] ss:$52 sps:$4 sm:$0xff]  }
 0x2d1   :  { %v3576_v35 = vpop.permute.xlu0 %3575  ;;  %v12172_v39 = vpop.eup %10109  ;;  %v4584_v53 = vmul.f32 %v3571_v15, %v3360_v58  ;;  %6963 = vmatpush1.bf16.msra.mxu1 %v4852_v26  ;;  %3735 = vperm.xlu0 %8991, %v12048_v14   ;;  %v2794_v6 = vadd.f32 1.0, %v10108_v23  ;;  %10131 = vpow2.f32 %v7767_v18  ;;  %v7768_v14 = vmul.f32 -1.442695, %v1532_v34  ;;  %v13920_v58 = vld [vmem:[#allocation26_spill] sm:$0xff] }
 0x2d2   :  { %v10112_v52 = vpop.eup %10111  ;;  %6964 = vmatprep.subr.bf16.mxu1 %v13864_v32  ;;  %10133 = vrcp.f32 %v2791_v45  ;;  %v1556_v28 = vadd.f32 %v13920_v58, %v293_v49  ;;  %v4853_v51 = vpack.c.bf16 %v4716_v43, %v4715_v8  ;;  %v9151_v18 = vld [vmem:[%s13811_s4 + $0xec] ss:$52 sps:$4 sm:$0xff]   ;;  %v7773_v15 = vmul.f32 -1.442695, %v1553_v29  ;;  %v296_v45 = vld [vmem:[%s13810_s2 + $0x1f0] sm:$0xff] }
 0x2d3   :  { %v10114_v38 = vpop.eup %10113  ;;  %v4787_v60 = vpack.c.bf16 %v4584_v53, %v4583_v12  ;;  %v4718_v34 = vmul.f32 %v11928_v16, %v3494_v10  ;;  %v3496_v49 = vld [vmem:[%s13812_s3 + $0x448] sm:$0xff]  ;;  %v4585_v43 = vmul.f32 %v3576_v35, %v3361_v2  ;;  %v2792_v8 = vadd.f32 1.0, %v10112_v52  ;;  %v3363_v16 = vld [vmem:[%s13812_s3 + $0x20] sm:$0xff] }
 0x2d4   :  { %v12198_v46 = vpop.eup %10115  ;;  %v3581_v23 = vpop.permute.xlu1 %3580  ;;  %3740 = vperm.xlu1 %8992, %v12103_v55   ;;  %10135 = vpow2.f32 %v7770_v44  ;;  %v7771_v29 = vmul.f32 -1.442695, %v1545_v56  ;;  %v13921_v58 = vld [vmem:[#allocation27_spill] sm:$0xff]  ;;  %6832 = vmatmul.mubr.bf16.gmra.mrb[64].mxu1 %v9150_v3  ;;  %v2797_v10 = vadd.f32 1.0, %v10114_v38  ;;  %v4717_v52 = vmul.f32 %v11906_v59, %v3493_v30  ;;  %v3495_v44 = vld [vmem:[%s13812_s3 + $0x440] sm:$0xff] }
 0x2d5   :  { %v12207_v26 = vpop.eup %10117  ;;  %v4586_v12 = vmul.f32 %v3581_v23, %v3362_v63  ;;  %6285 = vmatpush1.bf16.msra.mxu0 %v4787_v60  ;;  %v3586_v53 = vpop.permute.xlu0 %3585  ;;  %v1548_v47 = vadd.f32 %v13921_v58, %v291_v54  ;;  %3745 = vperm.xlu0 %8991, %v12136_v48   ;;  %v3364_v55 = vld [vmem:[%s13812_s3 + $0x28] sm:$0xff]  ;;  %10137 = vrcp.f32 %v2794_v6  ;;  %v7774_v48 = vmul.f32 -1.442695, %v1556_v28  ;;  %v13922_v63 = vld [vmem:[#allocation28_spill] sm:$0xff]  ;;  %v294_v6 = vld [vmem:[%s13810_s2 + $0x1e0] sm:$0xff] }
 0x2d6   :  { %v12217_v42 = vpop.eup %10119  ;;  %6965 = vmatpush1.bf16.msra.mxu1 %v4853_v51  ;;  %6286 = vmatprep.subr.bf16.mxu0 %v13864_v32  ;;  %10139 = vpow2.f32 %v7768_v14  ;;  %v1569_v3 = vadd.f32 %v13922_v63, %v296_v45  ;;  %v4720_v38 = vmul.f32 %v11941_v37, %v3496_v49  ;;  %v4854_v60 = vpack.c.bf16 %v4718_v34, %v4717_v52  ;;  %v3498_v14 = vld [vmem:[%s13812_s3 + $0x458] sm:$0xff]  ;;  %v3500_v52 = vld [vmem:[%s13812_s3 + $0x468] sm:$0xff] }
 0x2d7   :  { %v12227_v35 = vpop.eup %10121  ;;  %v4788_v56 = vpack.c.bf16 %v4586_v12, %v4585_v43  ;;  %6966 = vmatprep.subr.bf16.mxu1 %v13864_v32  ;;  %6839 = vmatprep.mubr.bf16.mxu1 %v9151_v18  ;;  %10141 = vpow2.f32 %v7773_v15  ;;  %v4587_v28 = vmul.f32 %v3586_v53, %v3363_v16  ;;  %v7772_v23 = vmul.f32 -1.442695, %v1548_v47  ;;  %v3365_v18 = vld [vmem:[%s13812_s3 + $0x30] sm:$0xff]  ;;  %v3366_v15 = vld [vmem:[%s13812_s3 + $0x38] sm:$0xff] }
 0x2d8   :  { %v10124_v2 = vpop.eup %10123  ;;  %v3591_v59 = vpop.permute.xlu1 %3590  ;;  %3750 = vperm.xlu1 %8992, %v12161_v50   ;;  %10143 = vpow2.f32 %v7771_v29  ;;  %v4719_v37 = vmul.f32 %v11930_v17, %v3495_v44  ;;  %v9153_v50 = vld [vmem:[%s13811_s4 + $0xe8] ss:$52 sps:$4 sm:$0xff]   ;;  %v7777_v12 = vmul.f32 -1.442695, %v1569_v3  ;;  %v3497_v29 = vld [vmem:[%s13812_s3 + $0x450] sm:$0xff] }
 0x2d9   :  { %v10126_v54 = vpop.eup %10125  ;;  %v4588_v51 = vmul.f32 %v3591_v59, %v3364_v55  ;;  %6287 = vmatpush1.bf16.msra.mxu0 %v4788_v56  ;;  %v3596_v30 = vpop.permute.xlu0 %3595  ;;  %3755 = vperm.xlu0 %8991, %v12124_v20   ;;  %10145 = vrcp.f32 %v2792_v8  ;;  %v2795_v47 = vadd.f32 1.0, %v10124_v2  ;;  %v13923_v17 = vld [vmem:[#allocation29_spill] sm:$0xff]  ;;  %v9154_v8 = vld [vmem:[%s13811_s4 + $0x154] ss:$52 sps:$4 sm:$0xff]   ;;  %v3499_v59 = vld [vmem:[%s13812_s3 + $0x460] sm:$0xff] }
 0x2da   :  { %6288 = vmatprep.subr.bf16.mxu0 %v13864_v32  ;;  %v10128_v45 = vpop.eup %10127  ;;  %v1561_v34 = vadd.f32 %v13923_v17, %v294_v6  ;;  %6967 = vmatpush1.bf16.msra.mxu1 %v4854_v60  ;;  %10147 = vrcp.f32 %v2797_v10  ;;  %v2798_v20 = vadd.f32 1.0, %v10126_v54  ;;  %v4855_v53 = vpack.c.bf16 %v4720_v38, %v4719_v37  ;;  %v297_v55 = vld [vmem:[%s13810_s2 + $0x1f8] sm:$0xff] }
 0x2db   :  { %v4789_v49 = vpack.c.bf16 %v4588_v51, %v4587_v28  ;;  %v10130_v43 = vpop.eup %10129  ;;  %6968 = vmatprep.subr.bf16.mxu1 %v13864_v32  ;;  %10149 = vpow2.f32 %v7774_v48  ;;  %v4722_v10 = vmul.f32 %v11964_v57, %v3498_v14  ;;  %v4589_v44 = vmul.f32 %v3596_v30, %v3365_v18  ;;  %v3367_v48 = vld [vmem:[%s13812_s3 + $0x40] sm:$0xff]  ;;  %v3368_v57 = vld [vmem:[%s13812_s3 + $0x48] sm:$0xff]  ;;  %v3502_v37 = vld [vmem:[%s13812_s3 + $0x478] sm:$0xff] }
 0x2dc   :  { %v3601_v58 = vpop.permute.xlu1 %3600  ;;  %v10132_v16 = vpop.eup %10131  ;;  %3760 = vperm.xlu1 %8992, %v12147_v5   ;;  %v2796_v3 = vadd.f32 1.0, %v10128_v45  ;;  %10151 = vpow2.f32 %v7772_v23  ;;  %6840 = vmatmul.mubr.bf16.gmra.mrb[0].mxu1 %v9153_v50  ;;  %v7775_v6 = vmul.f32 -1.442695, %v1561_v34  ;;  %v295_v5 = vld [vmem:[%s13810_s2 + $0x1e8] sm:$0xff]  ;;  %v4721_v38 = vmul.f32 %v11943_v25, %v3497_v29  ;;  %v13924_v14 = vld [vmem:[#allocation30_spill] sm:$0xff] }
 0x2dd   :  { %v4590_v56 = vmul.f32 %v3601_v58, %v3366_v15  ;;  %6289 = vmatpush1.bf16.msra.mxu0 %v4789_v49  ;;  %v3606_v2 = vpop.permute.xlu0 %3605  ;;  %v12272_v63 = vpop.eup %10133  ;;  %3765 = vperm.xlu0 %8991, %v12198_v46   ;;  %10153 = vrcp.f32 %v2795_v47  ;;  %v2801_v60 = vadd.f32 1.0, %v10130_v43  ;;  %v1572_v28 = vadd.f32 %v13924_v14, %v297_v55  ;;  %v13925_v47 = vld [vmem:[#allocation31_spill] sm:$0xff]  ;;  %v3369_v49 = vld [vmem:[%s13812_s3 + $0x50] sm:$0xff]  ;;  %v3370_v43 = vld [vmem:[%s13812_s3 + $0x58] sm:$0xff] }
 0x2de   :  { %6969 = vmatpush1.bf16.msra.mxu1 %v4855_v53  ;;  %6290 = vmatprep.subr.bf16.mxu0 %v13864_v32  ;;  %v10136_v46 = vpop.eup %10135  ;;  %10155 = vrcp.f32 %v2798_v20  ;;  %v4724_v51 = vmul.f32 %v11974_v13, %v3500_v52  ;;  %v4856_v23 = vpack.c.bf16 %v4722_v10, %v4721_v38  ;;  %v4591_v18 = vmul.f32 %v3606_v2, %v3367_v48  ;;  %v428_v48 = vld [vmem:[%s13810_s2 + $0x610] sm:$0xff]  ;;  %v3372_v38 = vld [vmem:[%s13812_s3 + $0x68] sm:$0xff] }
 0x2df   :  { %v4790_v54 = vpack.c.bf16 %v4590_v56, %v4589_v44  ;;  %6970 = vmatprep.subr.bf16.mxu1 %v13864_v32  ;;  %6847 = vmatprep.mubr.bf16.mxu1 %v9154_v8  ;;  %v12292_v25 = vpop.eup %10137  ;;  %10157 = vpow2.f32 %v7777_v12  ;;  %v2799_v13 = vadd.f32 1.0, %v10132_v16  ;;  %v1564_v17 = vadd.f32 %v13925_v47, %v295_v5  ;;  %v9157_v16 = vld [vmem:[%s13811_s4 + $0x1bc] ss:$52 sps:$4 sm:$0xff]   ;;  %v3504_v44 = vld [vmem:[%s13812_s3 + $0x488] sm:$0xff] }
 0x2e0   :  { %v3611_v30 = vpop.permute.xlu1 %3610  ;;  %3770 = vperm.xlu1 %8992, %v12217_v42   ;;  %v10140_v45 = vpop.eup %10139  ;;  %10159 = vrcp.f32 %v2796_v3  ;;  %v4723_v34 = vmul.f32 %v11966_v27, %v3499_v59  ;;  %v9156_v42 = vld [vmem:[%s13811_s4 + $0x150] ss:$52 sps:$4 sm:$0xff]   ;;  %v2802_v12 = vadd.f32 1.0, %v10136_v46  ;;  %v7778_v29 = vmul.f32 -1.442695, %v1572_v28 }
 0x2e1   :  { %v4592_v15 = vmul.f32 %v3611_v30, %v3368_v57  ;;  %6291 = vmatpush1.bf16.msra.mxu0 %v4790_v54  ;;  %v3616_v50 = vpop.permute.xlu0 %3615  ;;  %3775 = vperm.xlu0 %8991, %v12172_v39   ;;  %v10142_v20 = vpop.eup %10141  ;;  %10161 = vpow2.f32 %v7775_v6  ;;  %v3501_v39 = vld [vmem:[%s13812_s3 + $0x470] sm:$0xff]  ;;  %v2800_v10 = vadd.f32 1.0, %v10140_v45  ;;  %v4726_v52 = vmul.f32 %v11990_v24, %v3502_v37  ;;  %v426_v57 = vld [vmem:[%s13810_s2 + $0x600] sm:$0xff] }
 0x2e2   :  { %6292 = vmatprep.subr.bf16.mxu0 %v13864_v32  ;;  %6971 = vmatpush1.bf16.msra.mxu1 %v4856_v23  ;;  %v10144_v53 = vpop.eup %10143  ;;  %10163 = vrcp.f32 %v2801_v60  ;;  %v4857_v58 = vpack.c.bf16 %v4724_v51, %v4723_v34  ;;  %v4593_v56 = vmul.f32 %v3616_v50, %v3369_v49  ;;  %v2805_v24 = vadd.f32 1.0, %v10142_v20  ;;  %v3503_v60 = vld [vmem:[%s13812_s3 + $0x480] sm:$0xff]  ;;  %v427_v23 = vld [vmem:[%s13810_s2 + $0x608] sm:$0xff]  ;;  %v3373_v47 = vld [vmem:[%s13812_s3 + $0x70] sm:$0xff] }
 0x2e3   :  { %v4791_v27 = vpack.c.bf16 %v4592_v15, %v4591_v18  ;;  %6972 = vmatprep.subr.bf16.mxu1 %v13864_v32  ;;  %v10146_v55 = vpop.eup %10145  ;;  %10165 = vrcp.f32 %v2799_v13  ;;  %v7776_v5 = vmul.f32 -1.442695, %v1564_v17  ;;  %v2803_v54 = vadd.f32 1.0, %v10144_v53  ;;  %v3506_v15 = vld [vmem:[%s13812_s3 + $0x498] sm:$0xff] }
 0x2e4   :  { %v3621_v8 = vpop.permute.xlu1 %3620  ;;  %3780 = vperm.xlu1 %8992, %v12207_v26   ;;  %v12329_v6 = vpop.eup %10147  ;;  %6848 = vmatmul.mubr.bf16.gmra.mrb[4].mxu1 %v9156_v42  ;;  %v3371_v26 = vld [vmem:[%s13812_s3 + $0x60] sm:$0xff]  ;;  %10167 = vrcp.f32 %v2802_v12  ;;  %v4725_v46 = vmul.f32 %v11976_v22, %v3501_v39  ;;  %v2097_v30 = vadd.f32 %v11695_v0, %v428_v48  ;;  %v2089_v22 = vadd.f32 %v11706_v21, %v426_v57  ;;  %v3374_v17 = vld [vmem:[%s13812_s3 + $0x78] sm:$0xff] }
 0x2e5   :  { %v4594_v2 = vmul.f32 %v3621_v8, %v3370_v43  ;;  %6293 = vmatpush1.bf16.msra.mxu0 %v4791_v27  ;;  %v3626_v3 = vpop.permute.xlu0 %3625  ;;  %3785 = vperm.xlu0 %8991, %v12272_v63   ;;  %v10150_v59 = vpop.eup %10149  ;;  %10169 = vpow2.f32 %v7778_v29  ;;  %v4728_v63 = vmul.f32 %v12008_v40, %v3504_v44  ;;  %v4727_v21 = vmul.f32 %v11992_v61, %v3503_v60  ;;  %v9159_v34 = vld [vmem:[%s13811_s4 + $0x1b8] ss:$52 sps:$4 sm:$0xff]   ;;  %v3505_v27 = vld [vmem:[%s13812_s3 + $0x490] sm:$0xff]  ;;  %v430_v44 = vld [vmem:[%s13810_s2 + $0x620] sm:$0xff] }
 0x2e6   :  { %6973 = vmatpush1.bf16.msra.mxu1 %v4857_v58  ;;  %6294 = vmatprep.subr.bf16.mxu0 %v13864_v32  ;;  %v10152_v28 = vpop.eup %10151  ;;  %10171 = vrcp.f32 %v2800_v10  ;;  %v4858_v18 = vpack.c.bf16 %v4726_v52, %v4725_v46  ;;  %v4595_v40 = vmul.f32 %v3626_v3, %v3371_v26  ;;  %v2806_v0 = vadd.f32 1.0, %v10150_v59  ;;  %v429_v42 = vld [vmem:[%s13810_s2 + $0x618] sm:$0xff]  ;;  %v3507_v57 = vld [vmem:[%s13812_s3 + $0x4a0] sm:$0xff]  ;;  %v432_v26 = vld [vmem:[%s13810_s2 + $0x630] sm:$0xff] }
 0x2e7   :  { %v4792_v14 = vpack.c.bf16 %v4594_v2, %v4593_v56  ;;  %6974 = vmatprep.subr.bf16.mxu1 %v13864_v32  ;;  %6855 = vmatprep.mubr.bf16.mxu1 %v9157_v16  ;;  %v10154_v37 = vpop.eup %10153  ;;  %10173 = vrcp.f32 %v2805_v24  ;;  %v2804_v43 = vadd.f32 1.0, %v10152_v28  ;;  %v4859_v12 = vpack.c.bf16 %v4728_v63, %v4727_v21  ;;  %v9160_v58 = vld [vmem:[%s13811_s4 + $0x224] ss:$52 sps:$4 sm:$0xff]   ;;  %v431_v46 = vld [vmem:[%s13810_s2 + $0x628] sm:$0xff]  ;;  %v3509_v21 = vld [vmem:[%s13812_s3 + $0x4b0] sm:$0xff] }
 0x2e8   :  { %v3631_v51 = vpop.permute.xlu1 %3630  ;;  %3790 = vperm.xlu1 %8992, %v10146_v55   ;;  %v12353_v13 = vpop.eup %10155  ;;  %10175 = vpow2.f32 %v7776_v5  ;;  %v7907_v29 = vmul.f32 -1.442695, %v2089_v22  ;;  %v4730_v8 = vmul.f32 %v12021_v31, %v3506_v15  ;;  %v7909_v52 = vmul.f32 -1.442695, %v2097_v30  ;;  %v3375_v31 = vld [vmem:[%s13812_s3 + $0x80] sm:$0xff]  ;;  %v3510_v28 = vld [vmem:[%s13812_s3 + $0x4b8] sm:$0xff] }
 0x2e9   :  { %v4596_v50 = vmul.f32 %v3631_v51, %v3372_v38  ;;  %6295 = vmatpush1.bf16.msra.mxu0 %v4792_v14  ;;  %v3636_v45 = vpop.permute.xlu0 %3635  ;;  %3795 = vperm.xlu0 %8991, %v12227_v35   ;;  %v10158_v49 = vpop.eup %10157  ;;  %v2092_v35 = vadd.f32 %v11722_v7, %v427_v23  ;;  %10177 = vrcp.f32 %v2803_v54  ;;  %v3508_v7 = vld [vmem:[%s13812_s3 + $0x4a8] sm:$0xff]  ;;  %v2100_v3 = vadd.f32 %v11715_v41, %v429_v42  ;;  %v3377_v22 = vld [vmem:[%s13812_s3 + $0x90] sm:$0xff] }
 0x2ea   :  { %6296 = vmatprep.subr.bf16.mxu0 %v13864_v32  ;;  %6975 = vmatpush1.bf16.msra.mxu1 %v4858_v18  ;;  %v10160_v20 = vpop.eup %10159  ;;  %v4597_v16 = vmul.f32 %v3636_v45, %v3373_v47  ;;  %10179 = vrcp.f32 %v2806_v0  ;;  %v2809_v2 = vadd.f32 1.0, %v10158_v49  ;;  %v4729_v48 = vmul.f32 %v12010_v1, %v3505_v27  ;;  %v9162_v18 = vld [vmem:[%s13811_s4 + $0x220] ss:$52 sps:$4 sm:$0xff]  }
 0x2eb   :  { %v4793_v61 = vpack.c.bf16 %v4596_v50, %v4595_v40  ;;  %6976 = vmatprep.subr.bf16.mxu1 %v13864_v32  ;;  %v10162_v39 = vpop.eup %10161  ;;  %10181 = vrcp.f32 %v2804_v43  ;;  %v7908_v5 = vmul.f32 -1.442695, %v2092_v35  ;;  %v4732_v41 = vmul.f32 %v12029_v9, %v3508_v7 }
 0x2ec   :  { %v3641_v53 = vpop.permute.xlu1 %3640  ;;  %3800 = vperm.xlu1 %8992, %v12292_v25   ;;  %v12386_v56 = vpop.eup %10163  ;;  %6856 = vmatmul.mubr.bf16.gmra.mrb[8].mxu1 %v9159_v34  ;;  %v3376_v25 = vld [vmem:[%s13812_s3 + $0x88] sm:$0xff]  ;;  %v2807_v59 = vadd.f32 1.0, %v10162_v39  ;;  %10183 = vpow2.f32 %v7907_v29  ;;  %v2105_v1 = vadd.f32 %v11763_v62, %v430_v44  ;;  %v4860_v14 = vpack.c.bf16 %v4730_v8, %v4729_v48  ;;  %v3511_v8 = vld [vmem:[%s13812_s3 + $0x4c0] sm:$0xff] }
 0x2ed   :  { %v4598_v55 = vmul.f32 %v3641_v53, %v3374_v17  ;;  %6297 = vmatpush1.bf16.msra.mxu0 %v4793_v61  ;;  %v3646_v10 = vpop.permute.xlu0 %3645  ;;  %3805 = vperm.xlu0 %8991, %v10154_v37   ;;  %v10166_v38 = vpop.eup %10165  ;;  %10185 = vpow2.f32 %v7909_v52  ;;  %v4731_v62 = vmul.f32 %v12023_v33, %v3507_v57  ;;  %v7910_v23 = vmul.f32 -1.442695, %v2100_v3  ;;  %v3378_v37 = vld [vmem:[%s13812_s3 + $0x98] sm:$0xff]  ;;  %v9163_v17 = vld [vmem:[%s13811_s4 + $0x28c] ss:$52 sps:$4 sm:$0xff]  }
 0x2ee   :  { %6977 = vmatpush1.bf16.msra.mxu1 %v4859_v12  ;;  %6298 = vmatprep.subr.bf16.mxu0 %v13864_v32  ;;  %v12409_v60 = vpop.eup %10167  ;;  %v4599_v63 = vmul.f32 %v3646_v10, %v3375_v31  ;;  %10187 = vrcp.f32 %v2809_v2  ;;  %v2113_v15 = vadd.f32 %v11753_v19, %v432_v26  ;;  %v2108_v50 = vadd.f32 %v11781_v11, %v431_v46  ;;  %v436_v11 = vld [vmem:[%s13810_s2 + $0x650] sm:$0xff]  ;;  %v3512_v61 = vld [vmem:[%s13812_s3 + $0x4c8] sm:$0xff]  ;;  %v434_v12 = vld [vmem:[%s13810_s2 + $0x640] sm:$0xff] }
 0x2ef   :  { %v4794_v24 = vpack.c.bf16 %v4598_v55, %v4597_v16  ;;  %6978 = vmatprep.subr.bf16.mxu1 %v13864_v32  ;;  %6863 = vmatprep.mubr.bf16.mxu1 %v9160_v58  ;;  %v10170_v30 = vpop.eup %10169  ;;  %10189 = vpow2.f32 %v7908_v5  ;;  %v4861_v0 = vpack.c.bf16 %v4732_v41, %v4731_v62  ;;  %v7911_v19 = vmul.f32 -1.442695, %v2105_v1  ;;  %v3380_v53 = vld [vmem:[%s13812_s3 + $0xa8] sm:$0xff]  ;;  %v13926_v58 = vld [vmem:[#allocation4_spill] sm:$0xff]  ;;  %v13927_v55 = vld [vmem:[#allocation2_spill] sm:$0xff] }
 0x2f0   :  { %v3651_v54 = vpop.permute.xlu1 %3650  ;;  %3810 = vperm.xlu1 %8992, %v10160_v20   ;;  %v10172_v33 = vpop.eup %10171  ;;  %10191 = vrcp.f32 %v2807_v59  ;;  %v2810_v49 = vadd.f32 1.0, %v10170_v30  ;;  %v4734_v43 = vmul.f32 %v12050_v4, %v3510_v28  ;;  %v3379_v4 = vld [vmem:[%s13812_s3 + $0xa0] sm:$0xff]  ;;  %v4733_v39 = vmul.f32 %v13926_v58, %v3509_v21  ;;  %v435_v48 = vld [vmem:[%s13810_s2 + $0x648] sm:$0xff]  ;;  %v3514_v5 = vld [vmem:[%s13812_s3 + $0x4d8] sm:$0xff] }
 0x2f1   :  { %v4600_v9 = vmul.f32 %v3651_v54, %v3376_v25  ;;  %6299 = vmatpush1.bf16.msra.mxu0 %v4794_v24  ;;  %v3656_v51 = vpop.permute.xlu0 %3655  ;;  %3815 = vperm.xlu0 %8991, %v12329_v6   ;;  %v433_v6 = vld [vmem:[%s13810_s2 + $0x638] sm:$0xff]  ;;  %v12431_v45 = vpop.eup %10173  ;;  %10193 = vpow2.f32 %v7910_v23  ;;  %v7912_v16 = vmul.f32 -1.442695, %v2108_v50  ;;  %v2129_v10 = vadd.f32 %v13927_v55, %v436_v11  ;;  %v13928_v2 = vld [vmem:[#allocation6_spill] sm:$0xff]  ;;  %v3381_v46 = vld [vmem:[%s13812_s3 + $0xb0] sm:$0xff] }
 0x2f2   :  { %6300 = vmatprep.subr.bf16.mxu0 %v13864_v32  ;;  %6979 = vmatpush1.bf16.msra.mxu1 %v4860_v14  ;;  %v10176_v34 = vpop.eup %10175  ;;  %v4601_v42 = vmul.f32 %v3656_v51, %v3377_v22  ;;  %v2116_v29 = vadd.f32 %v11772_v36, %v433_v6  ;;  %v4736_v31 = vmul.f32 %v13928_v2, %v3512_v61  ;;  %10195 = vpow2.f32 %v7911_v19  ;;  %v13929_v36 = vld [vmem:[#allocation3_spill] sm:$0xff]  ;;  %v13930_v54 = vld [vmem:[#allocation5_spill] sm:$0xff]  ;;  %v13932_v50 = vld [vmem:[#allocation8_spill] sm:$0xff] }
 0x2f3   :  { %v4795_v40 = vpack.c.bf16 %v4600_v9, %v4599_v63  ;;  %6980 = vmatprep.subr.bf16.mxu1 %v13864_v32  ;;  %v12451_v27 = vpop.eup %10177  ;;  %v2808_v44 = vadd.f32 1.0, %v10176_v34  ;;  %v2121_v3 = vadd.f32 %v13929_v36, %v434_v12  ;;  %10197 = vrcp.f32 %v2810_v49  ;;  %v3382_v28 = vld [vmem:[%s13812_s3 + $0xb8] sm:$0xff]  ;;  %v3516_v21 = vld [vmem:[%s13812_s3 + $0x4e8] sm:$0xff]  ;;  %v3515_v12 = vld [vmem:[%s13812_s3 + $0x4e0] sm:$0xff] }
 0x2f4   :  { %v3661_v47 = vpop.permute.xlu1 %3660  ;;  %3820 = vperm.xlu1 %8992, %v12353_v13   ;;  %6864 = vmatmul.mubr.bf16.gmra.mrb[12].mxu1 %v9162_v18  ;;  %v7913_v13 = vmul.f32 -1.442695, %v2113_v15  ;;  %v12466_v52 = vpop.eup %10179  ;;  %v4862_v24 = vpack.c.bf16 %v4734_v43, %v4733_v39  ;;  %v4735_v1 = vmul.f32 %v13930_v54, %v3511_v8  ;;  %v7914_v14 = vmul.f32 -1.442695, %v2116_v29  ;;  %v9165_v63 = vld [vmem:[%s13811_s4 + $0x288] ss:$52 sps:$4 sm:$0xff]  }
 0x2f5   :  { %v4602_v35 = vmul.f32 %v3661_v47, %v3378_v37  ;;  %6301 = vmatpush1.bf16.msra.mxu0 %v4795_v40  ;;  %v3666_v20 = vpop.permute.xlu0 %3665  ;;  %3825 = vperm.xlu0 %8991, %v10166_v38   ;;  %v12474_v57 = vpop.eup %10181  ;;  %v7917_v30 = vmul.f32 -1.442695, %v2129_v10  ;;  %v437_v62 = vld [vmem:[%s13810_s2 + $0x658] sm:$0xff]  ;;  %v3513_v18 = vld [vmem:[%s13812_s3 + $0x4d0] sm:$0xff]  ;;  %v3383_v43 = vld [vmem:[%s13812_s3 + $0xc0] sm:$0xff] }
 0x2f6   :  { %6981 = vmatpush1.bf16.msra.mxu1 %v4861_v0  ;;  %6302 = vmatprep.subr.bf16.mxu0 %v13864_v32  ;;  %v4603_v26 = vmul.f32 %v3666_v20, %v3379_v4  ;;  %v10184_v41 = vpop.eup %10183  ;;  %10199 = vpow2.f32 %v7913_v13  ;;  %v4863_v37 = vpack.c.bf16 %v4736_v31, %v4735_v1  ;;  %v9166_v40 = vld [vmem:[%s13811_s4 + $0x2f4] ss:$52 sps:$4 sm:$0xff]   ;;  %v4738_v0 = vmul.f32 %v13932_v50, %v3514_v5  ;;  %v13936_v2 = vld [vmem:[#allocation9_spill] sm:$0xff] }
 0x2f7   :  { %v4796_v7 = vpack.c.bf16 %v4602_v35, %v4601_v42  ;;  %6982 = vmatprep.subr.bf16.mxu1 %v13864_v32  ;;  %6871 = vmatprep.mubr.bf16.mxu1 %v9163_v17  ;;  %v10186_v9 = vpop.eup %10185  ;;  %10201 = vpow2.f32 %v7912_v16  ;;  %v2939_v47 = vadd.f32 1.0, %v10184_v41  ;;  %v3384_v61 = vld [vmem:[%s13812_s3 + $0xc8] sm:$0xff]  ;;  %v13933_v42 = vld [vmem:[#allocation41_spill] sm:$0xff]  ;;  %v4739_v31 = vmul.f32 %v13936_v2, %v3515_v12  ;;  %v13937_v1 = vld [vmem:[#allocation12_spill] sm:$0xff] }
 0x2f8   :  { %v3671_v25 = vpop.permute.xlu1 %3670  ;;  %3830 = vperm.xlu1 %8992, %v10172_v33   ;;  %v12495_v23 = vpop.eup %10187  ;;  %10203 = vrcp.f32 %v2808_v44  ;;  %v7915_v33 = vmul.f32 -1.442695, %v2121_v3  ;;  %v2941_v49 = vadd.f32 1.0, %v10186_v9  ;;  %v2132_v35 = vadd.f32 %v13933_v42, %v437_v62  ;;  %v13934_v20 = vld [vmem:[#allocation7_spill] sm:$0xff]  ;;  %v3386_v36 = vld [vmem:[%s13812_s3 + $0xd8] sm:$0xff]  ;;  %v3525_v2 = vld [vmem:[%s13812_s3 + $0x530] sm:$0xff] }
 0x2f9   :  { %v4604_v38 = vmul.f32 %v3671_v25, %v3380_v53  ;;  %6303 = vmatpush1.bf16.msra.mxu0 %v4796_v7  ;;  %v3676_v59 = vpop.permute.xlu0 %3675  ;;  %3835 = vperm.xlu0 %8991, %v12386_v56   ;;  %v13931_v56 = vld [vmem:[#allocation44_spill] sm:$0xff]  ;;  %v10190_v6 = vpop.eup %10189  ;;  %10205 = vpow2.f32 %v7914_v14  ;;  %v3518_v7 = vld [vmem:[%s13812_s3 + $0x4f8] sm:$0xff]  ;;  %v3388_v62 = vld [vmem:[%s13812_s3 + $0xe8] sm:$0xff] }
 0x2fa   :  { %6304 = vmatprep.subr.bf16.mxu0 %v13864_v32  ;;  %6983 = vmatpush1.bf16.msra.mxu1 %v4862_v24  ;;  %v2124_v22 = vadd.f32 %v13931_v56, %v435_v48  ;;  %v4605_v19 = vmul.f32 %v3676_v59, %v3381_v46  ;;  %v10192_v34 = vpop.eup %10191  ;;  %10207 = vpow2.f32 %v7917_v30  ;;  %v2940_v58 = vadd.f32 1.0, %v10190_v6  ;;  %v3385_v25 = vld [vmem:[%s13812_s3 + $0xd0] sm:$0xff]  ;;  %v3387_v30 = vld [vmem:[%s13812_s3 + $0xe0] sm:$0xff]  ;;  %v13938_v56 = vld [vmem:[#allocation11_spill] sm:$0xff] }
 0x2fb   :  { %v4797_v51 = vpack.c.bf16 %v4604_v38, %v4603_v26  ;;  %6984 = vmatprep.subr.bf16.mxu1 %v13864_v32  ;;  %v10194_v13 = vpop.eup %10193  ;;  %10209 = vpow2.f32 %v7915_v33  ;;  %v9168_v3 = vld [vmem:[%s13811_s4 + $0x2f0] ss:$52 sps:$4 sm:$0xff]   ;;  %v7918_v24 = vmul.f32 -1.442695, %v2132_v35  ;;  %v4742_v46 = vmul.f32 %v13937_v1, %v3518_v7 }
 0x2fc   :  { %v3681_v15 = vpop.permute.xlu1 %3680  ;;  %3840 = vperm.xlu1 %8992, %v12409_v60   ;;  %6872 = vmatmul.mubr.bf16.gmra.mrb[16].mxu1 %v9165_v63  ;;  %v4737_v60 = vmul.f32 %v13934_v20, %v3513_v18  ;;  %v7916_v53 = vmul.f32 -1.442695, %v2124_v22  ;;  %10211 = vrcp.f32 %v2939_v47  ;;  %v10196_v44 = vpop.eup %10195  ;;  %v2942_v38 = vadd.f32 1.0, %v10194_v13  ;;  %v9169_v41 = vld [vmem:[%s13811_s4 + $0x35c] ss:$52 sps:$4 sm:$0xff]   ;;  %v3519_v13 = vld [vmem:[%s13812_s3 + $0x500] sm:$0xff] }
 0x2fd   :  { %v4606_v17 = vmul.f32 %v3681_v15, %v3382_v28  ;;  %6305 = vmatpush1.bf16.msra.mxu0 %v4797_v51  ;;  %v3686_v11 = vpop.permute.xlu0 %3685  ;;  %3845 = vperm.xlu0 %8991, %v12451_v27   ;;  %v13935_v27 = vld [vmem:[#allocation10_spill] sm:$0xff]  ;;  %10213 = vrcp.f32 %v2941_v49  ;;  %v12540_v48 = vpop.eup %10197  ;;  %v2943_v14 = vadd.f32 1.0, %v10196_v44 }
 0x2fe   :  { %6985 = vmatpush1.bf16.msra.mxu1 %v4863_v37  ;;  %6306 = vmatprep.subr.bf16.mxu0 %v13864_v32  ;;  %v4740_v29 = vmul.f32 %v13935_v27, %v3516_v21  ;;  %v4864_v8 = vpack.c.bf16 %v4738_v0, %v4737_v60  ;;  %v4607_v16 = vmul.f32 %v3686_v11, %v3383_v43  ;;  %10215 = vpow2.f32 %v7916_v53  ;;  %v9171_v11 = vld [vmem:[%s13811_s4 + $0x358] ss:$52 sps:$4 sm:$0xff]  }
 0x2ff   :  { %v4798_v4 = vpack.c.bf16 %v4606_v17, %v4605_v19  ;;  %6986 = vmatprep.subr.bf16.mxu1 %v13864_v32  ;;  %6879 = vmatprep.mubr.bf16.mxu1 %v9166_v40  ;;  %10217 = vrcp.f32 %v2940_v58  ;;  %v3521_v19 = vld [vmem:[%s13812_s3 + $0x510] sm:$0xff]  ;;  %v3522_v17 = vld [vmem:[%s13812_s3 + $0x518] sm:$0xff]  ;;  %v3520_v27 = vld [vmem:[%s13812_s3 + $0x508] sm:$0xff] }
 0x300   :  { %v3691_v39 = vpop.permute.xlu1 %3690  ;;  %3850 = vperm.xlu1 %8992, %v12474_v57   ;;  %v10200_v5 = vpop.eup %10199  ;;  %v4865_v26 = vpack.c.bf16 %v4740_v29, %v4739_v31  ;;  %10219 = vpow2.f32 %v7918_v24  ;;  %v9172_v43 = vld [vmem:[%s13811_s4 + $0x3c4] ss:$52 sps:$4 sm:$0xff]  }
 0x301   :  { %v4608_v55 = vmul.f32 %v3691_v39, %v3384_v61  ;;  %6307 = vmatpush1.bf16.msra.mxu0 %v4798_v4  ;;  %v3696_v10 = vpop.permute.xlu0 %3695  ;;  %3855 = vperm.xlu0 %8991, %v12431_v45   ;;  %v3517_v45 = vld [vmem:[%s13812_s3 + $0x4f0] sm:$0xff]  ;;  %v10202_v54 = vpop.eup %10201  ;;  %10221 = vrcp.f32 %v2942_v38  ;;  %v2945_v18 = vadd.f32 1.0, %v10200_v5  ;;  %v3526_v31 = vld [vmem:[%s13812_s3 + $0x538] sm:$0xff] }
 0x302   :  { %6308 = vmatprep.subr.bf16.mxu0 %v13864_v32  ;;  %6987 = vmatpush1.bf16.msra.mxu1 %v4864_v8  ;;  %v4609_v28 = vmul.f32 %v3696_v10, %v3385_v25  ;;  %v10204_v51 = vpop.eup %10203  ;;  %v4741_v22 = vmul.f32 %v13938_v56, %v3517_v45  ;;  %v2944_v15 = vadd.f32 1.0, %v10202_v54  ;;  %10223 = vrcp.f32 %v2943_v14  ;;  %v9174_v25 = vld [vmem:[%s13811_s4 + $0x3c0] ss:$52 sps:$4 sm:$0xff]  }
 0x303   :  { %v4799_v57 = vpack.c.bf16 %v4608_v55, %v4607_v16  ;;  %6988 = vmatprep.subr.bf16.mxu1 %v13864_v32 }
 0x304   :  { %v3701_v59 = vpop.permute.xlu1 %3700  ;;  %3860 = vperm.xlu1 %8992, %v12466_v52   ;;  %6880 = vmatmul.mubr.bf16.gmra.mrb[20].mxu1 %v9168_v3  ;;  %v10206_v52 = vpop.eup %10205  ;;  %v4866_v6 = vpack.c.bf16 %v4742_v46, %v4741_v22  ;;  %10225 = vrcp.f32 %v2944_v15 }
 0x305   :  { %v4610_v63 = vmul.f32 %v3701_v59, %v3386_v36  ;;  %6309 = vmatpush1.bf16.msra.mxu0 %v4799_v57  ;;  %v3706_v9 = vpop.permute.xlu0 %3705  ;;  %3865 = vperm.xlu0 %8991, %v10192_v34   ;;  %v10208_v40 = vpop.eup %10207  ;;  %v2946_v42 = vadd.f32 1.0, %v10206_v52  ;;  %10227 = vrcp.f32 %v2945_v18  ;;  %v3523_v59 = vld [vmem:[%s13812_s3 + $0x520] sm:$0xff] }
 0x306   :  { %6989 = vmatpush1.bf16.msra.mxu1 %v4865_v26  ;;  %6310 = vmatprep.subr.bf16.mxu0 %v13864_v32  ;;  %v4611_v50 = vmul.f32 %v3706_v9, %v3387_v30  ;;  %v10210_v47 = vpop.eup %10209  ;;  %v2949_v7 = vadd.f32 1.0, %v10208_v40  ;;  %v3530_v30 = vld [vmem:[%s13812_s3 + $0x558] sm:$0xff] }
 0x307   :  { %v4800_v37 = vpack.c.bf16 %v4610_v63, %v4609_v28  ;;  %6990 = vmatprep.subr.bf16.mxu1 %v13864_v32  ;;  %6887 = vmatprep.mubr.bf16.mxu1 %v9169_v41  ;;  %v10212_v34 = vpop.eup %10211  ;;  %v2947_v20 = vadd.f32 1.0, %v10210_v47  ;;  %10229 = vrcp.f32 %v2946_v42  ;;  %v3524_v41 = vld [vmem:[%s13812_s3 + $0x528] sm:$0xff] }
 0x308   :  { %v3711_v33 = vpop.permute.xlu1 %3710  ;;  %3870 = vperm.xlu1 %8992, %v10204_v51   ;;  %v10214_v61 = vpop.eup %10213  ;;  %v3529_v51 = vld [vmem:[%s13812_s3 + $0x550] sm:$0xff] }
 0x309   :  { %v4612_v0 = vmul.f32 %v3711_v33, %v3388_v62  ;;  %6311 = vmatpush1.bf16.msra.mxu0 %v4800_v37  ;;  %v4376_v21 = vpop.permute.xlu0 %4375  ;;  %3875 = vperm.xlu0 %8991, %v12495_v23   ;;  %v10216_v35 = vpop.eup %10215  ;;  %10231 = vrcp.f32 %v2947_v20  ;;  %v9177_v62 = vld [vmem:[%s13811_s4 + $0x428] ss:$52 sps:$4 sm:$0xff]  }
 0x30a   :  { %6312 = vmatprep.subr.bf16.mxu0 %v13864_v32  ;;  %6991 = vmatpush1.bf16.msra.mxu1 %v4866_v6  ;;  %v12575_v60 = vmul.f32 %v4376_v21, %v3521_v19  ;;  %v10218_v53 = vpop.eup %10217  ;;  %v2948_v58 = vadd.f32 1.0, %v10216_v35  ;;  %v9178_v37 = vld [vmem:[%s13811_s4 + $0x494] ss:$52 sps:$4 sm:$0xff]   ;;  %v3527_v6 = vld [vmem:[%s13812_s3 + $0x540] sm:$0xff] }
 0x30b   :  { %v4801_v49 = vpack.c.bf16 %v4612_v0, %v4611_v50  ;;  %7129 = vmatprep.subr.bf16.mxu1 %v13864_v32  ;;  %v10220_v8 = vpop.eup %10219  ;;  %v3528_v50 = vld [vmem:[%s13812_s3 + $0x548] sm:$0xff] }
 0x30c   :  { %v4381_v23 = vpop.permute.xlu1 %4380  ;;  %3880 = vperm.xlu1 %8992, %v12540_v48   ;;  %6888 = vmatmul.mubr.bf16.gmra.mrb[24].mxu1 %v9171_v11  ;;  %v10222_v44 = vpop.eup %10221  ;;  %v9175_v48 = vld [vmem:[%s13811_s4 + $0x42c] ss:$52 sps:$4 sm:$0xff]   ;;  %v2950_v57 = vadd.f32 1.0, %v10220_v8  ;;  %10233 = vrcp.f32 %v2948_v58 }
 0x30d   :  { %v12577_v12 = vmul.f32 %v4381_v23, %v3522_v17  ;;  %6313 = vmatpush1.bf16.msra.mxu0 %v4801_v49  ;;  %v4366_v4 = vpop.permute.xlu0 %4365  ;;  %4525 = vperm.xlu0 %8991, %v10212_v34   ;;  %v10224_v36 = vpop.eup %10223  ;;  %10235 = vrcp.f32 %v2949_v7  ;;  %v3533_v49 = vld [vmem:[%s13812_s3 + $0x570] sm:$0xff] }
 0x30e   :  { %6895 = vmatprep.mubr.bf16.mxu1 %v9172_v43  ;;  %6314 = vmatprep.subr.bf16.mxu0 %v13864_v32  ;;  %v12589_v16 = vmul.f32 %v4366_v4, %v3519_v13  ;;  %v10226_v38 = vpop.eup %10225  ;;  %10237 = vrcp.f32 %v2950_v57  ;;  %v3534_v43 = vld [vmem:[%s13812_s3 + $0x578] sm:$0xff]  ;;  %v3531_v13 = vld [vmem:[%s13812_s3 + $0x560] sm:$0xff] }
 0x30f   :  { %v4868_v29 = vpack.c.bf16 %v12577_v12, %v12575_v60  ;;  %v10228_v54 = vpop.eup %10227  ;;  %v9181_v23 = vld [vmem:[%s13811_s4 + $0x4fc] ss:$52 sps:$4 sm:$0xff]   ;;  %v3400_v60 = vld [vmem:[%s13812_s3 + $0x148] sm:$0xff] }
 0x310   :  { %v4371_v39 = vpop.permute.xlu1 %4370  ;;  %4530 = vperm.xlu1 %8992, %v10218_v53  }
 0x311   :  { %v12591_v55 = vmul.f32 %v4371_v39, %v3520_v27  ;;  %v4396_v10 = vpop.permute.xlu0 %4395  ;;  %4535 = vperm.xlu0 %8991, %v10214_v61   ;;  %v10230_v9 = vpop.eup %10229  ;;  %v9180_v61 = vld [vmem:[%s13811_s4 + $0x490] ss:$52 sps:$4 sm:$0xff]   ;;  %v3532_v27 = vld [vmem:[%s13812_s3 + $0x568] sm:$0xff] }
 0x312   :  { %v12607_v5 = vmul.f32 %v4396_v10, %v3525_v2  ;;  %v3538_v2 = vld [vmem:[%s13812_s3 + $0x598] sm:$0xff] }
 0x313   :  { %v4867_v3 = vpack.c.bf16 %v12591_v55, %v12589_v16  ;;  %v10232_v56 = vpop.eup %10231  ;;  %v3397_v16 = vld [vmem:[%s13812_s3 + $0x130] sm:$0xff]  ;;  %v3398_v55 = vld [vmem:[%s13812_s3 + $0x138] sm:$0xff] }
 0x314   :  { %v4401_v24 = vpop.permute.xlu1 %4400  ;;  %4540 = vperm.xlu1 %8992, %v10222_v44   ;;  %6896 = vmatmul.mubr.bf16.gmra.mrb[28].mxu1 %v9174_v25  ;;  %v3537_v44 = vld [vmem:[%s13812_s3 + $0x590] sm:$0xff] }
 0x315   :  { %v12609_v26 = vmul.f32 %v4401_v24, %v3526_v31  ;;  %v4386_v45 = vpop.permute.xlu0 %4385  ;;  %4545 = vperm.xlu0 %8991, %v10224_v36   ;;  %6903 = vmatprep.mubr.bf16.mxu1 %v9175_v48  ;;  %v9183_v31 = vld [vmem:[%s13811_s4 + $0x4f8] ss:$52 sps:$4 sm:$0xff]  }
 0x316   :  { %v12619_v14 = vmul.f32 %v4386_v45, %v3523_v59  ;;  %v10234_v40 = vpop.eup %10233  ;;  %v9184_v36 = vld [vmem:[%s13811_s4 + $0x564] ss:$52 sps:$4 sm:$0xff]   ;;  %v3536_v59 = vld [vmem:[%s13812_s3 + $0x588] sm:$0xff] }
 0x317   :  { %v4870_v1 = vpack.c.bf16 %v12609_v26, %v12607_v5  ;;  %v10236_v0 = vpop.eup %10235  ;;  %v3404_v5 = vld [vmem:[%s13812_s3 + $0x168] sm:$0xff] }
 0x318   :  { %v4391_v46 = vpop.permute.xlu1 %4390  ;;  %4550 = vperm.xlu1 %8992, %v10226_v38   ;;  %v10238_v34 = vpop.eup %10237  ;;  %v3535_v38 = vld [vmem:[%s13812_s3 + $0x580] sm:$0xff] }
 0x319   :  { %v12621_v28 = vmul.f32 %v4391_v46, %v3524_v41  ;;  %v4416_v63 = vpop.permute.xlu0 %4415  ;;  %4555 = vperm.xlu0 %8991, %v10228_v54  }
 0x31a   :  { %v12637_v18 = vmul.f32 %v4416_v63, %v3529_v51  ;;  %v3389_v51 = vld [vmem:[%s13812_s3 + $0xf0] sm:$0xff] }
 0x31b   :  { %v4869_v22 = vpack.c.bf16 %v12621_v28, %v12619_v14  ;;  %v3401_v14 = vld [vmem:[%s13812_s3 + $0x150] sm:$0xff]  ;;  %v3402_v28 = vld [vmem:[%s13812_s3 + $0x158] sm:$0xff] }
 0x31c   :  { %v4421_v52 = vpop.permute.xlu1 %4420  ;;  %4560 = vperm.xlu1 %8992, %v10230_v9   ;;  %6904 = vmatmul.mubr.bf16.gmra.mrb[32].mxu1 %v9177_v62  ;;  %v9186_v62 = vld [vmem:[%s13811_s4 + $0x560] ss:$52 sps:$4 sm:$0xff]  }
 0x31d   :  { %v12639_v15 = vmul.f32 %v4421_v52, %v3530_v30  ;;  %v4406_v33 = vpop.permute.xlu0 %4405  ;;  %4565 = vperm.xlu0 %8991, %v10232_v56   ;;  %6911 = vmatprep.mubr.bf16.mxu1 %v9178_v37  ;;  %v3390_v30 = vld [vmem:[%s13812_s3 + $0xf8] sm:$0xff]  ;;  %v9190_v37 = vld [vmem:[%s13811_s4 + $0x5cc] ss:$52 sps:$4 sm:$0xff]  }
 0x31e   :  { %v12649_v19 = vmul.f32 %v4406_v33, %v3527_v6 }
 0x31f   :  { %v4872_v21 = vpack.c.bf16 %v12639_v15, %v12637_v18  ;;  %v3408_v18 = vld [vmem:[%s13812_s3 + $0x188] sm:$0xff] }
 0x320   :  { %v4411_v47 = vpop.permute.xlu1 %4410  ;;  %4570 = vperm.xlu1 %8992, %v10234_v40  }
 0x321   :  { %v12651_v17 = vmul.f32 %v4411_v47, %v3528_v50  ;;  %v4436_v11 = vpop.permute.xlu0 %4435  ;;  %4575 = vperm.xlu0 %8991, %v10236_v0   ;;  %v3539_v50 = vld [vmem:[%s13812_s3 + $0x5a0] sm:$0xff]  ;;  %v3540_v0 = vld [vmem:[%s13812_s3 + $0x5a8] sm:$0xff] }
 0x322   :  { %v12667_v20 = vmul.f32 %v4436_v11, %v3533_v49 }
 0x323   :  { %v4871_v42 = vpack.c.bf16 %v12651_v17, %v12649_v19  ;;  %v3405_v19 = vld [vmem:[%s13812_s3 + $0x170] sm:$0xff]  ;;  %v3406_v17 = vld [vmem:[%s13812_s3 + $0x178] sm:$0xff] }
 0x324   :  { %v4441_v35 = vpop.permute.xlu1 %4440  ;;  %4580 = vperm.xlu1 %8992, %v10238_v34   ;;  %6912 = vmatmul.mubr.bf16.gmra.mrb[36].mxu1 %v9180_v61  ;;  %v9187_v34 = vld [vmem:[%s13811_s4] ss:$52 sps:$4 sm:$0xff]  }
 0x325   :  { %v12669_v4 = vmul.f32 %v4441_v35, %v3534_v43  ;;  %v4426_v53 = vpop.permute.xlu0 %4425  ;;  %6919 = vmatprep.mubr.bf16.mxu1 %v9181_v23  ;;  %v9193_v23 = vld [vmem:[%s13811_s4 + $0x6c] ss:$52 sps:$4 sm:$0xff]   ;;  %v3541_v35 = vld [vmem:[%s13812_s3 + $0x5b0] sm:$0xff] }
 0x326   :  { %v12679_v8 = vmul.f32 %v4426_v53, %v3531_v13  ;;  %v3542_v53 = vld [vmem:[%s13812_s3 + $0x5b8] sm:$0xff] }
 0x327   :  { %v4874_v58 = vpack.c.bf16 %v12669_v4, %v12667_v20  ;;  %v9192_v13 = vld [vmem:[%s13811_s4 + $0x5c8] ss:$52 sps:$4 sm:$0xff]  }
 0x328   :  { %v4431_v39 = vpop.permute.xlu1 %4430  ;;  %v3412_v20 = vld [vmem:[%s13812_s3 + $0x1a8] sm:$0xff] }
 0x329   :  { %v12681_v7 = vmul.f32 %v4431_v39, %v3532_v27  ;;  %v4456_v10 = vpop.permute.xlu0 %4455  ;;  %v9196_v39 = vld [vmem:[%s13811_s4 + $0x634] ss:$52 sps:$4 sm:$0xff]  }
 0x32a   :  { %v12697_v57 = vmul.f32 %v4456_v10, %v3537_v44 }
 0x32b   :  { %v4873_v25 = vpack.c.bf16 %v12681_v7, %v12679_v8  ;;  %v3409_v8 = vld [vmem:[%s13812_s3 + $0x190] sm:$0xff]  ;;  %v3410_v7 = vld [vmem:[%s13812_s3 + $0x198] sm:$0xff] }
 0x32c   :  { %v4461_v48 = vpop.permute.xlu1 %4460  ;;  %6920 = vmatmul.mubr.bf16.gmra.mrb[40].mxu1 %v9183_v31 }
 0x32d   :  { %v12699_v24 = vmul.f32 %v4461_v48, %v3538_v2  ;;  %v4446_v45 = vpop.permute.xlu0 %4445  ;;  %6927 = vmatprep.mubr.bf16.mxu1 %v9184_v36  ;;  %v3543_v36 = vld [vmem:[%s13812_s3 + $0x5c0] sm:$0xff]  ;;  %v3544_v48 = vld [vmem:[%s13812_s3 + $0x5c8] sm:$0xff] }
 0x32e   :  { %v12709_v46 = vmul.f32 %v4446_v45, %v3535_v38 }
 0x32f   :  { %v4876_v41 = vpack.c.bf16 %v12699_v24, %v12697_v57  ;;  %v3416_v57 = vld [vmem:[%s13812_s3 + $0x1c8] sm:$0xff] }
 0x330   :  { %v4451_v54 = vpop.permute.xlu1 %4450 }
 0x331   :  { %v12711_v63 = vmul.f32 %v4451_v54, %v3536_v59  ;;  %v3716_v9 = vpop.permute.xlu0 %3715  ;;  %v9195_v59 = vld [vmem:[%s13811_s4 + $0x68] ss:$52 sps:$4 sm:$0xff]  }
 0x332   :  { %v4613_v33 = vmul.f32 %v3716_v9, %v3389_v51 }
 0x333   :  { %v4875_v56 = vpack.c.bf16 %v12711_v63, %v12709_v46  ;;  %v3413_v46 = vld [vmem:[%s13812_s3 + $0x1b0] sm:$0xff]  ;;  %v3414_v63 = vld [vmem:[%s13812_s3 + $0x1b8] sm:$0xff] }
 0x334   :  { %v3721_v52 = vpop.permute.xlu1 %3720  ;;  %6928 = vmatmul.mubr.bf16.gmra.mrb[44].mxu1 %v9186_v62  ;;  %v3545_v62 = vld [vmem:[%s13812_s3 + $0x5d0] sm:$0xff] }
 0x335   :  { %v4614_v40 = vmul.f32 %v3721_v52, %v3390_v30  ;;  %v4466_v6 = vpop.permute.xlu0 %4465  ;;  %6935 = vmatprep.mubr.bf16.mxu1 %v9190_v37  ;;  %v9199_v30 = vld [vmem:[%s13811_s4 + $0xd4] ss:$52 sps:$4 sm:$0xff]   ;;  %v3546_v37 = vld [vmem:[%s13812_s3 + $0x5d8] sm:$0xff]  ;;  %v9198_v52 = vld [vmem:[%s13811_s4 + $0x630] ss:$52 sps:$4 sm:$0xff]  }
 0x336   :  { %v12736_v49 = vmul.f32 %v4466_v6, %v3539_v50 }
 0x337   :  { %v4802_v47 = vpack.c.bf16 %v4614_v40, %v4613_v33  ;;  %v9202_v40 = vld [vmem:[%s13811_s4 + $0x69c] ss:$52 sps:$4 sm:$0xff]  }
 0x338   :  { %v4471_v11 = vpop.permute.xlu1 %4470 }
 0x339   :  { %v12738_v43 = vmul.f32 %v4471_v11, %v3540_v0  ;;  %6315 = vmatpush1.bf16.msra.mxu0 %v4802_v47  ;;  %v4476_v61 = vpop.permute.xlu0 %4475  ;;  %v3547_v11 = vld [vmem:[%s13812_s3 + $0x5e0] sm:$0xff] }
 0x33a   :  { %6453 = vmatprep.subr.bf16.mxu0 %v13864_v32  ;;  %v12758_v44 = vmul.f32 %v4476_v61, %v3541_v35  ;;  %v9201_v35 = vld [vmem:[%s13811_s4 + $0xd0] ss:$52 sps:$4 sm:$0xff]  }
 0x33b   :  { %v4877_v27 = vpack.c.bf16 %v12738_v43, %v12736_v49  ;;  %v3417_v49 = vld [vmem:[%s13812_s3 + $0x1d0] sm:$0xff]  ;;  %v3418_v43 = vld [vmem:[%s13812_s3 + $0x1d8] sm:$0xff] }
 0x33c   :  { %v4481_v10 = vpop.permute.xlu1 %4480  ;;  %6317 = vmatmul.mubr.bf16.vlgmr.msra.gmra.mrb[204].mxu0 %v9187_v34  ;;  %6936 = vmatmul.mubr.bf16.gmra.mrb[48].mxu1 %v9192_v13  ;;  %v3548_v34 = vld [vmem:[%s13812_s3 + $0x5e8] sm:$0xff] }
 0x33d   :  { %v12760_v2 = vmul.f32 %v4481_v10, %v3542_v53  ;;  %v4486_v31 = vpop.permute.xlu0 %4485  ;;  %6324 = vmatprep.mubr.bf16.mxu0 %v9193_v23  ;;  %6943 = vmatprep.mubr.bf16.mxu1 %v9196_v39  ;;  %v9205_v10 = vld [vmem:[%s13811_s4 + $0x13c] ss:$52 sps:$4 sm:$0xff]  }
 0x33e   :  { %v12773_v54 = vmul.f32 %v4486_v31, %v3543_v36  ;;  %v3549_v31 = vld [vmem:[%s13812_s3 + $0x5f0] sm:$0xff]  ;;  %v3550_v36 = vld [vmem:[%s13812_s3 + $0x5f8] sm:$0xff] }
 0x33f   :  { %v4878_v45 = vpack.c.bf16 %v12760_v2, %v12758_v44  ;;  %v3420_v44 = vld [vmem:[%s13812_s3 + $0x1e8] sm:$0xff] }
 0x340   :  { %v4491_v38 = vpop.permute.xlu1 %4490 }
 0x341   :  { %v12775_v9 = vmul.f32 %v4491_v38, %v3544_v48  ;;  %v4496_v51 = vpop.permute.xlu0 %4495  ;;  %v9204_v48 = vld [vmem:[%s13811_s4 + $0x698] ss:$52 sps:$4 sm:$0xff]  }
 0x342   :  { %v12794_v50 = vmul.f32 %v4496_v51, %v3545_v62 }
 0x343   :  { %v4879_v33 = vpack.c.bf16 %v12775_v9, %v12773_v54  ;;  %v3421_v54 = vld [vmem:[%s13812_s3 + $0x1f0] sm:$0xff] }
 0x344   :  { %v4501_v6 = vpop.permute.xlu1 %4500  ;;  %6325 = vmatmul.mubr.bf16.gmra.mrb[208].mxu0 %v9195_v59  ;;  %6944 = vmatmul.mubr.bf16.gmra.mrb[52].mxu1 %v9198_v52  ;;  %v9210_v59 = vld [vmem:[%s13811_s4 + $0x24] ss:$52 sps:$4 sm:$0xff]  }
 0x345   :  { %v12796_v0 = vmul.f32 %v4501_v6, %v3546_v37  ;;  %v4506_v47 = vpop.permute.xlu0 %4505  ;;  %6332 = vmatprep.mubr.bf16.mxu0 %v9199_v30  ;;  %6951 = vmatprep.mubr.bf16.mxu1 %v9202_v40  ;;  %v3391_v52 = vld [vmem:[%s13812_s3 + $0x100] sm:$0xff]  ;;  %v3392_v40 = vld [vmem:[%s13812_s3 + $0x108] sm:$0xff] }
 0x346   :  { %v12809_v53 = vmul.f32 %v4506_v47, %v3547_v11  ;;  %v9207_v11 = vld [vmem:[%s13811_s4 + $0x138] ss:$52 sps:$4 sm:$0xff]  }
 0x347   :  { %v4880_v61 = vpack.c.bf16 %v12796_v0, %v12794_v50  ;;  %v9255_v50 = vld [vmem:[%s13811_s4 + $0x478] ss:$52 sps:$4 sm:$0xff]  }
 0x348   :  { %v4511_v23 = vpop.permute.xlu1 %4510  ;;  %v9259_v0 = vld [vmem:[%s13811_s4 + $0x4e4] ss:$52 sps:$4 sm:$0xff]  }
 0x349   :  { %v12811_v13 = vmul.f32 %v4511_v23, %v3548_v34  ;;  %v4516_v39 = vpop.permute.xlu0 %4515 }
 0x34a   :  { %v12830_v30 = vmul.f32 %v4516_v39, %v3549_v31  ;;  %v9211_v39 = vld [vmem:[%s13811_s4 + $0x1a4] ss:$52 sps:$4 sm:$0xff]  }
 0x34b   :  { %v4881_v38 = vpack.c.bf16 %v12811_v13, %v12809_v53  ;;  %v3394_v31 = vld [vmem:[%s13812_s3 + $0x118] sm:$0xff]  ;;  %v9262_v53 = vld [vmem:[%s13811_s4 + $0x3cc] ss:$52 sps:$4 sm:$0xff]   ;;  %v10240_v13 = vmov 0.0  }
 0x34c   :  { %v4521_v51 = vpop.permute.xlu1 %4520  ;;  %6333 = vmatmul.mubr.bf16.gmra.mrb[212].mxu0 %v9201_v35  ;;  %6952 = vmatmul.mubr.bf16.gmra.mrb[56].mxu1 %v9204_v48 }
 0x34d   :  { %v12832_v62 = vmul.f32 %v4521_v51, %v3550_v36  ;;  %v3726_v37 = vpop.permute.xlu0 %3725  ;;  %6340 = vmatprep.mubr.bf16.mxu0 %v9205_v10  ;;  %6992 = vmatprep.mubr.bf16.mxu1 %v9210_v59  ;;  %v3393_v10 = vld [vmem:[%s13812_s3 + $0x110] sm:$0xff]  ;;  %v9214_v59 = vld [vmem:[%s13811_s4 + $0x8c] ss:$52 sps:$4 sm:$0xff]  }
 0x34e   :  { %v4615_v34 = vmul.f32 %v3726_v37, %v3391_v52  ;;  %v9208_v36 = vld [vmem:[%s13811_s4 + $0x20] ss:$52 sps:$4 sm:$0xff]  }
 0x34f   :  { %v4882_v6 = vpack.c.bf16 %v12832_v62, %v12830_v30  ;;  %v9267_v30 = vld [vmem:[%s13811_s4 + $0x54c] ss:$52 sps:$4 sm:$0xff]   ;;  %v9264_v62 = vld [vmem:[%s13811_s4 + $0x3c8] ss:$52 sps:$4 sm:$0xff]  }
 0x350   :  { %v3731_v47 = vpop.permute.xlu1 %3730 }
 0x351   :  { %v4616_v23 = vmul.f32 %v3731_v47, %v3392_v40  ;;  %v3736_v35 = vpop.permute.xlu0 %3735  ;;  %v3395_v47 = vld [vmem:[%s13812_s3 + $0x120] sm:$0xff] }
 0x352   :  { %v4617_v37 = vmul.f32 %v3736_v35, %v3393_v10  ;;  %v9213_v35 = vld [vmem:[%s13811_s4 + $0x1a0] ss:$52 sps:$4 sm:$0xff]  }
 0x353   :  { %v4803_v48 = vpack.c.bf16 %v4616_v23, %v4615_v34  ;;  %v3396_v34 = vld [vmem:[%s13812_s3 + $0x128] sm:$0xff] }
 0x354   :  { %v3741_v51 = vpop.permute.xlu1 %3740  ;;  %6341 = vmatmul.mubr.bf16.gmra.mrb[216].mxu0 %v9207_v11  ;;  %6993 = vmatmul.mubr.bf16.vlgmr.msra.gmra.mrb[60].mxu1 %v9208_v36  ;;  %v9217_v36 = vld [vmem:[%s13811_s4 + $0x20c] ss:$52 sps:$4 sm:$0xff]  }
 0x355   :  { %v4618_v52 = vmul.f32 %v3741_v51, %v3394_v31  ;;  %6454 = vmatpush1.bf16.msra.mxu0 %v4803_v48  ;;  %v3746_v40 = vpop.permute.xlu0 %3745  ;;  %6348 = vmatprep.mubr.bf16.mxu0 %v9211_v39 }
 0x356   :  { %6455 = vmatprep.subr.bf16.mxu0 %v13864_v32  ;;  %7130 = vmatpush1.bf16.msra.mxu1 %v4867_v3  ;;  %v4619_v39 = vmul.f32 %v3746_v40, %v3395_v47  ;;  %v9216_v3 = vld [vmem:[%s13811_s4 + $0x88] ss:$52 sps:$4 sm:$0xff]   ;;  %v3399_v47 = vld [vmem:[%s13812_s3 + $0x140] sm:$0xff] }
 0x357   :  { %v4804_v23 = vpack.c.bf16 %v4618_v52, %v4617_v37  ;;  %7000 = vmatprep.mubr.bf16.mxu1 %v9214_v59  ;;  %7131 = vmatprep.subr.bf16.mxu1 %v13864_v32  ;;  %v9220_v59 = vld [vmem:[%s13811_s4 + $0xf4] ss:$52 sps:$4 sm:$0xff]  }
 0x358   :  { %v3751_v11 = vpop.permute.xlu1 %3750 }
 0x359   :  { %v4620_v10 = vmul.f32 %v3751_v11, %v3396_v34  ;;  %6456 = vmatpush1.bf16.msra.mxu0 %v4804_v23  ;;  %v3756_v31 = vpop.permute.xlu0 %3755  ;;  %v9219_v34 = vld [vmem:[%s13811_s4 + $0x208] ss:$52 sps:$4 sm:$0xff]  }
 0x35a   :  { %6457 = vmatprep.subr.bf16.mxu0 %v13864_v32  ;;  %7132 = vmatpush1.bf16.msra.mxu1 %v4868_v29  ;;  %v4621_v37 = vmul.f32 %v3756_v31, %v3397_v16  ;;  %v9226_v31 = vld [vmem:[%s13811_s4 + $0x15c] ss:$52 sps:$4 sm:$0xff]  }
 0x35b   :  { %v4805_v48 = vpack.c.bf16 %v4620_v10, %v4619_v39  ;;  %7133 = vmatprep.subr.bf16.mxu1 %v13864_v32  ;;  %v9223_v39 = vld [vmem:[%s13811_s4 + $0x274] ss:$52 sps:$4 sm:$0xff]  }
 0x35c   :  { %v3761_v51 = vpop.permute.xlu1 %3760  ;;  %6349 = vmatmul.mubr.bf16.gmra.mrb[220].mxu0 %v9213_v35  ;;  %7001 = vmatmul.mubr.bf16.gmra.mrb[64].mxu1 %v9216_v3 }
 0x35d   :  { %v4622_v52 = vmul.f32 %v3761_v51, %v3398_v55  ;;  %6458 = vmatpush1.bf16.msra.mxu0 %v4805_v48  ;;  %v3766_v40 = vpop.permute.xlu0 %3765  ;;  %6356 = vmatprep.mubr.bf16.mxu0 %v9217_v36  ;;  %v3403_v48 = vld [vmem:[%s13812_s3 + $0x160] sm:$0xff] }
 0x35e   :  { %6459 = vmatprep.subr.bf16.mxu0 %v13864_v32  ;;  %7134 = vmatpush1.bf16.msra.mxu1 %v4869_v22  ;;  %v4623_v23 = vmul.f32 %v3766_v40, %v3399_v47  ;;  %v9222_v22 = vld [vmem:[%s13811_s4 + $0xf0] ss:$52 sps:$4 sm:$0xff]  }
 0x35f   :  { %v4806_v12 = vpack.c.bf16 %v4622_v52, %v4621_v37  ;;  %7008 = vmatprep.mubr.bf16.mxu1 %v9220_v59  ;;  %7135 = vmatprep.subr.bf16.mxu1 %v13864_v32  ;;  %v9225_v59 = vld [vmem:[%s13811_s4 + $0x270] ss:$52 sps:$4 sm:$0xff]  }
 0x360   :  { %v3771_v29 = vpop.permute.xlu1 %3770  ;;  %v9229_v40 = vld [vmem:[%s13811_s4 + $0x2dc] ss:$52 sps:$4 sm:$0xff]  }
 0x361   :  { %v4624_v11 = vmul.f32 %v3771_v29, %v3400_v60  ;;  %6460 = vmatpush1.bf16.msra.mxu0 %v4806_v12  ;;  %v3776_v35 = vpop.permute.xlu0 %3775  ;;  %v9232_v60 = vld [vmem:[%s13811_s4 + $0x1c4] ss:$52 sps:$4 sm:$0xff]  }
 0x362   :  { %6461 = vmatprep.subr.bf16.mxu0 %v13864_v32  ;;  %7136 = vmatpush1.bf16.msra.mxu1 %v4870_v1  ;;  %v4625_v16 = vmul.f32 %v3776_v35, %v3401_v14  ;;  %v9231_v35 = vld [vmem:[%s13811_s4 + $0x2d8] ss:$52 sps:$4 sm:$0xff]  }
 0x363   :  { %v4807_v10 = vpack.c.bf16 %v4624_v11, %v4623_v23  ;;  %7137 = vmatprep.subr.bf16.mxu1 %v13864_v32  ;;  %v3407_v11 = vld [vmem:[%s13812_s3 + $0x180] sm:$0xff] }
 0x364   :  { %v3781_v36 = vpop.permute.xlu1 %3780  ;;  %6357 = vmatmul.mubr.bf16.gmra.mrb[224].mxu0 %v9219_v34  ;;  %7009 = vmatmul.mubr.bf16.gmra.mrb[0].mxu1 %v9222_v22  ;;  %v9235_v22 = vld [vmem:[%s13811_s4 + $0x344] ss:$52 sps:$4 sm:$0xff]  }
 0x365   :  { %v4626_v55 = vmul.f32 %v3781_v36, %v3402_v28  ;;  %6462 = vmatpush1.bf16.msra.mxu0 %v4807_v10  ;;  %v3786_v3 = vpop.permute.xlu0 %3785  ;;  %6364 = vmatprep.mubr.bf16.mxu0 %v9223_v39 }
 0x366   :  { %6463 = vmatprep.subr.bf16.mxu0 %v13864_v32  ;;  %7138 = vmatpush1.bf16.msra.mxu1 %v4871_v42  ;;  %v4627_v51 = vmul.f32 %v3786_v3, %v3403_v48  ;;  %v9228_v42 = vld [vmem:[%s13811_s4 + $0x158] ss:$52 sps:$4 sm:$0xff]   ;;  %v3411_v48 = vld [vmem:[%s13812_s3 + $0x1a0] sm:$0xff] }
 0x367   :  { %v4808_v26 = vpack.c.bf16 %v4626_v55, %v4625_v16  ;;  %7016 = vmatprep.mubr.bf16.mxu1 %v9226_v31  ;;  %7139 = vmatprep.subr.bf16.mxu1 %v13864_v32  ;;  %v9238_v31 = vld [vmem:[%s13811_s4 + $0x22c] ss:$52 sps:$4 sm:$0xff]  }
 0x368   :  { %v3791_v1 = vpop.permute.xlu1 %3790 }
 0x369   :  { %v4628_v37 = vmul.f32 %v3791_v1, %v3404_v5  ;;  %6464 = vmatpush1.bf16.msra.mxu0 %v4808_v26  ;;  %v3796_v52 = vpop.permute.xlu0 %3795  ;;  %v9237_v5 = vld [vmem:[%s13811_s4 + $0x340] ss:$52 sps:$4 sm:$0xff]  }
 0x36a   :  { %6465 = vmatprep.subr.bf16.mxu0 %v13864_v32  ;;  %7140 = vmatpush1.bf16.msra.mxu1 %v4872_v21  ;;  %v4629_v29 = vmul.f32 %v3796_v52, %v3405_v19  ;;  %v9244_v52 = vld [vmem:[%s13811_s4 + $0x294] ss:$52 sps:$4 sm:$0xff]  }
 0x36b   :  { %v4809_v47 = vpack.c.bf16 %v4628_v37, %v4627_v51  ;;  %7141 = vmatprep.subr.bf16.mxu1 %v13864_v32  ;;  %v9241_v51 = vld [vmem:[%s13811_s4 + $0x3ac] ss:$52 sps:$4 sm:$0xff]  }
 0x36c   :  { %v3801_v12 = vpop.permute.xlu1 %3800  ;;  %6365 = vmatmul.mubr.bf16.gmra.mrb[228].mxu0 %v9225_v59  ;;  %7017 = vmatmul.mubr.bf16.gmra.mrb[4].mxu1 %v9228_v42 }
 0x36d   :  { %v4630_v34 = vmul.f32 %v3801_v12, %v3406_v17  ;;  %6466 = vmatpush1.bf16.msra.mxu0 %v4809_v47  ;;  %v3806_v23 = vpop.permute.xlu0 %3805  ;;  %6372 = vmatprep.mubr.bf16.mxu0 %v9229_v40  ;;  %v3415_v47 = vld [vmem:[%s13812_s3 + $0x1c0] sm:$0xff] }
 0x36e   :  { %6467 = vmatprep.subr.bf16.mxu0 %v13864_v32  ;;  %7142 = vmatpush1.bf16.msra.mxu1 %v4873_v25  ;;  %v4631_v39 = vmul.f32 %v3806_v23, %v3407_v11  ;;  %v9234_v25 = vld [vmem:[%s13811_s4 + $0x1c0] ss:$52 sps:$4 sm:$0xff]  }
 0x36f   :  { %v4810_v15 = vpack.c.bf16 %v4630_v34, %v4629_v29  ;;  %7024 = vmatprep.mubr.bf16.mxu1 %v9232_v60  ;;  %7143 = vmatprep.subr.bf16.mxu1 %v13864_v32  ;;  %v9243_v60 = vld [vmem:[%s13811_s4 + $0x3a8] ss:$52 sps:$4 sm:$0xff]  }
 0x370   :  { %v3811_v21 = vpop.permute.xlu1 %3810  ;;  %v9247_v23 = vld [vmem:[%s13811_s4 + $0x414] ss:$52 sps:$4 sm:$0xff]  }
 0x371   :  { %v4632_v14 = vmul.f32 %v3811_v21, %v3408_v18  ;;  %6468 = vmatpush1.bf16.msra.mxu0 %v4810_v15  ;;  %v3816_v28 = vpop.permute.xlu0 %3815  ;;  %v9250_v18 = vld [vmem:[%s13811_s4 + $0x2fc] ss:$52 sps:$4 sm:$0xff]  }
 0x372   :  { %6469 = vmatprep.subr.bf16.mxu0 %v13864_v32  ;;  %7144 = vmatpush1.bf16.msra.mxu1 %v4874_v58  ;;  %v4633_v16 = vmul.f32 %v3816_v28, %v3409_v8  ;;  %v9249_v28 = vld [vmem:[%s13811_s4 + $0x410] ss:$52 sps:$4 sm:$0xff]  }
 0x373   :  { %v4811_v10 = vpack.c.bf16 %v4632_v14, %v4631_v39  ;;  %7145 = vmatprep.subr.bf16.mxu1 %v13864_v32  ;;  %v3419_v14 = vld [vmem:[%s13812_s3 + $0x1e0] sm:$0xff] }
 0x374   :  { %v3821_v36 = vpop.permute.xlu1 %3820  ;;  %6373 = vmatmul.mubr.bf16.gmra.mrb[232].mxu0 %v9231_v35  ;;  %7025 = vmatmul.mubr.bf16.gmra.mrb[8].mxu1 %v9234_v25  ;;  %v9252_v25 = vld [vmem:[%s13811_s4 + $0x2f8] ss:$52 sps:$4 sm:$0xff]  }
 0x375   :  { %v4634_v55 = vmul.f32 %v3821_v36, %v3410_v7  ;;  %6470 = vmatpush1.bf16.msra.mxu0 %v4811_v10  ;;  %v3826_v3 = vpop.permute.xlu0 %3825  ;;  %6380 = vmatprep.mubr.bf16.mxu0 %v9235_v22  ;;  %v9253_v7 = vld [vmem:[%s13811_s4 + $0x47c] ss:$52 sps:$4 sm:$0xff]  }
 0x376   :  { %6471 = vmatprep.subr.bf16.mxu0 %v13864_v32  ;;  %7146 = vmatpush1.bf16.msra.mxu1 %v4875_v56  ;;  %v4635_v26 = vmul.f32 %v3826_v3, %v3411_v48  ;;  %v9240_v56 = vld [vmem:[%s13811_s4 + $0x228] ss:$52 sps:$4 sm:$0xff]  }
 0x377   :  { %v4812_v4 = vpack.c.bf16 %v4634_v55, %v4633_v16  ;;  %7032 = vmatprep.mubr.bf16.mxu1 %v9238_v31  ;;  %7147 = vmatprep.subr.bf16.mxu1 %v13864_v32  ;;  %v9256_v31 = vld [vmem:[%s13811_s4 + $0x364] ss:$52 sps:$4 sm:$0xff]   ;;  %v9265_v48 = vld [vmem:[%s13811_s4 + $0x548] ss:$52 sps:$4 sm:$0xff]  }
 0x378   :  { %v3831_v58 = vpop.permute.xlu1 %3830 }
 0x379   :  { %v4636_v1 = vmul.f32 %v3831_v58, %v3412_v20  ;;  %6472 = vmatpush1.bf16.msra.mxu0 %v4812_v4  ;;  %v3836_v59 = vpop.permute.xlu0 %3835  ;;  %v9273_v20 = vld [vmem:[%s13811_s4 + $0x5b4] ss:$52 sps:$4 sm:$0xff]   ;;  %v9270_v4 = vld [vmem:[%s13811_s4 + $0x430] ss:$52 sps:$4 sm:$0xff]  }
 0x37a   :  { %6473 = vmatprep.subr.bf16.mxu0 %v13864_v32  ;;  %7148 = vmatpush1.bf16.msra.mxu1 %v4876_v41  ;;  %v4637_v19 = vmul.f32 %v3836_v59, %v3413_v46  ;;  %v9274_v58 = vld [vmem:[%s13811_s4 + $0x49c] ss:$52 sps:$4 sm:$0xff]   ;;  %v9280_v59 = vld [vmem:[%s13811_s4 + $0x504] ss:$52 sps:$4 sm:$0xff]  }
 0x37b   :  { %v4813_v37 = vpack.c.bf16 %v4636_v1, %v4635_v26  ;;  %7149 = vmatprep.subr.bf16.mxu1 %v13864_v32  ;;  %v9279_v26 = vld [vmem:[%s13811_s4 + $0x61c] ss:$52 sps:$4 sm:$0xff]   ;;  %v9276_v1 = vld [vmem:[%s13811_s4 + $0x498] ss:$52 sps:$4 sm:$0xff]  }
 0x37c   :  { %v3841_v40 = vpop.permute.xlu1 %3840  ;;  %6381 = vmatmul.mubr.bf16.gmra.mrb[236].mxu0 %v9237_v5  ;;  %7033 = vmatmul.mubr.bf16.gmra.mrb[12].mxu1 %v9240_v56  ;;  %v9271_v5 = vld [vmem:[%s13811_s4 + $0x5b0] ss:$52 sps:$4 sm:$0xff]   ;;  %v9286_v56 = vld [vmem:[%s13811_s4 + $0x56c] ss:$52 sps:$4 sm:$0xff]  }
 0x37d   :  { %v4638_v17 = vmul.f32 %v3841_v40, %v3414_v63  ;;  %6474 = vmatpush1.bf16.msra.mxu0 %v4813_v37  ;;  %v3846_v42 = vpop.permute.xlu0 %3845  ;;  %6388 = vmatprep.mubr.bf16.mxu0 %v9241_v51  ;;  %v9277_v51 = vld [vmem:[%s13811_s4 + $0x618] ss:$52 sps:$4 sm:$0xff]   ;;  %v9282_v63 = vld [vmem:[%s13811_s4 + $0x500] ss:$52 sps:$4 sm:$0xff]   ;;  %v9288_v40 = vld [vmem:[%s13811_s4 + $0x568] ss:$52 sps:$4 sm:$0xff]  }
 0x37e   :  { %6475 = vmatprep.subr.bf16.mxu0 %v13864_v32  ;;  %7150 = vmatpush1.bf16.msra.mxu1 %v4877_v27  ;;  %v4639_v12 = vmul.f32 %v3846_v42, %v3415_v47  ;;  %v9246_v27 = vld [vmem:[%s13811_s4 + $0x290] ss:$52 sps:$4 sm:$0xff]   ;;  %v9283_v37 = vld [vmem:[%s13811_s4 + $0x680] ss:$52 sps:$4 sm:$0xff]  }
 0x37f   :  { %v4814_v24 = vpack.c.bf16 %v4638_v17, %v4637_v19  ;;  %7040 = vmatprep.mubr.bf16.mxu1 %v9244_v52  ;;  %7151 = vmatprep.subr.bf16.mxu1 %v13864_v32  ;;  %v9285_v46 = vld [vmem:[%s13811_s4 + $0x684] ss:$52 sps:$4 sm:$0xff]   ;;  %v9291_v52 = vld [vmem:[%s13811_s4 + $0xc] ss:$52 sps:$4 sm:$0xff]   ;;  %v9292_v19 = vld [vmem:[%s13811_s4 + $0x5d4] ss:$52 sps:$4 sm:$0xff]  }
 0x380   :  { %v3851_v41 = vpop.permute.xlu1 %3850  ;;  %v9289_v17 = vld [vmem:[%s13811_s4 + $0x8] ss:$52 sps:$4 sm:$0xff]   ;;  %v9294_v47 = vld [vmem:[%s13811_s4 + $0x5d0] ss:$52 sps:$4 sm:$0xff]  }
 0x381   :  { %v4640_v29 = vmul.f32 %v3851_v41, %v3416_v57  ;;  %6476 = vmatpush1.bf16.msra.mxu0 %v4814_v24  ;;  %v3856_v34 = vpop.permute.xlu0 %3855  ;;  %v9304_v42 = vld [vmem:[%s13811_s4 + $0x74] ss:$52 sps:$4 sm:$0xff]   ;;  %v9295_v57 = vld [vmem:[%s13811_s4 + $0x63c] ss:$52 sps:$4 sm:$0xff]  }
 0x382   :  { %6477 = vmatprep.subr.bf16.mxu0 %v13864_v32  ;;  %7152 = vmatpush1.bf16.msra.mxu1 %v4878_v45  ;;  %v4641_v21 = vmul.f32 %v3856_v34, %v3417_v49  ;;  %v13939_v24 = vld [vmem:[#allocation32_spill] sm:$0xff]  ;;  %v9298_v34 = vld [vmem:[%s13811_s4 + $0x6a4] ss:$52 sps:$4 sm:$0xff]  }
 0x383   :  { %v4815_v11 = vpack.c.bf16 %v4640_v29, %v4639_v12  ;;  %7153 = vmatprep.subr.bf16.mxu1 %v13864_v32  ;;  %v9308_v41 = vld [vmem:[%s13811_s4 + $0x70] ss:$52 sps:$4 sm:$0xff]   ;;  %v9297_v29 = vld [vmem:[%s13811_s4 + $0x638] ss:$52 sps:$4 sm:$0xff]  }
 0x384   :  { %v3861_v15 = vpop.permute.xlu1 %3860  ;;  %6389 = vmatmul.mubr.bf16.gmra.mrb[240].mxu0 %v9243_v60  ;;  %7041 = vmatmul.mubr.bf16.gmra.mrb[16].mxu1 %v9246_v27  ;;  %v13940_v60 = vld [vmem:[#allocation33_spill] sm:$0xff]  ;;  %v13941_v49 = vld [vmem:[#allocation34_spill] sm:$0xff] }
 0x385   :  { %v4642_v35 = vmul.f32 %v3861_v15, %v3418_v43  ;;  %6478 = vmatpush1.bf16.msra.mxu0 %v4815_v11  ;;  %v3866_v39 = vpop.permute.xlu0 %3865  ;;  %6396 = vmatprep.mubr.bf16.mxu0 %v9247_v23  ;;  %v9310_v12 = vld [vmem:[%s13811_s4 + $0xdc] ss:$52 sps:$4 sm:$0xff]   ;;  %v9314_v27 = vld [vmem:[%s13811_s4 + $0xd8] ss:$52 sps:$4 sm:$0xff]  }
 0x386   :  { %6479 = vmatprep.subr.bf16.mxu0 %v13864_v32  ;;  %7154 = vmatpush1.bf16.msra.mxu1 %v4879_v33  ;;  %v4643_v22 = vmul.f32 %v3866_v39, %v3419_v14  ;;  %v3422_v33 = vld [vmem:[%s13812_s3 + $0x1f8] sm:$0xff]  ;;  %v13942_v11 = vld [vmem:[#allocation35_spill] sm:$0xff]  ;;  %v13943_v14 = vld [vmem:[#allocation36_spill] sm:$0xff] }
 0x387   :  { %v4816_v2 = vpack.c.bf16 %v4642_v35, %v4641_v21  ;;  %7048 = vmatprep.mubr.bf16.mxu1 %v9250_v18  ;;  %7155 = vmatprep.subr.bf16.mxu1 %v13864_v32  ;;  %v9316_v18 = vld [vmem:[%s13811_s4 + $0x144] ss:$52 sps:$4 sm:$0xff]   ;;  %v9300_v21 = vld [vmem:[%s13811_s4 + $0x6a0] ss:$52 sps:$4 sm:$0xff]  }
 0x388   :  { %v3871_v45 = vpop.permute.xlu1 %3870  ;;  %v9303_v35 = vld [vmem:[%s13811_s4 + $0x2c] ss:$52 sps:$4 sm:$0xff]  }
 0x389   :  { %v4644_v8 = vmul.f32 %v3871_v45, %v3420_v44  ;;  %6480 = vmatpush1.bf16.msra.mxu0 %v4816_v2  ;;  %v3876_v9 = vpop.permute.xlu0 %3875  ;;  %v3552_v44 = vld [vmem:[%s13812_s3 + $0x608] sm:$0xff]  ;;  %v3551_v2 = vld [vmem:[%s13812_s3 + $0x600] sm:$0xff] }
 0x38a   :  { %6481 = vmatprep.subr.bf16.mxu0 %v13864_v32  ;;  %7156 = vmatpush1.bf16.msra.mxu1 %v4880_v61  ;;  %v4645_v16 = vmul.f32 %v3876_v9, %v3421_v54  ;;  %v9258_v61 = vld [vmem:[%s13811_s4 + $0x360] ss:$52 sps:$4 sm:$0xff]   ;;  %v3554_v54 = vld [vmem:[%s13812_s3 + $0x618] sm:$0xff] }
 0x38b   :  { %v4817_v10 = vpack.c.bf16 %v4644_v8, %v4643_v22  ;;  %7157 = vmatprep.subr.bf16.mxu1 %v13864_v32  ;;  %v13944_v8 = vld [vmem:[#allocation37_spill] sm:$0xff] }
 0x38c   :  { %v3881_v36 = vpop.permute.xlu1 %3880  ;;  %6397 = vmatmul.mubr.bf16.gmra.mrb[244].mxu0 %v9249_v28  ;;  %7049 = vmatmul.mubr.bf16.gmra.mrb[20].mxu1 %v9252_v25  ;;  %v9320_v28 = vld [vmem:[%s13811_s4 + $0x140] ss:$52 sps:$4 sm:$0xff]  }
 0x38d   :  { %v4646_v55 = vmul.f32 %v3881_v36, %v3422_v33  ;;  %6482 = vmatpush1.bf16.msra.mxu0 %v4817_v10  ;;  %6404 = vmatprep.mubr.bf16.mxu0 %v9253_v7  ;;  %v4526_v43 = vpop.permute.xlu0 %4525  ;;  %v9322_v7 = vld [vmem:[%s13811_s4 + $0x1ac] ss:$52 sps:$4 sm:$0xff]   ;;  %v9301_v33 = vld [vmem:[%s13811_s4 + $0x28] ss:$52 sps:$4 sm:$0xff]  }
 0x38e   :  { %6483 = vmatprep.subr.bf16.mxu0 %v13864_v32  ;;  %7158 = vmatpush1.bf16.msra.mxu1 %v4881_v38  ;;  %v9261_v38 = vld [vmem:[%s13811_s4 + $0x4e0] ss:$52 sps:$4 sm:$0xff]   ;;  %v4775_v25 = vmul.f32 %v4526_v43, %v3551_v2  ;;  %v13949_v43 = vld [vmem:[#allocation43_spill] sm:$0xff] }
 0x38f   :  { %v4818_v3 = vpack.c.bf16 %v4646_v55, %v4645_v16  ;;  %7056 = vmatprep.mubr.bf16.mxu1 %v9256_v31  ;;  %7159 = vmatprep.subr.bf16.mxu1 %v13864_v32  ;;  %v9306_v10 = vld [vmem:[%s13811_s4 + $0x94] ss:$52 sps:$4 sm:$0xff]   ;;  %v13945_v55 = vld [vmem:[#allocation38_spill] sm:$0xff] }
 0x390   :  { %v4531_v23 = vpop.permute.xlu1 %4530  ;;  %v3553_v31 = vld [vmem:[%s13812_s3 + $0x610] sm:$0xff]  ;;  %v13952_v2 = vld [vmem:[#allocation47_spill] sm:$0xff] }
 0x391   :  { %6484 = vmatpush1.bf16.msra.mxu0 %v4818_v3  ;;  %v4536_v39 = vpop.permute.xlu0 %4535  ;;  %v4776_v22 = vmul.f32 %v4531_v23, %v3552_v44  ;;  %v3556_v3 = vld [vmem:[%s13812_s3 + $0x628] sm:$0xff]  ;;  %v9344_v44 = vld [vmem:[%s13811_s4 + $0x2e0] ss:$52 sps:$4 sm:$0xff]  }
 0x392   :  { %6622 = vmatprep.subr.bf16.mxu0 %v13864_v32  ;;  %7160 = vmatpush1.bf16.msra.mxu1 %v4882_v6  ;;  %v9268_v6 = vld [vmem:[%s13811_s4 + $0x434] ss:$52 sps:$4 sm:$0xff]  }
 0x393   :  { %8501 = vmatprep.subr.bf16.mxu1 %v10240_v13  ;;  %v4883_v36 = vpack.c.bf16 %v4776_v22, %v4775_v25  ;;  %v9330_v22 = vld [vmem:[%s13811_s4 + $0x234] ss:$52 sps:$4 sm:$0xff]   ;;  %v9336_v25 = vld [vmem:[%s13811_s4 + $0x29c] ss:$52 sps:$4 sm:$0xff]  }
 0x394   :  { %6405 = vmatmul.mubr.bf16.gmra.mrb[248].mxu0 %v9255_v50  ;;  %7057 = vmatmul.mubr.bf16.gmra.mrb[24].mxu1 %v9258_v61  ;;  %v4541_v15 = vpop.permute.xlu1 %4540  ;;  %v3555_v61 = vld [vmem:[%s13812_s3 + $0x620] sm:$0xff] }
 0x395   :  { %6412 = vmatprep.mubr.bf16.mxu0 %v9259_v0  ;;  %7064 = vmatprep.mubr.bf16.mxu1 %v9262_v53  ;;  %v4546_v9 = vpop.permute.xlu0 %4545  ;;  %v4778_v16 = vmul.f32 %v4541_v15, %v3554_v54  ;;  %v4777_v0 = vmul.f32 %v4536_v39, %v3553_v31  ;;  %v13950_v15 = vld [vmem:[#allocation45_spill] sm:$0xff]  ;;  %v9324_v39 = vld [vmem:[%s13811_s4 + $0x1cc] ss:$52 sps:$4 sm:$0xff]  }
 0x396   :  { %v13954_v54 = vld [vmem:[#allocation49_spill] sm:$0xff] }
 0x397   :  { %v9339_v31 = vld [vmem:[%s13811_s4 + $0x298] ss:$52 sps:$4 sm:$0xff]  }
 0x398   :  { %v4551_v45 = vpop.permute.xlu1 %4550 }
 0x399   :  { %v4556_v53 = vpop.permute.xlu0 %4555 }
 0x39c   :  { %6413 = vmatmul.mubr.bf16.gmra.mrb[252].mxu0 %v9261_v38  ;;  %7065 = vmatmul.mubr.bf16.gmra.mrb[28].mxu1 %v9264_v62  ;;  %v4561_v50 = vpop.permute.xlu1 %4560  ;;  %v9326_v38 = vld [vmem:[%s13811_s4 + $0x1a8] ss:$52 sps:$4 sm:$0xff]   ;;  %v4780_v62 = vmul.f32 %v4551_v45, %v3556_v3  ;;  %v9346_v45 = vld [vmem:[%s13811_s4 + $0x34c] ss:$52 sps:$4 sm:$0xff]  }
 0x39d   :  { %6420 = vmatprep.mubr.bf16.mxu0 %v9267_v30  ;;  %7072 = vmatprep.mubr.bf16.mxu1 %v9268_v6  ;;  %v4884_v30 = vpack.c.bf16 %v4778_v16, %v4777_v0  ;;  %v13946_v6 = vld [vmem:[#allocation39_spill] sm:$0xff]  ;;  %v9345_v3 = vld [vmem:[%s13811_s4 + $0x300] ss:$52 sps:$4 sm:$0xff]  }
 0x39e   :  { %v9362_v16 = vld [vmem:[%s13811_s4 + $0x418] ss:$52 sps:$4 sm:$0xff]   ;;  %v9368_v0 = vld [vmem:[%s13811_s4 + $0x480] ss:$52 sps:$4 sm:$0xff]  }
 0x3a4   :  { %6421 = vmatmul.mubr.bf16.gmra.mrb[0].mxu0 %v9265_v48  ;;  %7073 = vmatmul.mubr.bf16.gmra.mrb[32].mxu1 %v9270_v4  ;;  %v9328_v48 = vld [vmem:[%s13811_s4 + $0x214] ss:$52 sps:$4 sm:$0xff]   ;;  %v9309_v4 = vld [vmem:[%s13811_s4 + $0x90] ss:$52 sps:$4 sm:$0xff]  }
 0x3a5   :  { %6428 = vmatprep.mubr.bf16.mxu0 %v9273_v20  ;;  %7080 = vmatprep.mubr.bf16.mxu1 %v9274_v58  ;;  %v3558_v20 = vld [vmem:[%s13812_s3 + $0x638] sm:$0xff]  ;;  %v4779_v58 = vmul.f32 %v4546_v9, %v3555_v61  ;;  %v9352_v9 = vld [vmem:[%s13811_s4 + $0x3b4] ss:$52 sps:$4 sm:$0xff]   ;;  %v9370_v61 = vld [vmem:[%s13811_s4 + $0x4ec] ss:$52 sps:$4 sm:$0xff]  }
 0x3ac   :  { %6429 = vmatmul.mubr.bf16.gmra.mrb[4].mxu0 %v9271_v5  ;;  %7081 = vmatmul.mubr.bf16.gmra.mrb[36].mxu1 %v9276_v1  ;;  %v9312_v5 = vld [vmem:[%s13811_s4 + $0xfc] ss:$52 sps:$4 sm:$0xff]   ;;  %v4571_v1 = vpop.permute.xlu1 %4570 }
 0x3ad   :  { %6436 = vmatprep.mubr.bf16.mxu0 %v9279_v26  ;;  %7088 = vmatprep.mubr.bf16.mxu1 %v9280_v59  ;;  %v3557_v26 = vld [vmem:[%s13812_s3 + $0x630] sm:$0xff]  ;;  %v4885_v59 = vpack.c.bf16 %v4780_v62, %v4779_v58  ;;  %v9363_v58 = vld [vmem:[%s13811_s4 + $0x438] ss:$52 sps:$4 sm:$0xff]  }
 0x3ae   :  { %v9378_v62 = vld [vmem:[%s13811_s4 + $0x554] ss:$52 sps:$4 sm:$0xff]  }
 0x3b4   :  { %6437 = vmatmul.mubr.bf16.gmra.mrb[8].mxu0 %v9277_v51  ;;  %7089 = vmatmul.mubr.bf16.gmra.mrb[40].mxu1 %v9282_v63  ;;  %v4782_v51 = vmul.f32 %v4561_v50, %v3558_v20  ;;  %v4566_v63 = vpop.permute.xlu0 %4565  ;;  %v9348_v50 = vld [vmem:[%s13811_s4 + $0x36c] ss:$52 sps:$4 sm:$0xff]   ;;  %v9376_v20 = vld [vmem:[%s13811_s4 + $0x550] ss:$52 sps:$4 sm:$0xff]  }
 0x3b5   :  { %6444 = vmatprep.mubr.bf16.mxu0 %v9285_v46  ;;  %7096 = vmatprep.mubr.bf16.mxu1 %v9286_v56  ;;  %v13947_v46 = vld [vmem:[#allocation40_spill] sm:$0xff]  ;;  %v3560_v56 = vld [vmem:[%s13812_s3 + $0x648] sm:$0xff] }
 0x3bc   :  { %6445 = vmatmul.mubr.bf16.gmra.mrb[12].mxu0 %v9283_v37  ;;  %7097 = vmatmul.mubr.bf16.gmra.mrb[44].mxu1 %v9288_v40  ;;  %v4781_v37 = vmul.f32 %v4556_v53, %v3557_v26  ;;  %v9332_v40 = vld [vmem:[%s13811_s4 + $0x210] ss:$52 sps:$4 sm:$0xff]   ;;  %v9351_v53 = vld [vmem:[%s13811_s4 + $0x368] ss:$52 sps:$4 sm:$0xff]   ;;  %v9382_v26 = vld [vmem:[%s13811_s4 + $0x5b8] ss:$52 sps:$4 sm:$0xff]  }
 0x3bd   :  { %6485 = vmatprep.mubr.bf16.mxu0 %v9291_v52  ;;  %7104 = vmatprep.mubr.bf16.mxu1 %v9292_v19  ;;  %v3559_v52 = vld [vmem:[%s13812_s3 + $0x640] sm:$0xff] }
 0x3be   :  { %v4886_v19 = vpack.c.bf16 %v4782_v51, %v4781_v37  ;;  %v9372_v51 = vld [vmem:[%s13811_s4 + $0x50c] ss:$52 sps:$4 sm:$0xff]   ;;  %v9379_v37 = vld [vmem:[%s13811_s4 + $0x574] ss:$52 sps:$4 sm:$0xff]  }
 0x3c4   :  { %6486 = vmatmul.mubr.bf16.vlgmr.msra.gmra.mrb[204].mxu0 %v9289_v17  ;;  %7105 = vmatmul.mubr.bf16.gmra.mrb[48].mxu1 %v9294_v47  ;;  %v4784_v17 = vmul.f32 %v4571_v1, %v3560_v56  ;;  %v9334_v47 = vld [vmem:[%s13811_s4 + $0x27c] ss:$52 sps:$4 sm:$0xff]   ;;  %v9390_v1 = vld [vmem:[%s13811_s4 + $0x624] ss:$52 sps:$4 sm:$0xff]  }
 0x3c5   :  { %6623 = vmatpush1.bf16.msra.mxu0 %v13939_v24  ;;  %6493 = vmatprep.mubr.bf16.mxu0 %v9304_v42  ;;  %v13948_v42 = vld [vmem:[#allocation42_spill] sm:$0xff]  ;;  %v4581_v24 = vpop.permute.xlu1 %4580  ;;  %v9375_v56 = vld [vmem:[%s13811_s4 + $0x508] ss:$52 sps:$4 sm:$0xff]  }
 0x3c6   :  { %6624 = vmatprep.subr.bf16.mxu0 %v13864_v32  ;;  %7112 = vmatprep.mubr.bf16.mxu1 %v9295_v57  ;;  %v3562_v57 = vld [vmem:[%s13812_s3 + $0x658] sm:$0xff] }
 0x3c9   :  { %6625 = vmatpush1.bf16.msra.mxu0 %v13940_v60  ;;  %v4783_v60 = vmul.f32 %v4566_v63, %v3559_v52  ;;  %v9396_v63 = vld [vmem:[%s13811_s4 + $0x68c] ss:$52 sps:$4 sm:$0xff]   ;;  %v9394_v52 = vld [vmem:[%s13811_s4 + $0x688] ss:$52 sps:$4 sm:$0xff]  }
 0x3ca   :  { %6626 = vmatprep.subr.bf16.mxu0 %v13864_v32 }
 0x3cb   :  { %v4887_v23 = vpack.c.bf16 %v4784_v17, %v4783_v60  ;;  %v9385_v17 = vld [vmem:[%s13811_s4 + $0x5dc] ss:$52 sps:$4 sm:$0xff]   ;;  %v9393_v60 = vld [vmem:[%s13811_s4 + $0x640] ss:$52 sps:$4 sm:$0xff]  }
 0x3cc   :  { %6494 = vmatmul.mubr.bf16.gmra.mrb[208].mxu0 %v9308_v41  ;;  %7113 = vmatmul.mubr.bf16.gmra.mrb[52].mxu1 %v9297_v29  ;;  %v9315_v41 = vld [vmem:[%s13811_s4 + $0xf8] ss:$52 sps:$4 sm:$0xff]   ;;  %v3561_v29 = vld [vmem:[%s13812_s3 + $0x650] sm:$0xff] }
 0x3cd   :  { %6627 = vmatpush1.bf16.msra.mxu0 %v13941_v49  ;;  %6501 = vmatprep.mubr.bf16.mxu0 %v9310_v12  ;;  %v9318_v12 = vld [vmem:[%s13811_s4 + $0x164] ss:$52 sps:$4 sm:$0xff]   ;;  %v4786_v49 = vmul.f32 %v4581_v24, %v3562_v57 }
 0x3ce   :  { %6628 = vmatprep.subr.bf16.mxu0 %v13864_v32  ;;  %7120 = vmatprep.mubr.bf16.mxu1 %v9298_v34  ;;  %v4576_v34 = vpop.permute.xlu0 %4575  ;;  %v9387_v57 = vld [vmem:[%s13811_s4 + $0x5d8] ss:$52 sps:$4 sm:$0xff]  }
 0x3cf   :  { %v9391_v24 = vld [vmem:[%s13811_s4 + $0x644] ss:$52 sps:$4 sm:$0xff]  }
 0x3d1   :  { %6629 = vmatpush1.bf16.msra.mxu0 %v13942_v11  ;;  %v9338_v11 = vld [vmem:[%s13811_s4 + $0x278] ss:$52 sps:$4 sm:$0xff]  }
 0x3d2   :  { %6630 = vmatprep.subr.bf16.mxu0 %v13864_v32 }
 0x3d4   :  { %6502 = vmatmul.mubr.bf16.gmra.mrb[212].mxu0 %v9314_v27  ;;  %7121 = vmatmul.mubr.bf16.gmra.mrb[56].mxu1 %v9300_v21  ;;  %v4785_v27 = vmul.f32 %v4576_v34, %v3561_v29  ;;  %v9340_v21 = vld [vmem:[%s13811_s4 + $0x2e4] ss:$52 sps:$4 sm:$0xff]   ;;  %v9399_v29 = vld [vmem:[%s13811_s4 + $0x6a8] ss:$52 sps:$4 sm:$0xff]  }
 0x3d5   :  { %6631 = vmatpush1.bf16.msra.mxu0 %v13943_v14  ;;  %6509 = vmatprep.mubr.bf16.mxu0 %v9316_v18  ;;  %v13951_v14 = vld [vmem:[#allocation46_spill] sm:$0xff] }
 0x3d6   :  { %6632 = vmatprep.subr.bf16.mxu0 %v13864_v32  ;;  %7161 = vmatprep.mubr.bf16.mxu1 %v9303_v35  ;;  %v4888_v18 = vpack.c.bf16 %v4786_v49, %v4785_v27  ;;  %v9321_v35 = vld [vmem:[%s13811_s4 + $0x160] ss:$52 sps:$4 sm:$0xff]   ;;  %v9403_v34 = vld [vmem:[%s13811_s4 + $0x30] ss:$52 sps:$4 sm:$0xff]  }
 0x3d7   :  { %v9408_v49 = vld [vmem:[%s13811_s4 + $0x100] ss:$52 sps:$4 sm:$0xff]   ;;  %v9410_v27 = vld [vmem:[%s13811_s4 + $0x1d0] ss:$52 sps:$4 sm:$0xff]  }
 0x3d9   :  { %6633 = vmatpush1.bf16.msra.mxu0 %v13944_v8  ;;  %v13953_v8 = vld [vmem:[#allocation48_spill] sm:$0xff] }
 0x3da   :  { %6634 = vmatprep.subr.bf16.mxu0 %v13864_v32 }
 0x3dc   :  { %6510 = vmatmul.mubr.bf16.gmra.mrb[216].mxu0 %v9320_v28  ;;  %7162 = vmatmul.mubr.bf16.vlgmr.msra.gmra.mrb[60].mxu1 %v9301_v33  ;;  %v9327_v28 = vld [vmem:[%s13811_s4 + $0x1c8] ss:$52 sps:$4 sm:$0xff]   ;;  %v9333_v33 = vld [vmem:[%s13811_s4 + $0x230] ss:$52 sps:$4 sm:$0xff]  }
 0x3dd   :  { %6635 = vmatpush1.bf16.msra.mxu0 %v13945_v55  ;;  %6517 = vmatprep.mubr.bf16.mxu0 %v9322_v7  ;;  %v9350_v7 = vld [vmem:[%s13811_s4 + $0x348] ss:$52 sps:$4 sm:$0xff]   ;;  %v9364_v55 = vld [vmem:[%s13811_s4 + $0x484] ss:$52 sps:$4 sm:$0xff]  }
 0x3de   :  { %6636 = vmatprep.subr.bf16.mxu0 %v13864_v32  ;;  %8502 = vmatpush3.bf16.msra.mxu1 %v4883_v36  ;;  %v9342_v36 = vld [vmem:[%s13811_s4 + $0x304] ss:$52 sps:$4 sm:$0xff]  }
 0x3df   :  { %7169 = vmatprep.mubr.bf16.mxu1 %v9306_v10  ;;  %8503 = vmatprep.subr.bf16.mxu1 %v10240_v13  ;;  %v9358_v10 = vld [vmem:[%s13811_s4 + $0x41c] ss:$52 sps:$4 sm:$0xff]  }
 0x3e1   :  { %6637 = vmatpush1.bf16.msra.mxu0 %v13946_v6  ;;  %v9357_v6 = vld [vmem:[%s13811_s4 + $0x3d0] ss:$52 sps:$4 sm:$0xff]  }
 0x3e2   :  { %6638 = vmatprep.subr.bf16.mxu0 %v13864_v32  ;;  %8504 = vmatpush3.bf16.msra.mxu1 %v4884_v30  ;;  %v9374_v30 = vld [vmem:[%s13811_s4 + $0x4e8] ss:$52 sps:$4 sm:$0xff]  }
 0x3e3   :  { %8505 = vmatprep.subr.bf16.mxu1 %v10240_v13 }
 0x3e4   :  { %6518 = vmatmul.mubr.bf16.gmra.mrb[220].mxu0 %v9326_v38  ;;  %7170 = vmatmul.mubr.bf16.gmra.mrb[64].mxu1 %v9309_v4  ;;  %v9354_v38 = vld [vmem:[%s13811_s4 + $0x3d4] ss:$52 sps:$4 sm:$0xff]   ;;  %v9384_v4 = vld [vmem:[%s13811_s4 + $0x5bc] ss:$52 sps:$4 sm:$0xff]  }
 0x3e5   :  { %6639 = vmatpush1.bf16.msra.mxu0 %v13947_v46  ;;  %6525 = vmatprep.mubr.bf16.mxu0 %v9328_v48  ;;  %v9360_v48 = vld [vmem:[%s13811_s4 + $0x43c] ss:$52 sps:$4 sm:$0xff]   ;;  %v9388_v46 = vld [vmem:[%s13811_s4 + $0x620] ss:$52 sps:$4 sm:$0xff]  }
 0x3e6   :  { %6640 = vmatprep.subr.bf16.mxu0 %v13864_v32  ;;  %8506 = vmatpush3.bf16.msra.mxu1 %v4885_v59  ;;  %v9369_v59 = vld [vmem:[%s13811_s4 + $0x4a0] ss:$52 sps:$4 sm:$0xff]  }
 0x3e7   :  { %7177 = vmatprep.mubr.bf16.mxu1 %v9312_v5  ;;  %8507 = vmatprep.subr.bf16.mxu1 %v10240_v13  ;;  %v9366_v5 = vld [vmem:[%s13811_s4 + $0x4a4] ss:$52 sps:$4 sm:$0xff]  }
 0x3e9   :  { %6641 = vmatpush1.bf16.msra.mxu0 %v13948_v42  ;;  %v9400_v42 = vld [vmem:[%s13811_s4 + $0x10] ss:$52 sps:$4 sm:$0xff]  }
 0x3ea   :  { %6642 = vmatprep.subr.bf16.mxu0 %v13864_v32  ;;  %8508 = vmatpush3.bf16.msra.mxu1 %v4886_v19  ;;  %v9381_v19 = vld [vmem:[%s13811_s4 + $0x570] ss:$52 sps:$4 sm:$0xff]  }
 0x3eb   :  { %8509 = vmatprep.subr.bf16.mxu1 %v10240_v13 }
 0x3ec   :  { %6526 = vmatmul.mubr.bf16.gmra.mrb[224].mxu0 %v9332_v40  ;;  %7178 = vmatmul.mubr.bf16.gmra.mrb[0].mxu1 %v9315_v41  ;;  %v9402_v40 = vld [vmem:[%s13811_s4 + $0x14] ss:$52 sps:$4 sm:$0xff]   ;;  %v9406_v41 = vld [vmem:[%s13811_s4 + $0x78] ss:$52 sps:$4 sm:$0xff]  }
 0x3ed   :  { %6643 = vmatpush1.bf16.msra.mxu0 %v13949_v43  ;;  %6533 = vmatprep.mubr.bf16.mxu0 %v9334_v47  ;;  %v9404_v47 = vld [vmem:[%s13811_s4 + $0x7c] ss:$52 sps:$4 sm:$0xff]  }
 0x3ee   :  { %6644 = vmatprep.subr.bf16.mxu0 %v13864_v32  ;;  %8510 = vmatpush3.bf16.msra.mxu1 %v4887_v23  ;;  %v9407_v23 = vld [vmem:[%s13811_s4 + $0x98] ss:$52 sps:$4 sm:$0xff]   ;;  %v9409_v43 = vld [vmem:[%s13811_s4 + $0x168] ss:$52 sps:$4 sm:$0xff]  }
 0x3ef   :  { %7185 = vmatprep.mubr.bf16.mxu1 %v9318_v12  ;;  %8511 = vmatprep.subr.bf16.mxu1 %v10240_v13  ;;  %v9397_v12 = vld [vmem:[%s13811_s4 + $0x6ac] ss:$52 sps:$4 sm:$0xff]  }
 0x3f1   :  { %6645 = vmatpush1.bf16.msra.mxu0 %v13950_v15  ;;  %v9413_v15 = vld [vmem:[%s13811_s4 + $0x308] ss:$52 sps:$4 sm:$0xff]  }
 0x3f2   :  { %6646 = vmatprep.subr.bf16.mxu0 %v13864_v32  ;;  %8512 = vmatpush3.bf16.msra.mxu1 %v4888_v18  ;;  %v9412_v18 = vld [vmem:[%s13811_s4 + $0x2a0] ss:$52 sps:$4 sm:$0xff]  }
 0x3f4   :  { %6534 = vmatmul.mubr.bf16.gmra.mrb[228].mxu0 %v9338_v11  ;;  %7186 = vmatmul.mubr.bf16.gmra.mrb[4].mxu1 %v9321_v35  ;;  %v9411_v11 = vld [vmem:[%s13811_s4 + $0x238] ss:$52 sps:$4 sm:$0xff]  }
 0x3f5   :  { %6647 = vmatpush1.bf16.msra.mxu0 %v13951_v14  ;;  %6541 = vmatprep.mubr.bf16.mxu0 %v9340_v21  ;;  %v9414_v21 = vld [vmem:[%s13811_s4 + $0x370] ss:$52 sps:$4 sm:$0xff]  }
 0x3f6   :  { %6648 = vmatprep.subr.bf16.mxu0 %v13864_v32  ;;  %7193 = vmatprep.mubr.bf16.mxu1 %v9324_v39 }
 0x3f9   :  { %6649 = vmatpush1.bf16.msra.mxu0 %v13952_v2 }
 0x3fa   :  { %6650 = vmatprep.subr.bf16.mxu0 %v13864_v32 }
 0x3fc   :  { %6542 = vmatmul.mubr.bf16.gmra.mrb[232].mxu0 %v9344_v44  ;;  %7194 = vmatmul.mubr.bf16.gmra.mrb[8].mxu1 %v9327_v28  ;;  %v9415_v44 = vld [vmem:[%s13811_s4 + $0x3d8] ss:$52 sps:$4 sm:$0xff]  }
 0x3fd   :  { %6651 = vmatpush1.bf16.msra.mxu0 %v13953_v8  ;;  %6549 = vmatprep.mubr.bf16.mxu0 %v9346_v45  ;;  %v9416_v8 = vld [vmem:[%s13811_s4 + $0x440] ss:$52 sps:$4 sm:$0xff]  }
 0x3fe   :  { %6652 = vmatprep.subr.bf16.mxu0 %v13864_v32  ;;  %7201 = vmatprep.mubr.bf16.mxu1 %v9330_v22  ;;  %v9356_v32 = vld [vmem:[%s13811_s4 + $0x3b0] ss:$52 sps:$4 sm:$0xff]  }
 0x401   :  { %6653 = vmatpush1.bf16.msra.mxu0 %v13954_v54 }
 0x404   :  { %6550 = vmatmul.mubr.bf16.gmra.mrb[236].mxu0 %v9350_v7  ;;  %7202 = vmatmul.mubr.bf16.gmra.mrb[12].mxu1 %v9333_v33 }
 0x405   :  { %6557 = vmatprep.mubr.bf16.mxu0 %v9352_v9  ;;  %7209 = vmatprep.mubr.bf16.mxu1 %v9336_v25  ;;  %v9417_v25 = vld [vmem:[%s13811_s4 + $0x4a8] ss:$52 sps:$4 sm:$0xff]  }
 0x40c   :  { %6558 = vmatmul.mubr.bf16.gmra.mrb[240].mxu0 %v9356_v32  ;;  %7210 = vmatmul.mubr.bf16.gmra.mrb[16].mxu1 %v9339_v31 }
 0x40d   :  { %6565 = vmatprep.mubr.bf16.mxu0 %v9358_v10  ;;  %7217 = vmatprep.mubr.bf16.mxu1 %v9342_v36 }
 0x414   :  { %6566 = vmatmul.mubr.bf16.gmra.mrb[244].mxu0 %v9362_v16  ;;  %7218 = vmatmul.mubr.bf16.gmra.mrb[20].mxu1 %v9345_v3  ;;  %v9418_v16 = vld [vmem:[%s13811_s4 + $0x510] ss:$52 sps:$4 sm:$0xff]  }
 0x415   :  { %6573 = vmatprep.mubr.bf16.mxu0 %v9364_v55  ;;  %7225 = vmatprep.mubr.bf16.mxu1 %v9348_v50 }
 0x41c   :  { %6574 = vmatmul.mubr.bf16.gmra.mrb[248].mxu0 %v9368_v0  ;;  %7226 = vmatmul.mubr.bf16.gmra.mrb[24].mxu1 %v9351_v53 }
 0x41d   :  { %6581 = vmatprep.mubr.bf16.mxu0 %v9370_v61  ;;  %7233 = vmatprep.mubr.bf16.mxu1 %v9354_v38  ;;  %v9419_v61 = vld [vmem:[%s13811_s4 + $0x578] ss:$52 sps:$4 sm:$0xff]  }
 0x424   :  { %6582 = vmatmul.mubr.bf16.gmra.mrb[252].mxu0 %v9374_v30  ;;  %7234 = vmatmul.mubr.bf16.gmra.mrb[28].mxu1 %v9357_v6  ;;  %v9420_v6 = vld [vmem:[%s13811_s4 + $0x5e0] ss:$52 sps:$4 sm:$0xff]  }
 0x425   :  { %6589 = vmatprep.mubr.bf16.mxu0 %v9378_v62  ;;  %7241 = vmatprep.mubr.bf16.mxu1 %v9360_v48 }
 0x42c   :  { %6590 = vmatmul.mubr.bf16.gmra.mrb[0].mxu0 %v9376_v20  ;;  %7242 = vmatmul.mubr.bf16.gmra.mrb[32].mxu1 %v9363_v58 }
 0x42d   :  { %6597 = vmatprep.mubr.bf16.mxu0 %v9384_v4  ;;  %7249 = vmatprep.mubr.bf16.mxu1 %v9366_v5  ;;  %v9421_v5 = vld [vmem:[%s13811_s4 + $0x648] ss:$52 sps:$4 sm:$0xff]  }
 0x434   :  { %6598 = vmatmul.mubr.bf16.gmra.mrb[4].mxu0 %v9382_v26  ;;  %7250 = vmatmul.mubr.bf16.gmra.mrb[36].mxu1 %v9369_v59 }
 0x435   :  { %6605 = vmatprep.mubr.bf16.mxu0 %v9390_v1  ;;  %7257 = vmatprep.mubr.bf16.mxu1 %v9372_v51 }
 0x43c   :  { %6606 = vmatmul.mubr.bf16.gmra.mrb[8].mxu0 %v9388_v46  ;;  %7258 = vmatmul.mubr.bf16.gmra.mrb[40].mxu1 %v9375_v56  ;;  %v9422_v46 = vld [vmem:[%s13811_s4 + $0x6b0] ss:$52 sps:$4 sm:$0xff]  }
 0x43d   :  { %6613 = vmatprep.mubr.bf16.mxu0 %v9396_v63  ;;  %7265 = vmatprep.mubr.bf16.mxu1 %v9379_v37 }
 0x444   :  { %6614 = vmatmul.mubr.bf16.gmra.mrb[12].mxu0 %v9394_v52  ;;  %7266 = vmatmul.mubr.bf16.gmra.mrb[44].mxu1 %v9381_v19 }
 0x445   :  { %6654 = vmatprep.mubr.bf16.mxu0 %v9402_v40  ;;  %7273 = vmatprep.mubr.bf16.mxu1 %v9385_v17 }
 0x44c   :  { %6655 = vmatmul.mubr.bf16.vlgmr.msra.gmra.mrb[204].mxu0 %v9400_v42  ;;  %7274 = vmatmul.mubr.bf16.gmra.mrb[48].mxu1 %v9387_v57 }
 0x44d   :  { %6662 = vmatprep.mubr.bf16.mxu0 %v9404_v47  ;;  %7281 = vmatprep.mubr.bf16.mxu1 %v9391_v24 }
 0x454   :  { %6663 = vmatmul.mubr.bf16.gmra.mrb[208].mxu0 %v9406_v41  ;;  %7282 = vmatmul.mubr.bf16.gmra.mrb[52].mxu1 %v9393_v60 }
 0x455   :  { %7289 = vmatprep.mubr.bf16.mxu1 %v9397_v12 }
 0x45c   :  { %7290 = vmatmul.mubr.bf16.gmra.mrb[56].mxu1 %v9399_v29 }
 0x45d   :  { %8513 = vmatprep.mubr.msk.bf16.mxu1 %vm10241_vm2, %v10240_v13 }
 0x464   :  { %8514 = vmatmul.mubr.msk.bf16.vlgmr.msra.gmra.mrb[60].mxu1 %vm6232_vm3, %v9403_v34 }
 0x465   :  { %8517 = vmatprep.mubr.msk.bf16.mxu1 %vm10241_vm2, %v10240_v13 }
 0x46c   :  { %8518 = vmatmul.mubr.msk.bf16.gmra.mrb[64].mxu1 %vm6232_vm3, %v9407_v23 }
 0x46d   :  { %8521 = vmatprep.mubr.msk.bf16.mxu1 %vm10241_vm2, %v10240_v13 }
 0x474   :  { %8522 = vmatmul.mubr.msk.bf16.gmra.mrb[0].mxu1 %vm6232_vm3, %v9408_v49 }
 0x475   :  { %8525 = vmatprep.mubr.msk.bf16.mxu1 %vm10241_vm2, %v10240_v13 }
 0x47c   :  { %8526 = vmatmul.mubr.msk.bf16.gmra.mrb[4].mxu1 %vm6232_vm3, %v9409_v43 }
 0x47d   :  { %8529 = vmatprep.mubr.msk.bf16.mxu1 %vm10241_vm2, %v10240_v13 }
 0x484   :  { %8530 = vmatmul.mubr.msk.bf16.gmra.mrb[8].mxu1 %vm6232_vm3, %v9410_v27 }
 0x485   :  { %8533 = vmatprep.mubr.msk.bf16.mxu1 %vm10241_vm2, %v10240_v13 }
 0x48c   :  { %8534 = vmatmul.mubr.msk.bf16.gmra.mrb[12].mxu1 %vm6232_vm3, %v9411_v11 }
 0x48d   :  { %8537 = vmatprep.mubr.msk.bf16.mxu1 %vm10241_vm2, %v10240_v13 }
 0x494   :  { %8538 = vmatmul.mubr.msk.bf16.gmra.mrb[16].mxu1 %vm6232_vm3, %v9412_v18 }
 0x495   :  { %8541 = vmatprep.mubr.msk.bf16.mxu1 %vm10241_vm2, %v10240_v13 }
 0x49c   :  { %8542 = vmatmul.mubr.msk.bf16.gmra.mrb[20].mxu1 %vm6232_vm3, %v9413_v15 }
 0x49d   :  { %8545 = vmatprep.mubr.msk.bf16.mxu1 %vm10241_vm2, %v10240_v13 }
 0x4a4   :  { %8546 = vmatmul.mubr.msk.bf16.gmra.mrb[24].mxu1 %vm6232_vm3, %v9414_v21 }
 0x4a5   :  { %8549 = vmatprep.mubr.msk.bf16.mxu1 %vm10241_vm2, %v10240_v13 }
 0x4a7   :  { %v13536_v35 = vpop.f32.mrb[212].mxu0 }
 0x4a8   :  { %v6505_v39 = vpop.f32.mrb[213].mxu0 }
 0x4a9   :  { %v13538_v14 = vpop.f32.mrb[214].mxu0 }
 0x4aa   :  { %v6508_v2 = vpop.f32.mrb[215].mxu0 }
 0x4ac   :  { %8550 = vmatmul.mubr.msk.bf16.gmra.mrb[28].mxu1 %vm6232_vm3, %v9415_v44 }
 0x4ad   :  { %8553 = vmatprep.mubr.msk.bf16.mxu1 %vm10241_vm2, %v10240_v13 }
 0x4af   :  { %v13546_v45 = vpop.f32.mrb[216].mxu0 }
 0x4b0   :  { %v6513_v28 = vpop.f32.mrb[217].mxu0 }
 0x4b1   :  { %v13548_v22 = vpop.f32.mrb[218].mxu0 }
 0x4b2   :  { %v6516_v7 = vpop.f32.mrb[219].mxu0 }
 0x4b4   :  { %8554 = vmatmul.mubr.msk.bf16.gmra.mrb[32].mxu1 %vm6232_vm3, %v9416_v8 }
 0x4b5   :  { %8557 = vmatprep.mubr.msk.bf16.mxu1 %vm10241_vm2, %v10240_v13 }
 0x4b7   :  { %v13556_v54 = vpop.f32.mrb[220].mxu0 }
 0x4b8   :  { %v6521_v9 = vpop.f32.mrb[221].mxu0 }
 0x4b9   :  { %v13558_v33 = vpop.f32.mrb[222].mxu0 }
 0x4ba   :  { %v6524_v32 = vpop.f32.mrb[223].mxu0 }
 0x4bc   :  { %8558 = vmatmul.mubr.msk.bf16.gmra.mrb[36].mxu1 %vm6232_vm3, %v9417_v25 }
 0x4bd   :  { %8561 = vmatprep.mubr.msk.bf16.mxu1 %vm10241_vm2, %v10240_v13 }
 0x4bf   :  { %v13566_v10 = vpop.f32.mrb[224].mxu0 }
 0x4c0   :  { %v6529_v31 = vpop.f32.mrb[225].mxu0 }
 0x4c1   :  { %v13568_v36 = vpop.f32.mrb[226].mxu0 }
 0x4c2   :  { %v6532_v55 = vpop.f32.mrb[227].mxu0 }
 0x4c4   :  { %8562 = vmatmul.mubr.msk.bf16.gmra.mrb[40].mxu1 %vm6232_vm3, %v9418_v16 }
 0x4c5   :  { %8565 = vmatprep.mubr.msk.bf16.mxu1 %vm10241_vm2, %v10240_v13 }
 0x4c7   :  { %v13576_v3 = vpop.f32.mrb[228].mxu0 }
 0x4c8   :  { %v6537_v50 = vpop.f32.mrb[229].mxu0 }
 0x4c9   :  { %v13578_v0 = vpop.f32.mrb[230].mxu0 }
 0x4ca   :  { %v6540_v53 = vpop.f32.mrb[231].mxu0 }
 0x4cc   :  { %8566 = vmatmul.mubr.msk.bf16.gmra.mrb[44].mxu1 %vm6232_vm3, %v9419_v61 }
 0x4cd   :  { %8569 = vmatprep.mubr.msk.bf16.mxu1 %vm10241_vm2, %v10240_v13 }
 0x4cf   :  { %v13586_v38 = vpop.f32.mrb[232].mxu0 }
 0x4d0   :  { %v6545_v30 = vpop.f32.mrb[233].mxu0 }
 0x4d1   :  { %v13588_v62 = vpop.f32.mrb[234].mxu0 }
 0x4d2   :  { %v6548_v48 = vpop.f32.mrb[235].mxu0 }
 0x4d4   :  { %8570 = vmatmul.mubr.msk.bf16.gmra.mrb[48].mxu1 %vm6232_vm3, %v9420_v6 }
 0x4d5   :  { %8573 = vmatprep.mubr.msk.bf16.mxu1 %vm10241_vm2, %v10240_v13 }
 0x4d7   :  { %v13596_v20 = vpop.f32.mrb[236].mxu0 }
 0x4d8   :  { %v6553_v4 = vpop.f32.mrb[237].mxu0 }
 0x4d9   :  { %v13598_v58 = vpop.f32.mrb[238].mxu0 }
 0x4da   :  { %v6556_v26 = vpop.f32.mrb[239].mxu0 }
 0x4dc   :  { %8574 = vmatmul.mubr.msk.bf16.gmra.mrb[52].mxu1 %vm6232_vm3, %v9421_v5 }
 0x4dd   :  { %8577 = vmatprep.mubr.msk.bf16.mxu1 %vm10241_vm2, %v10240_v13 }
 0x4df   :  { %v13606_v1 = vpop.f32.mrb[240].mxu0 }
 0x4e0   :  { %v6561_v59 = vpop.f32.mrb[241].mxu0 }
 0x4e1   :  { %v13608_v51 = vpop.f32.mrb[242].mxu0 }
 0x4e2   :  { %v6564_v63 = vpop.f32.mrb[243].mxu0 }
 0x4e4   :  { %8578 = vmatmul.mubr.msk.bf16.gmra.mrb[56].mxu1 %vm6232_vm3, %v9422_v46 }
 0x4e7   :  { %v13614_v56 = vpop.f32.mrb[244].mxu0 }
 0x4e8   :  { %v6569_v37 = vpop.f32.mrb[245].mxu0 }
 0x4e9   :  { %v13616_v52 = vpop.f32.mrb[246].mxu0 }
 0x4ea   :  { %v6572_v40 = vpop.f32.mrb[247].mxu0 }
 0x4ef   :  { %v13618_v19 = vpop.f32.mrb[248].mxu0 }
 0x4f0   :  { %v6577_v13 = vpop.f32.mrb[249].mxu0 }
 0x4f1   :  { %v13620_v17 = vpop.f32.mrb[250].mxu0 }
 0x4f2   :  { %v6580_v42 = vpop.f32.mrb[251].mxu0 }
 0x4f7   :  { %v13622_v47 = vpop.f32.mrb[252].mxu0 }
 0x4f8   :  { %v6585_v57 = vpop.f32.mrb[253].mxu0 }
 0x4f9   :  { %v13624_v24 = vpop.f32.mrb[254].mxu0 }
 0x4fa   :  { %v6588_v41 = vpop.f32.mrb[255].mxu0 }
 0x4ff   :  { %v13626_v60 = vpop.f32.mrb[0].mxu0 }
 0x500   :  { %v6593_v12 = vpop.f32.mrb[1].mxu0 }
 0x501   :  { %v13628_v29 = vpop.f32.mrb[2].mxu0 }
 0x502   :  { %v6596_v34 = vpop.f32.mrb[3].mxu0 }
 0x507   :  { %v13630_v23 = vpop.f32.mrb[4].mxu0 }
 0x508   :  { %v6601_v49 = vpop.f32.mrb[5].mxu0 }
 0x509   :  { %v13632_v43 = vpop.f32.mrb[6].mxu0 }
 0x50a   :  { %v6604_v27 = vpop.f32.mrb[7].mxu0 }
 0x50f   :  { %v13634_v11 = vpop.f32.mrb[8].mxu0 }
 0x510   :  { %v6609_v18 = vpop.f32.mrb[9].mxu0 }
 0x511   :  { %v13636_v15 = vpop.f32.mrb[10].mxu0 }
 0x512   :  { %v6612_v21 = vpop.f32.mrb[11].mxu0 }
 0x517   :  { %v13638_v39 = vpop.f32.mrb[12].mxu0 }
 0x518   :  { %v6617_v44 = vpop.f32.mrb[13].mxu0 }
 0x519   :  { %v13640_v2 = vpop.f32.mrb[14].mxu0 }
 0x51a   :  { %v6620_v28 = vpop.f32.mrb[15].mxu0 }
 0x51f   :  { %v6656_v8 = vpop.f32.mrb[204].mxu0 }
 0x520   :  { %v6658_v7 = vpop.f32.mrb[205].mxu0 }
 0x521   :  { %v6659_v9 = vpop.f32.mrb[206].mxu0 }
 0x522   :  { %v6661_v25 = vpop.f32.mrb[207].mxu0 }
 0x527   :  { %v6664_v32 = vpop.f32.mrb[208].mxu0 }
 0x528   :  { %v6666_v31 = vpop.f32.mrb[209].mxu0 }
 0x529   :  { %v6667_v16 = vpop.f32.mrb[210].mxu0 }
 0x52a   :  { %v6669_v55 = vpop.f32.mrb[211].mxu0 }
 0x537   :  { %v7332_v50 = vpop.f32.mrb[60].mxu1 }
 0x538   :  { %v8613_v61 = vadd.f32 %v7332_v50, %v6656_v8  ;;  %v8515_v53 = vpop.f32.mrb[61].mxu1 }
 0x539   :  { %v7335_v30 = vpop.f32.mrb[62].mxu1 }
 0x53a   :  { %7468 = vst.msk [vmem:[%s13813_s5] sm:$0xff] %vm7467_vm4, %v8613_v61  ;;  %v8614_v6 = vadd.f32 %v7335_v30, %v6659_v9  ;;  %v8516_v48 = vpop.f32.mrb[63].mxu1 }
 0x53c   :  { %7469 = vst.msk [vmem:[%s13813_s5 + $0x8] sm:$0xff] %vm7467_vm4, %v8614_v6 }
 0x53f   :  { %v7340_v4 = vpop.f32.mrb[64].mxu1 }
 0x540   :  { %v8615_v5 = vadd.f32 %v7340_v4, %v6664_v32  ;;  %v8519_v26 = vpop.f32.mrb[65].mxu1 }
 0x541   :  { %v7343_v59 = vpop.f32.mrb[66].mxu1 }
 0x542   :  { %7470 = vst.msk [vmem:[%s13813_s5 + $0x10] sm:$0xff] %vm7467_vm4, %v8615_v5  ;;  %v8616_v46 = vadd.f32 %v7343_v59, %v6667_v16  ;;  %v8520_v63 = vpop.f32.mrb[67].mxu1 }
 0x544   :  { %7471 = vst.msk [vmem:[%s13813_s5 + $0x18] sm:$0xff] %vm7467_vm4, %v8616_v46 }
 0x547   :  { %v7348_v37 = vpop.f32.mrb[0].mxu1 }
 0x548   :  { %v8617_v40 = vadd.f32 %v7348_v37, %v13536_v35  ;;  %v8523_v13 = vpop.f32.mrb[1].mxu1 }
 0x549   :  { %v7351_v42 = vpop.f32.mrb[2].mxu1 }
 0x54a   :  { %7472 = vst.msk [vmem:[%s13813_s5 + $0x20] sm:$0xff] %vm7467_vm4, %v8617_v40  ;;  %v8618_v57 = vadd.f32 %v7351_v42, %v13538_v14  ;;  %v8524_v41 = vpop.f32.mrb[3].mxu1 }
 0x54c   :  { %7473 = vst.msk [vmem:[%s13813_s5 + $0x28] sm:$0xff] %vm7467_vm4, %v8618_v57 }
 0x54f   :  { %v7356_v12 = vpop.f32.mrb[4].mxu1 }
 0x550   :  { %v8619_v34 = vadd.f32 %v7356_v12, %v13546_v45  ;;  %v8527_v49 = vpop.f32.mrb[5].mxu1 }
 0x551   :  { %v7359_v35 = vpop.f32.mrb[6].mxu1 }
 0x552   :  { %7474 = vst.msk [vmem:[%s13813_s5 + $0x30] sm:$0xff] %vm7467_vm4, %v8619_v34  ;;  %v8620_v27 = vadd.f32 %v7359_v35, %v13548_v22  ;;  %v8528_v18 = vpop.f32.mrb[7].mxu1 }
 0x554   :  { %7475 = vst.msk [vmem:[%s13813_s5 + $0x38] sm:$0xff] %vm7467_vm4, %v8620_v27 }
 0x557   :  { %v7364_v14 = vpop.f32.mrb[8].mxu1 }
 0x558   :  { %v8621_v21 = vadd.f32 %v7364_v14, %v13556_v54  ;;  %v8531_v44 = vpop.f32.mrb[9].mxu1 }
 0x559   :  { %v7367_v45 = vpop.f32.mrb[10].mxu1 }
 0x55a   :  { %7476 = vst.msk [vmem:[%s13813_s5 + $0x40] sm:$0xff] %vm7467_vm4, %v8621_v21  ;;  %v8622_v28 = vadd.f32 %v7367_v45, %v13558_v33  ;;  %v8532_v8 = vpop.f32.mrb[11].mxu1 }
 0x55c   :  { %7477 = vst.msk [vmem:[%s13813_s5 + $0x48] sm:$0xff] %vm7467_vm4, %v8622_v28 }
 0x55f   :  { %v7372_v22 = vpop.f32.mrb[12].mxu1 }
 0x560   :  { %v8623_v7 = vadd.f32 %v7372_v22, %v13566_v10  ;;  %v8535_v9 = vpop.f32.mrb[13].mxu1 }
 0x561   :  { %v7375_v54 = vpop.f32.mrb[14].mxu1 }
 0x562   :  { %7478 = vst.msk [vmem:[%s13813_s5 + $0x50] sm:$0xff] %vm7467_vm4, %v8623_v7  ;;  %v8624_v25 = vadd.f32 %v7375_v54, %v13568_v36  ;;  %v8536_v32 = vpop.f32.mrb[15].mxu1 }
 0x564   :  { %7479 = vst.msk [vmem:[%s13813_s5 + $0x58] sm:$0xff] %vm7467_vm4, %v8624_v25 }
 0x567   :  { %v7380_v33 = vpop.f32.mrb[16].mxu1 }
 0x568   :  { %v8625_v31 = vadd.f32 %v7380_v33, %v13576_v3  ;;  %v8539_v16 = vpop.f32.mrb[17].mxu1 }
 0x569   :  { %v7383_v10 = vpop.f32.mrb[18].mxu1 }
 0x56a   :  { %7480 = vst.msk [vmem:[%s13813_s5 + $0x60] sm:$0xff] %vm7467_vm4, %v8625_v31  ;;  %v8626_v55 = vadd.f32 %v7383_v10, %v13578_v0  ;;  %v8540_v50 = vpop.f32.mrb[19].mxu1 }
 0x56c   :  { %7481 = vst.msk [vmem:[%s13813_s5 + $0x68] sm:$0xff] %vm7467_vm4, %v8626_v55 }
 0x56f   :  { %v7388_v36 = vpop.f32.mrb[20].mxu1 }
 0x570   :  { %v8627_v61 = vadd.f32 %v7388_v36, %v13586_v38  ;;  %v8543_v53 = vpop.f32.mrb[21].mxu1 }
 0x571   :  { %v7391_v3 = vpop.f32.mrb[22].mxu1 }
 0x572   :  { %7482 = vst.msk [vmem:[%s13813_s5 + $0x70] sm:$0xff] %vm7467_vm4, %v8627_v61  ;;  %v8628_v30 = vadd.f32 %v7391_v3, %v13588_v62  ;;  %v8544_v6 = vpop.f32.mrb[23].mxu1 }
 0x574   :  { %7483 = vst.msk [vmem:[%s13813_s5 + $0x78] sm:$0xff] %vm7467_vm4, %v8628_v30 }
 0x577   :  { %v7396_v0 = vpop.f32.mrb[24].mxu1 }
 0x578   :  { %v8629_v48 = vadd.f32 %v7396_v0, %v13596_v20  ;;  %v8547_v4 = vpop.f32.mrb[25].mxu1 }
 0x579   :  { %v7399_v38 = vpop.f32.mrb[26].mxu1 }
 0x57a   :  { %7484 = vst.msk [vmem:[%s13813_s5 + $0x80] sm:$0xff] %vm7467_vm4, %v8629_v48  ;;  %v8630_v5 = vadd.f32 %v7399_v38, %v13598_v58  ;;  %v8548_v26 = vpop.f32.mrb[27].mxu1 }
 0x57c   :  { %7485 = vst.msk [vmem:[%s13813_s5 + $0x88] sm:$0xff] %vm7467_vm4, %v8630_v5 }
 0x57f   :  { %v7404_v62 = vpop.f32.mrb[28].mxu1 }
 0x580   :  { %v8631_v59 = vadd.f32 %v7404_v62, %v13606_v1  ;;  %v8551_v46 = vpop.f32.mrb[29].mxu1 }
 0x581   :  { %v7407_v20 = vpop.f32.mrb[30].mxu1 }
 0x582   :  { %7486 = vst.msk [vmem:[%s13813_s5 + $0x90] sm:$0xff] %vm7467_vm4, %v8631_v59  ;;  %v8632_v63 = vadd.f32 %v7407_v20, %v13608_v51  ;;  %v8552_v37 = vpop.f32.mrb[31].mxu1 }
 0x584   :  { %7487 = vst.msk [vmem:[%s13813_s5 + $0x98] sm:$0xff] %vm7467_vm4, %v8632_v63 }
 0x587   :  { %v7412_v58 = vpop.f32.mrb[32].mxu1 }
 0x588   :  { %v8633_v40 = vadd.f32 %v7412_v58, %v13614_v56  ;;  %v8555_v13 = vpop.f32.mrb[33].mxu1 }
 0x589   :  { %v7415_v1 = vpop.f32.mrb[34].mxu1 }
 0x58a   :  { %7488 = vst.msk [vmem:[%s13813_s5 + $0xa0] sm:$0xff] %vm7467_vm4, %v8633_v40  ;;  %v8634_v42 = vadd.f32 %v7415_v1, %v13616_v52  ;;  %v8556_v57 = vpop.f32.mrb[35].mxu1 }
 0x58c   :  { %7489 = vst.msk [vmem:[%s13813_s5 + $0xa8] sm:$0xff] %vm7467_vm4, %v8634_v42 }
 0x58f   :  { %v7420_v51 = vpop.f32.mrb[36].mxu1 }
 0x590   :  { %v8635_v41 = vadd.f32 %v7420_v51, %v13618_v19  ;;  %v8559_v12 = vpop.f32.mrb[37].mxu1 }
 0x591   :  { %v7423_v56 = vpop.f32.mrb[38].mxu1 }
 0x592   :  { %7490 = vst.msk [vmem:[%s13813_s5 + $0xb0] sm:$0xff] %vm7467_vm4, %v8635_v41  ;;  %v8636_v34 = vadd.f32 %v7423_v56, %v13620_v17  ;;  %v8560_v49 = vpop.f32.mrb[39].mxu1 }
 0x594   :  { %7491 = vst.msk [vmem:[%s13813_s5 + $0xb8] sm:$0xff] %vm7467_vm4, %v8636_v34 }
 0x597   :  { %v7428_v52 = vpop.f32.mrb[40].mxu1 }
 0x598   :  { %v8637_v35 = vadd.f32 %v7428_v52, %v13622_v47  ;;  %v8563_v27 = vpop.f32.mrb[41].mxu1 }
 0x599   :  { %v7431_v19 = vpop.f32.mrb[42].mxu1 }
 0x59a   :  { %7492 = vst.msk [vmem:[%s13813_s5 + $0xc0] sm:$0xff] %vm7467_vm4, %v8637_v35  ;;  %v8638_v18 = vadd.f32 %v7431_v19, %v13624_v24  ;;  %v8564_v14 = vpop.f32.mrb[43].mxu1 }
 0x59c   :  { %7493 = vst.msk [vmem:[%s13813_s5 + $0xc8] sm:$0xff] %vm7467_vm4, %v8638_v18 }
 0x59f   :  { %v7436_v17 = vpop.f32.mrb[44].mxu1 }
 0x5a0   :  { %v8639_v21 = vadd.f32 %v7436_v17, %v13626_v60  ;;  %v8567_v44 = vpop.f32.mrb[45].mxu1 }
 0x5a1   :  { %v7439_v47 = vpop.f32.mrb[46].mxu1 }
 0x5a2   :  { %7494 = vst.msk [vmem:[%s13813_s5 + $0xd0] sm:$0xff] %vm7467_vm4, %v8639_v21  ;;  %v8640_v45 = vadd.f32 %v7439_v47, %v13628_v29  ;;  %v8568_v28 = vpop.f32.mrb[47].mxu1 }
 0x5a4   :  { %7495 = vst.msk [vmem:[%s13813_s5 + $0xd8] sm:$0xff] %vm7467_vm4, %v8640_v45 }
 0x5a7   :  { %v7444_v24 = vpop.f32.mrb[48].mxu1 }
 0x5a8   :  { %v8641_v8 = vadd.f32 %v7444_v24, %v13630_v23  ;;  %v8571_v22 = vpop.f32.mrb[49].mxu1 }
 0x5a9   :  { %v7447_v60 = vpop.f32.mrb[50].mxu1 }
 0x5aa   :  { %7496 = vst.msk [vmem:[%s13813_s5 + $0xe0] sm:$0xff] %vm7467_vm4, %v8641_v8  ;;  %v8642_v7 = vadd.f32 %v7447_v60, %v13632_v43  ;;  %v8572_v9 = vpop.f32.mrb[51].mxu1 }
 0x5ac   :  { %7497 = vst.msk [vmem:[%s13813_s5 + $0xe8] sm:$0xff] %vm7467_vm4, %v8642_v7 }
 0x5af   :  { %v7452_v29 = vpop.f32.mrb[52].mxu1 }
 0x5b0   :  { %v8643_v54 = vadd.f32 %v7452_v29, %v13634_v11  ;;  %v8575_v25 = vpop.f32.mrb[53].mxu1 }
 0x5b1   :  { %v7455_v23 = vpop.f32.mrb[54].mxu1 }
 0x5b2   :  { %7498 = vst.msk [vmem:[%s13813_s5 + $0xf0] sm:$0xff] %vm7467_vm4, %v8643_v54  ;;  %v8644_v32 = vadd.f32 %v7455_v23, %v13636_v15  ;;  %v8576_v33 = vpop.f32.mrb[55].mxu1 }
 0x5b4   :  { %7499 = vst.msk [vmem:[%s13813_s5 + $0xf8] sm:$0xff] %vm7467_vm4, %v8644_v32 }
 0x5b7   :  { %v7460_v43 = vpop.f32.mrb[56].mxu1 }
 0x5b8   :  { %v8645_v31 = vadd.f32 %v7460_v43, %v13638_v39  ;;  %v8579_v16 = vpop.f32.mrb[57].mxu1 }
 0x5b9   :  { %v7463_v11 = vpop.f32.mrb[58].mxu1 }
 0x5ba   :  { %7500 = vst.msk [vmem:[%s13813_s5 + $0x100] sm:$0xff] %vm7467_vm4, %v8645_v31  ;;  %v8646_v10 = vadd.f32 %v7463_v11, %v13640_v2  ;;  %v8580_v55 = vpop.f32.mrb[59].mxu1 }
 0x5bc   :  { %7501 = vst.msk [vmem:[%s13813_s5 + $0x108] sm:$0xff] %vm7467_vm4, %v8646_v10 }

</bundles_post_ra>
